<compile_context>
chip_gen: v6e
topology: v6e:2x2x1
jax: 0.10.0
libtpu: 0.0.40
codegen_flags: <defaults>
</compile_context>

<pallas_src>
import jax
import jax.numpy as jnp
import numpy as np
from jax.experimental import pallas as pl
from jax.experimental.pallas import tpu as pltpu

EPS = 1e-5  # nn.BatchNorm2d default eps


def basic_block_kernel(x_ref, w1_ref, cb1_ref, g1_ref, bt1_ref, a1_ref,
                       w2_ref, cb2_ref, g2_ref, bt2_ref, a2_ref,
                       out_ref, pad_ref, left_ref, right_ref):
    N, H, W, C = x_ref.shape
    M = N * H * W

    # Zero only the 1-row H border of the pad scratch, once (it survives both
    # convs because only the interior rows are rewritten).
    zrow = jnp.zeros((N, 1, W, C), jnp.bfloat16)
    pad_ref[:, 0:1, :, :] = zrow
    pad_ref[:, H + 1:H + 2, :, :] = zrow

    def build_shifted_taps():
        # One-vreg column mask; shift + edge-mask in f32 (v5e-safe: no bf16
        # VALU there), then a single down-cast into the bf16 slab scratch.
        col = jax.lax.broadcasted_iota(jnp.int32, (1, 1, W, C), 2)
        p32 = pad_ref[...].astype(jnp.float32)
        left32 = jnp.where(col == 0, 0.0, pltpu.roll(p32, 1, 2))            # x[w-1]
        right32 = jnp.where(col == W - 1, 0.0, pltpu.roll(p32, W - 1, 2))   # x[w+1]
        left_ref[...] = left32.astype(jnp.bfloat16)
        right_ref[...] = right32.astype(jnp.bfloat16)

    def conv3x3(w_ref, bias_row):
        build_shifted_taps()
        # 9 accumulating (M,C)@(C,C) bf16 matmuls, f32 accumulation.  Each LHS
        # is a pure tile-row window of one of the three slabs (no im2col slab,
        # no duplicate copy traffic).
        z = jnp.zeros((M, C), jnp.float32)
        for dy in range(3):
            for dx, slab in ((0, left_ref), (1, pad_ref), (2, right_ref)):
                lhs = slab[:, dy:dy + H, :, :].reshape(M, C)
                z = z + jnp.dot(lhs, w_ref[dy * 3 + dx],
                                preferred_element_type=jnp.float32)
        return z + bias_row

    def batchnorm(z, gamma_row, beta_row):
        # training-mode BatchNorm2d, two-pass biased batch stats in f32
        mu = jnp.mean(z, axis=0, keepdims=True)
        zc = z - mu
        var = jnp.mean(zc * zc, axis=0, keepdims=True)
        return zc * jax.lax.rsqrt(var + EPS) * gamma_row + beta_row

    def prelu(z, alpha_row):
        return jnp.where(z >= 0, z, alpha_row * z)

    # ---- conv1 -> bn1 -> prelu1 ----
    pad_ref[:, 1:H + 1, :, :] = x_ref[...].astype(jnp.bfloat16)
    y1 = prelu(batchnorm(conv3x3(w1_ref, cb1_ref[...]),
                         g1_ref[...], bt1_ref[...]), a1_ref[...])

    # ---- conv2 -> bn2 -> +identity -> prelu2 ----
    pad_ref[:, 1:H + 1, :, :] = y1.reshape(N, H, W, C).astype(jnp.bfloat16)
    y2 = batchnorm(conv3x3(w2_ref, cb2_ref[...]), g2_ref[...], bt2_ref[...])
    y2 = y2 + x_ref[...].reshape(M, C)          # residual re-read at use site (f32)
    out_ref[...] = prelu(y2, a2_ref[...]).reshape(N, H, W, C).astype(out_ref.dtype)


@jax.jit
def basic_block(x_nchw, params):
    """params = (w1, b1, g1, bt1, a1, w2, b2, g2, bt2, a2); w* in (3,3,Cin,Cout)."""
    w1, b1, g1, bt1, a1, w2, b2, g2, bt2, a2 = params
    N, C, H, W = x_nchw.shape
    x = jnp.transpose(x_nchw, (0, 2, 3, 1)).astype(jnp.float32)   # NHWC, f32

    # (3,3,Cin,Cout) -> (9,Cin,Cout), bf16 for the MXU (f32 accumulation).
    w1m = w1.reshape(9, C, C).astype(jnp.bfloat16)
    w2m = w2.reshape(9, C, C).astype(jnp.bfloat16)
    row = lambda v: v.reshape(1, C).astype(jnp.float32)
    # nn.PReLU() has a single shared parameter; broadcast to a lane row.
    arow = lambda a: jnp.broadcast_to(
        jnp.asarray(a, jnp.float32).reshape(1, 1), (1, C))

    def full(shape):
        return pl.BlockSpec(shape, lambda i: (0,) * len(shape))

    out = pl.pallas_call(
        basic_block_kernel,
        out_shape=jax.ShapeDtypeStruct((N, H, W, C), jnp.float32),
        grid=(1,),
        in_specs=[
            full((N, H, W, C)),
            full((9, C, C)), full((1, C)), full((1, C)), full((1, C)), full((1, C)),
            full((9, C, C)), full((1, C)), full((1, C)), full((1, C)), full((1, C)),
        ],
        out_specs=full((N, H, W, C)),
        scratch_shapes=[
            pltpu.VMEM((N, H + 2, W, C), jnp.bfloat16),   # H-padded image (center taps)
            pltpu.VMEM((N, H + 2, W, C), jnp.bfloat16),   # left-shifted taps  x[w-1]
            pltpu.VMEM((N, H + 2, W, C), jnp.bfloat16),   # right-shifted taps x[w+1]
        ],
        input_output_aliases={0: 0},                       # NHWC in/out share HBM
        compiler_params=pltpu.CompilerParams(
            dimension_semantics=("arbitrary",),
            vmem_limit_bytes=32 * 1024 * 1024),
    )(x, w1m, row(b1), row(g1), row(bt1), arow(a1),
      w2m, row(b2), row(g2), row(bt2), arow(a2))

    return jnp.transpose(out, (0, 3, 1, 2))  # back to NCHW


def reference(x_nchw, params):
    """Pure-JAX f32 reference (same NHWC math, no Pallas)."""
    w1, b1, g1, bt1, a1, w2, b2, g2, bt2, a2 = params

    def conv(x, w, b):
        N, H, W, C = x.shape
        xp = jnp.pad(x, ((0, 0), (1, 1), (1, 1), (0, 0)))
        acc = jnp.zeros_like(x)
        for dy in range(3):
            for dx in range(3):
                acc = acc + jnp.einsum('nhwc,cd->nhwd',
                                       xp[:, dy:dy + H, dx:dx + W, :], w[dy, dx])
        return acc + b

    def bn(x, g, bt):
        mu = jnp.mean(x, axis=(0, 1, 2), keepdims=True)
        var = jnp.mean((x - mu) ** 2, axis=(0, 1, 2), keepdims=True)
        return (x - mu) * jax.lax.rsqrt(var + EPS) * g + bt

    def prelu(x, a):
        return jnp.where(x >= 0, x, a * x)

    x = jnp.transpose(x_nchw, (0, 2, 3, 1)).astype(jnp.float32)
    y = prelu(bn(conv(x, w1, b1), g1, bt1), a1)
    y = bn(conv(y, w2, b2), g2, bt2) + x
    y = prelu(y, a2)
    return jnp.transpose(y, (0, 3, 1, 2))


if __name__ == "__main__":
    N, C, H, W = 2, 128, 8, 8  # module default channels=128
    key = jax.random.PRNGKey(0)
    ks = jax.random.split(key, 8)

    x = jax.random.normal(ks[0], (N, C, H, W), jnp.float32)

    fan_in = 9 * C
    std = (2.0 / fan_in) ** 0.5
    # conv weights stored as (ky, kx, Cin, Cout) == torch weight.transpose(2,3,1,0)
    w1 = jax.random.normal(ks[1], (3, 3, C, C), jnp.float32) * std
    b1 = jax.random.normal(ks[2], (C,), jnp.float32) * 0.05
    w2 = jax.random.normal(ks[3], (3, 3, C, C), jnp.float32) * std
    b2 = jax.random.normal(ks[4], (C,), jnp.float32) * 0.05
    # synthetic BN affine params; PReLU alpha = torch default 0.25
    g1 = 1.0 + 0.1 * jax.random.normal(ks[5], (C,), jnp.float32)
    bt1 = 0.1 * jax.random.normal(ks[6], (C,), jnp.float32)
    g2 = 1.0 + 0.1 * jax.random.normal(ks[7], (C,), jnp.float32)
    bt2 = jnp.zeros((C,), jnp.float32)
    a1 = jnp.array(0.25, jnp.float32)
    a2 = jnp.array(0.25, jnp.float32)

    params = (w1, b1, g1, bt1, a1, w2, b2, g2, bt2, a2)

    out = jax.block_until_ready(basic_block(x, params))
    ref = jax.block_until_ready(reference(x, params))

    # bf16 conv operands vs f32 reference -> slightly looser tolerance.
    np.testing.assert_allclose(np.asarray(out), np.asarray(ref),
                               rtol=3e-2, atol=3e-2)

    print("KERNEL_OK")
</pallas_src>

<mosaic_0001>
module attributes {stable_mosaic.version = 11 : i64} {
  func.func @basic_block_kernel(%arg0: i32, %arg1: memref<2x8x8x128xf32, #tpu.memory_space<vmem>>, %arg2: memref<9x128x128xbf16, #tpu.memory_space<vmem>>, %arg3: memref<1x128xf32, #tpu.memory_space<vmem>>, %arg4: memref<1x128xf32, #tpu.memory_space<vmem>>, %arg5: memref<1x128xf32, #tpu.memory_space<vmem>>, %arg6: memref<1x128xf32, #tpu.memory_space<vmem>>, %arg7: memref<9x128x128xbf16, #tpu.memory_space<vmem>>, %arg8: memref<1x128xf32, #tpu.memory_space<vmem>>, %arg9: memref<1x128xf32, #tpu.memory_space<vmem>>, %arg10: memref<1x128xf32, #tpu.memory_space<vmem>>, %arg11: memref<1x128xf32, #tpu.memory_space<vmem>>, %arg12: memref<2x8x8x128xf32, #tpu.memory_space<vmem>>, %arg13: memref<2x10x8x128xbf16, #tpu.memory_space<vmem>>, %arg14: memref<2x10x8x128xbf16, #tpu.memory_space<vmem>>, %arg15: memref<2x10x8x128xbf16, #tpu.memory_space<vmem>>) attributes {dimension_semantics = [#tpu.dimension_semantics<arbitrary>], iteration_bounds = array<i64: 1>, scalar_prefetch = 0 : i64, scratch_operands = 3 : i64, tpu.core_type = #tpu.core_type<tc>, window_params = [{pipeline_mode = #tpu.pipeline_mode<synchronous>, transform_indices = @transform_0, window_bounds = array<i64: 2, 8, 8, 128>}, {pipeline_mode = #tpu.pipeline_mode<synchronous>, transform_indices = @transform_1, window_bounds = array<i64: 9, 128, 128>}, {pipeline_mode = #tpu.pipeline_mode<synchronous>, transform_indices = @transform_2, window_bounds = array<i64: 1, 128>}, {pipeline_mode = #tpu.pipeline_mode<synchronous>, transform_indices = @transform_3, window_bounds = array<i64: 1, 128>}, {pipeline_mode = #tpu.pipeline_mode<synchronous>, transform_indices = @transform_4, window_bounds = array<i64: 1, 128>}, {pipeline_mode = #tpu.pipeline_mode<synchronous>, transform_indices = @transform_5, window_bounds = array<i64: 1, 128>}, {pipeline_mode = #tpu.pipeline_mode<synchronous>, transform_indices = @transform_6, window_bounds = array<i64: 9, 128, 128>}, {pipeline_mode = #tpu.pipeline_mode<synchronous>, transform_indices = @transform_7, window_bounds = array<i64: 1, 128>}, {pipeline_mode = #tpu.pipeline_mode<synchronous>, transform_indices = @transform_8, window_bounds = array<i64: 1, 128>}, {pipeline_mode = #tpu.pipeline_mode<synchronous>, transform_indices = @transform_9, window_bounds = array<i64: 1, 128>}, {pipeline_mode = #tpu.pipeline_mode<synchronous>, transform_indices = @transform_10, window_bounds = array<i64: 1, 128>}, {pipeline_mode = #tpu.pipeline_mode<synchronous>, transform_indices = @transform_11, window_bounds = array<i64: 2, 8, 8, 128>}]} {
    %cst = arith.constant 0.000000e+00 : bf16
    %0 = vector.broadcast %cst : bf16 to vector<2x1x8x128xbf16>
    %c0 = arith.constant 0 : index
    %c0_0 = arith.constant 0 : index
    %c0_1 = arith.constant 0 : index
    %c0_2 = arith.constant 0 : index
    %1 = vector.load %arg13[%c0, %c0_0, %c0_1, %c0_2] : memref<2x10x8x128xbf16, #tpu.memory_space<vmem>>, vector<2x1x8x128xbf16>
    tpu.vector_store %arg13[%c0, %c0_0, %c0_1, %c0_2], %0 {strides = array<i32>} : memref<2x10x8x128xbf16, #tpu.memory_space<vmem>>, vector<2x1x8x128xbf16>,
    %c0_3 = arith.constant 0 : index
    %c9 = arith.constant 9 : index
    %c0_4 = arith.constant 0 : index
    %c0_5 = arith.constant 0 : index
    %2 = vector.load %arg13[%c0_3, %c9, %c0_4, %c0_5] : memref<2x10x8x128xbf16, #tpu.memory_space<vmem>>, vector<2x1x8x128xbf16>
    tpu.vector_store %arg13[%c0_3, %c9, %c0_4, %c0_5], %0 {strides = array<i32>} : memref<2x10x8x128xbf16, #tpu.memory_space<vmem>>, vector<2x1x8x128xbf16>,
    %c0_6 = arith.constant 0 : index
    %c0_7 = arith.constant 0 : index
    %c0_8 = arith.constant 0 : index
    %c0_9 = arith.constant 0 : index
    %3 = vector.load %arg1[%c0_6, %c0_7, %c0_8, %c0_9] : memref<2x8x8x128xf32, #tpu.memory_space<vmem>>, vector<2x8x8x128xf32>
    %4 = arith.truncf %3 : vector<2x8x8x128xf32> to vector<2x8x8x128xbf16>
    %c0_10 = arith.constant 0 : index
    %c1 = arith.constant 1 : index
    %c0_11 = arith.constant 0 : index
    %c0_12 = arith.constant 0 : index
    %5 = vector.load %arg13[%c0_10, %c1, %c0_11, %c0_12] : memref<2x10x8x128xbf16, #tpu.memory_space<vmem>>, vector<2x8x8x128xbf16>
    tpu.vector_store %arg13[%c0_10, %c1, %c0_11, %c0_12], %4 {strides = array<i32>} : memref<2x10x8x128xbf16, #tpu.memory_space<vmem>>, vector<2x8x8x128xbf16>,
    %c0_13 = arith.constant 0 : index
    %c0_14 = arith.constant 0 : index
    %6 = vector.load %arg3[%c0_13, %c0_14] : memref<1x128xf32, #tpu.memory_space<vmem>>, vector<1x128xf32>
    %7 = tpu.iota {dimensions = array<i32: 2>} : vector<1x1x8x128xi32>
    %c0_15 = arith.constant 0 : index
    %c0_16 = arith.constant 0 : index
    %c0_17 = arith.constant 0 : index
    %c0_18 = arith.constant 0 : index
    %8 = vector.load %arg13[%c0_15, %c0_16, %c0_17, %c0_18] : memref<2x10x8x128xbf16, #tpu.memory_space<vmem>>, vector<2x10x8x128xbf16>
    %9 = arith.extf %8 : vector<2x10x8x128xbf16> to vector<2x10x8x128xf32>
    %c0_i32 = arith.constant 0 : i32
    %10 = vector.broadcast %c0_i32 : i32 to vector<1x1x8x128xi32>
    %11 = arith.cmpi eq, %7, %10 : vector<1x1x8x128xi32>
    %c1_i32 = arith.constant 1 : i32
    %12 = tpu.dynamic_rotate %9 by %c1_i32 dim 2 : vector<2x10x8x128xf32>, i32 -> vector<2x10x8x128xf32>
    %cst_19 = arith.constant 0.000000e+00 : f32
    %13 = vector.shape_cast %11 : vector<1x1x8x128xi1> to vector<1x1x8x128xi1>
    %14 = vector.broadcast %13 : vector<1x1x8x128xi1> to vector<2x10x8x128xi1>
    %15 = vector.broadcast %cst_19 : f32 to vector<2x10x8x128xf32>
    %16 = arith.select %14, %15, %12 : vector<2x10x8x128xi1>, vector<2x10x8x128xf32>
    %c7_i32 = arith.constant 7 : i32
    %17 = vector.broadcast %c7_i32 : i32 to vector<1x1x8x128xi32>
    %18 = arith.cmpi eq, %7, %17 : vector<1x1x8x128xi32>
    %c7_i32_20 = arith.constant 7 : i32
    %19 = tpu.dynamic_rotate %9 by %c7_i32_20 dim 2 : vector<2x10x8x128xf32>, i32 -> vector<2x10x8x128xf32>
    %cst_21 = arith.constant 0.000000e+00 : f32
    %20 = vector.shape_cast %18 : vector<1x1x8x128xi1> to vector<1x1x8x128xi1>
    %21 = vector.broadcast %20 : vector<1x1x8x128xi1> to vector<2x10x8x128xi1>
    %22 = vector.broadcast %cst_21 : f32 to vector<2x10x8x128xf32>
    %23 = arith.select %21, %22, %19 : vector<2x10x8x128xi1>, vector<2x10x8x128xf32>
    %24 = arith.truncf %16 : vector<2x10x8x128xf32> to vector<2x10x8x128xbf16>
    %c0_22 = arith.constant 0 : index
    %c0_23 = arith.constant 0 : index
    %c0_24 = arith.constant 0 : index
    %c0_25 = arith.constant 0 : index
    %25 = vector.load %arg14[%c0_22, %c0_23, %c0_24, %c0_25] : memref<2x10x8x128xbf16, #tpu.memory_space<vmem>>, vector<2x10x8x128xbf16>
    tpu.vector_store %arg14[%c0_22, %c0_23, %c0_24, %c0_25], %24 {strides = array<i32>} : memref<2x10x8x128xbf16, #tpu.memory_space<vmem>>, vector<2x10x8x128xbf16>,
    %26 = arith.truncf %23 : vector<2x10x8x128xf32> to vector<2x10x8x128xbf16>
    %c0_26 = arith.constant 0 : index
    %c0_27 = arith.constant 0 : index
    %c0_28 = arith.constant 0 : index
    %c0_29 = arith.constant 0 : index
    %27 = vector.load %arg15[%c0_26, %c0_27, %c0_28, %c0_29] : memref<2x10x8x128xbf16, #tpu.memory_space<vmem>>, vector<2x10x8x128xbf16>
    tpu.vector_store %arg15[%c0_26, %c0_27, %c0_28, %c0_29], %26 {strides = array<i32>} : memref<2x10x8x128xbf16, #tpu.memory_space<vmem>>, vector<2x10x8x128xbf16>,
    %cst_30 = arith.constant 0.000000e+00 : f32
    %28 = vector.broadcast %cst_30 : f32 to vector<128x128xf32>
    %c0_31 = arith.constant 0 : index
    %c0_32 = arith.constant 0 : index
    %c0_33 = arith.constant 0 : index
    %c0_34 = arith.constant 0 : index
    %29 = vector.load %arg14[%c0_31, %c0_32, %c0_33, %c0_34] : memref<2x10x8x128xbf16, #tpu.memory_space<vmem>>, vector<2x8x8x128xbf16>
    %30 = vector.shape_cast %29 : vector<2x8x8x128xbf16> to vector<128x128xbf16>
    %c0_35 = arith.constant 0 : index
    %c0_36 = arith.constant 0 : index
    %c0_37 = arith.constant 0 : index
    %31 = vector.load %arg2[%c0_35, %c0_36, %c0_37] : memref<9x128x128xbf16, #tpu.memory_space<vmem>>, vector<1x128x128xbf16>
    %32 = vector.shape_cast %31 : vector<1x128x128xbf16> to vector<128x128xbf16>
    %cst_38 = arith.constant dense<0.000000e+00> : vector<128x128xf32>
    %33 = tpu.matmul %30, %32, %cst_38 {dimension_numbers = #tpu.dot_dimension_numbers<[1], [0], [0], [1], [0, 0, 1, 1], [], []>} : vector<128x128xbf16>, vector<128x128xbf16>, vector<128x128xf32> -> vector<128x128xf32>
    %34 = arith.addf %28, %33 : vector<128x128xf32>
    %c0_39 = arith.constant 0 : index
    %c0_40 = arith.constant 0 : index
    %c0_41 = arith.constant 0 : index
    %c0_42 = arith.constant 0 : index
    %35 = vector.load %arg13[%c0_39, %c0_40, %c0_41, %c0_42] : memref<2x10x8x128xbf16, #tpu.memory_space<vmem>>, vector<2x8x8x128xbf16>
    %36 = vector.shape_cast %35 : vector<2x8x8x128xbf16> to vector<128x128xbf16>
    %c1_43 = arith.constant 1 : index
    %c0_44 = arith.constant 0 : index
    %c0_45 = arith.constant 0 : index
    %37 = vector.load %arg2[%c1_43, %c0_44, %c0_45] : memref<9x128x128xbf16, #tpu.memory_space<vmem>>, vector<1x128x128xbf16>
    %38 = vector.shape_cast %37 : vector<1x128x128xbf16> to vector<128x128xbf16>
    %cst_46 = arith.constant dense<0.000000e+00> : vector<128x128xf32>
    %39 = tpu.matmul %36, %38, %cst_46 {dimension_numbers = #tpu.dot_dimension_numbers<[1], [0], [0], [1], [0, 0, 1, 1], [], []>} : vector<128x128xbf16>, vector<128x128xbf16>, vector<128x128xf32> -> vector<128x128xf32>
    %40 = arith.addf %34, %39 : vector<128x128xf32>
    %c0_47 = arith.constant 0 : index
    %c0_48 = arith.constant 0 : index
    %c0_49 = arith.constant 0 : index
    %c0_50 = arith.constant 0 : index
    %41 = vector.load %arg15[%c0_47, %c0_48, %c0_49, %c0_50] : memref<2x10x8x128xbf16, #tpu.memory_space<vmem>>, vector<2x8x8x128xbf16>
    %42 = vector.shape_cast %41 : vector<2x8x8x128xbf16> to vector<128x128xbf16>
    %c2 = arith.constant 2 : index
    %c0_51 = arith.constant 0 : index
    %c0_52 = arith.constant 0 : index
    %43 = vector.load %arg2[%c2, %c0_51, %c0_52] : memref<9x128x128xbf16, #tpu.memory_space<vmem>>, vector<1x128x128xbf16>
    %44 = vector.shape_cast %43 : vector<1x128x128xbf16> to vector<128x128xbf16>
    %cst_53 = arith.constant dense<0.000000e+00> : vector<128x128xf32>
    %45 = tpu.matmul %42, %44, %cst_53 {dimension_numbers = #tpu.dot_dimension_numbers<[1], [0], [0], [1], [0, 0, 1, 1], [], []>} : vector<128x128xbf16>, vector<128x128xbf16>, vector<128x128xf32> -> vector<128x128xf32>
    %46 = arith.addf %40, %45 : vector<128x128xf32>
    %c0_54 = arith.constant 0 : index
    %c1_55 = arith.constant 1 : index
    %c0_56 = arith.constant 0 : index
    %c0_57 = arith.constant 0 : index
    %47 = vector.load %arg14[%c0_54, %c1_55, %c0_56, %c0_57] : memref<2x10x8x128xbf16, #tpu.memory_space<vmem>>, vector<2x8x8x128xbf16>
    %48 = vector.shape_cast %47 : vector<2x8x8x128xbf16> to vector<128x128xbf16>
    %c3 = arith.constant 3 : index
    %c0_58 = arith.constant 0 : index
    %c0_59 = arith.constant 0 : index
    %49 = vector.load %arg2[%c3, %c0_58, %c0_59] : memref<9x128x128xbf16, #tpu.memory_space<vmem>>, vector<1x128x128xbf16>
    %50 = vector.shape_cast %49 : vector<1x128x128xbf16> to vector<128x128xbf16>
    %cst_60 = arith.constant dense<0.000000e+00> : vector<128x128xf32>
    %51 = tpu.matmul %48, %50, %cst_60 {dimension_numbers = #tpu.dot_dimension_numbers<[1], [0], [0], [1], [0, 0, 1, 1], [], []>} : vector<128x128xbf16>, vector<128x128xbf16>, vector<128x128xf32> -> vector<128x128xf32>
    %52 = arith.addf %46, %51 : vector<128x128xf32>
    %c0_61 = arith.constant 0 : index
    %c1_62 = arith.constant 1 : index
    %c0_63 = arith.constant 0 : index
    %c0_64 = arith.constant 0 : index
    %53 = vector.load %arg13[%c0_61, %c1_62, %c0_63, %c0_64] : memref<2x10x8x128xbf16, #tpu.memory_space<vmem>>, vector<2x8x8x128xbf16>
    %54 = vector.shape_cast %53 : vector<2x8x8x128xbf16> to vector<128x128xbf16>
    %c4 = arith.constant 4 : index
    %c0_65 = arith.constant 0 : index
    %c0_66 = arith.constant 0 : index
    %55 = vector.load %arg2[%c4, %c0_65, %c0_66] : memref<9x128x128xbf16, #tpu.memory_space<vmem>>, vector<1x128x128xbf16>
    %56 = vector.shape_cast %55 : vector<1x128x128xbf16> to vector<128x128xbf16>
    %cst_67 = arith.constant dense<0.000000e+00> : vector<128x128xf32>
    %57 = tpu.matmul %54, %56, %cst_67 {dimension_numbers = #tpu.dot_dimension_numbers<[1], [0], [0], [1], [0, 0, 1, 1], [], []>} : vector<128x128xbf16>, vector<128x128xbf16>, vector<128x128xf32> -> vector<128x128xf32>
    %58 = arith.addf %52, %57 : vector<128x128xf32>
    %c0_68 = arith.constant 0 : index
    %c1_69 = arith.constant 1 : index
    %c0_70 = arith.constant 0 : index
    %c0_71 = arith.constant 0 : index
    %59 = vector.load %arg15[%c0_68, %c1_69, %c0_70, %c0_71] : memref<2x10x8x128xbf16, #tpu.memory_space<vmem>>, vector<2x8x8x128xbf16>
    %60 = vector.shape_cast %59 : vector<2x8x8x128xbf16> to vector<128x128xbf16>
    %c5 = arith.constant 5 : index
    %c0_72 = arith.constant 0 : index
    %c0_73 = arith.constant 0 : index
    %61 = vector.load %arg2[%c5, %c0_72, %c0_73] : memref<9x128x128xbf16, #tpu.memory_space<vmem>>, vector<1x128x128xbf16>
    %62 = vector.shape_cast %61 : vector<1x128x128xbf16> to vector<128x128xbf16>
    %cst_74 = arith.constant dense<0.000000e+00> : vector<128x128xf32>
    %63 = tpu.matmul %60, %62, %cst_74 {dimension_numbers = #tpu.dot_dimension_numbers<[1], [0], [0], [1], [0, 0, 1, 1], [], []>} : vector<128x128xbf16>, vector<128x128xbf16>, vector<128x128xf32> -> vector<128x128xf32>
    %64 = arith.addf %58, %63 : vector<128x128xf32>
    %c0_75 = arith.constant 0 : index
    %c2_76 = arith.constant 2 : index
    %c0_77 = arith.constant 0 : index
    %c0_78 = arith.constant 0 : index
    %65 = vector.load %arg14[%c0_75, %c2_76, %c0_77, %c0_78] : memref<2x10x8x128xbf16, #tpu.memory_space<vmem>>, vector<2x8x8x128xbf16>
    %66 = vector.shape_cast %65 : vector<2x8x8x128xbf16> to vector<128x128xbf16>
    %c6 = arith.constant 6 : index
    %c0_79 = arith.constant 0 : index
    %c0_80 = arith.constant 0 : index
    %67 = vector.load %arg2[%c6, %c0_79, %c0_80] : memref<9x128x128xbf16, #tpu.memory_space<vmem>>, vector<1x128x128xbf16>
    %68 = vector.shape_cast %67 : vector<1x128x128xbf16> to vector<128x128xbf16>
    %cst_81 = arith.constant dense<0.000000e+00> : vector<128x128xf32>
    %69 = tpu.matmul %66, %68, %cst_81 {dimension_numbers = #tpu.dot_dimension_numbers<[1], [0], [0], [1], [0, 0, 1, 1], [], []>} : vector<128x128xbf16>, vector<128x128xbf16>, vector<128x128xf32> -> vector<128x128xf32>
    %70 = arith.addf %64, %69 : vector<128x128xf32>
    %c0_82 = arith.constant 0 : index
    %c2_83 = arith.constant 2 : index
    %c0_84 = arith.constant 0 : index
    %c0_85 = arith.constant 0 : index
    %71 = vector.load %arg13[%c0_82, %c2_83, %c0_84, %c0_85] : memref<2x10x8x128xbf16, #tpu.memory_space<vmem>>, vector<2x8x8x128xbf16>
    %72 = vector.shape_cast %71 : vector<2x8x8x128xbf16> to vector<128x128xbf16>
    %c7 = arith.constant 7 : index
    %c0_86 = arith.constant 0 : index
    %c0_87 = arith.constant 0 : index
    %73 = vector.load %arg2[%c7, %c0_86, %c0_87] : memref<9x128x128xbf16, #tpu.memory_space<vmem>>, vector<1x128x128xbf16>
    %74 = vector.shape_cast %73 : vector<1x128x128xbf16> to vector<128x128xbf16>
    %cst_88 = arith.constant dense<0.000000e+00> : vector<128x128xf32>
    %75 = tpu.matmul %72, %74, %cst_88 {dimension_numbers = #tpu.dot_dimension_numbers<[1], [0], [0], [1], [0, 0, 1, 1], [], []>} : vector<128x128xbf16>, vector<128x128xbf16>, vector<128x128xf32> -> vector<128x128xf32>
    %76 = arith.addf %70, %75 : vector<128x128xf32>
    %c0_89 = arith.constant 0 : index
    %c2_90 = arith.constant 2 : index
    %c0_91 = arith.constant 0 : index
    %c0_92 = arith.constant 0 : index
    %77 = vector.load %arg15[%c0_89, %c2_90, %c0_91, %c0_92] : memref<2x10x8x128xbf16, #tpu.memory_space<vmem>>, vector<2x8x8x128xbf16>
    %78 = vector.shape_cast %77 : vector<2x8x8x128xbf16> to vector<128x128xbf16>
    %c8 = arith.constant 8 : index
    %c0_93 = arith.constant 0 : index
    %c0_94 = arith.constant 0 : index
    %79 = vector.load %arg2[%c8, %c0_93, %c0_94] : memref<9x128x128xbf16, #tpu.memory_space<vmem>>, vector<1x128x128xbf16>
    %80 = vector.shape_cast %79 : vector<1x128x128xbf16> to vector<128x128xbf16>
    %cst_95 = arith.constant dense<0.000000e+00> : vector<128x128xf32>
    %81 = tpu.matmul %78, %80, %cst_95 {dimension_numbers = #tpu.dot_dimension_numbers<[1], [0], [0], [1], [0, 0, 1, 1], [], []>} : vector<128x128xbf16>, vector<128x128xbf16>, vector<128x128xf32> -> vector<128x128xf32>
    %82 = arith.addf %76, %81 : vector<128x128xf32>
    %83 = vector.broadcast %6 : vector<1x128xf32> to vector<128x128xf32>
    %84 = arith.addf %82, %83 : vector<128x128xf32>
    %c0_96 = arith.constant 0 : index
    %c0_97 = arith.constant 0 : index
    %85 = vector.load %arg4[%c0_96, %c0_97] : memref<1x128xf32, #tpu.memory_space<vmem>>, vector<1x128xf32>
    %c0_98 = arith.constant 0 : index
    %c0_99 = arith.constant 0 : index
    %86 = vector.load %arg5[%c0_98, %c0_99] : memref<1x128xf32, #tpu.memory_space<vmem>>, vector<1x128xf32>
    %cst_100 = arith.constant dense<0.000000e+00> : vector<128xf32>
    %87 = vector.multi_reduction <add>, %84, %cst_100 [0] : vector<128x128xf32> to vector<128xf32>
    %88 = vector.shape_cast %87 : vector<128xf32> to vector<1x128xf32>
    %cst_101 = arith.constant 1.280000e+02 : f32
    %89 = vector.broadcast %cst_101 : f32 to vector<1x128xf32>
    %90 = arith.divf %88, %89 : vector<1x128xf32>
    %91 = vector.broadcast %90 : vector<1x128xf32> to vector<128x128xf32>
    %92 = arith.subf %84, %91 : vector<128x128xf32>
    %93 = arith.mulf %92, %92 : vector<128x128xf32>
    %cst_102 = arith.constant dense<0.000000e+00> : vector<128xf32>
    %94 = vector.multi_reduction <add>, %93, %cst_102 [0] : vector<128x128xf32> to vector<128xf32>
    %95 = vector.shape_cast %94 : vector<128xf32> to vector<1x128xf32>
    %cst_103 = arith.constant 1.280000e+02 : f32
    %96 = vector.broadcast %cst_103 : f32 to vector<1x128xf32>
    %97 = arith.divf %95, %96 : vector<1x128xf32>
    %cst_104 = arith.constant 9.99999974E-6 : f32
    %98 = vector.broadcast %cst_104 : f32 to vector<1x128xf32>
    %99 = arith.addf %97, %98 : vector<1x128xf32>
    %100 = math.rsqrt %99 : vector<1x128xf32>
    %101 = vector.broadcast %100 : vector<1x128xf32> to vector<128x128xf32>
    %102 = arith.mulf %92, %101 : vector<128x128xf32>
    %103 = vector.broadcast %85 : vector<1x128xf32> to vector<128x128xf32>
    %104 = arith.mulf %102, %103 : vector<128x128xf32>
    %105 = vector.broadcast %86 : vector<1x128xf32> to vector<128x128xf32>
    %106 = arith.addf %104, %105 : vector<128x128xf32>
    %c0_105 = arith.constant 0 : index
    %c0_106 = arith.constant 0 : index
    %107 = vector.load %arg6[%c0_105, %c0_106] : memref<1x128xf32, #tpu.memory_space<vmem>>, vector<1x128xf32>
    %cst_107 = arith.constant 0.000000e+00 : f32
    %108 = vector.broadcast %cst_107 : f32 to vector<128x128xf32>
    %109 = arith.cmpf oge, %106, %108 : vector<128x128xf32>
    %110 = vector.broadcast %107 : vector<1x128xf32> to vector<128x128xf32>
    %111 = arith.mulf %110, %106 : vector<128x128xf32>
    %112 = arith.select %109, %106, %111 : vector<128x128xi1>, vector<128x128xf32>
    %113 = vector.shape_cast %112 : vector<128x128xf32> to vector<2x8x8x128xf32>
    %114 = arith.truncf %113 : vector<2x8x8x128xf32> to vector<2x8x8x128xbf16>
    %c0_108 = arith.constant 0 : index
    %c1_109 = arith.constant 1 : index
    %c0_110 = arith.constant 0 : index
    %c0_111 = arith.constant 0 : index
    %115 = vector.load %arg13[%c0_108, %c1_109, %c0_110, %c0_111] : memref<2x10x8x128xbf16, #tpu.memory_space<vmem>>, vector<2x8x8x128xbf16>
    tpu.vector_store %arg13[%c0_108, %c1_109, %c0_110, %c0_111], %114 {strides = array<i32>} : memref<2x10x8x128xbf16, #tpu.memory_space<vmem>>, vector<2x8x8x128xbf16>,
    %c0_112 = arith.constant 0 : index
    %c0_113 = arith.constant 0 : index
    %116 = vector.load %arg8[%c0_112, %c0_113] : memref<1x128xf32, #tpu.memory_space<vmem>>, vector<1x128xf32>
    %117 = tpu.iota {dimensions = array<i32: 2>} : vector<1x1x8x128xi32>
    %c0_114 = arith.constant 0 : index
    %c0_115 = arith.constant 0 : index
    %c0_116 = arith.constant 0 : index
    %c0_117 = arith.constant 0 : index
    %118 = vector.load %arg13[%c0_114, %c0_115, %c0_116, %c0_117] : memref<2x10x8x128xbf16, #tpu.memory_space<vmem>>, vector<2x10x8x128xbf16>
    %119 = arith.extf %118 : vector<2x10x8x128xbf16> to vector<2x10x8x128xf32>
    %c0_i32_118 = arith.constant 0 : i32
    %120 = vector.broadcast %c0_i32_118 : i32 to vector<1x1x8x128xi32>
    %121 = arith.cmpi eq, %117, %120 : vector<1x1x8x128xi32>
    %c1_i32_119 = arith.constant 1 : i32
    %122 = tpu.dynamic_rotate %119 by %c1_i32_119 dim 2 : vector<2x10x8x128xf32>, i32 -> vector<2x10x8x128xf32>
    %cst_120 = arith.constant 0.000000e+00 : f32
    %123 = vector.shape_cast %121 : vector<1x1x8x128xi1> to vector<1x1x8x128xi1>
    %124 = vector.broadcast %123 : vector<1x1x8x128xi1> to vector<2x10x8x128xi1>
    %125 = vector.broadcast %cst_120 : f32 to vector<2x10x8x128xf32>
    %126 = arith.select %124, %125, %122 : vector<2x10x8x128xi1>, vector<2x10x8x128xf32>
    %c7_i32_121 = arith.constant 7 : i32
    %127 = vector.broadcast %c7_i32_121 : i32 to vector<1x1x8x128xi32>
    %128 = arith.cmpi eq, %117, %127 : vector<1x1x8x128xi32>
    %c7_i32_122 = arith.constant 7 : i32
    %129 = tpu.dynamic_rotate %119 by %c7_i32_122 dim 2 : vector<2x10x8x128xf32>, i32 -> vector<2x10x8x128xf32>
    %cst_123 = arith.constant 0.000000e+00 : f32
    %130 = vector.shape_cast %128 : vector<1x1x8x128xi1> to vector<1x1x8x128xi1>
    %131 = vector.broadcast %130 : vector<1x1x8x128xi1> to vector<2x10x8x128xi1>
    %132 = vector.broadcast %cst_123 : f32 to vector<2x10x8x128xf32>
    %133 = arith.select %131, %132, %129 : vector<2x10x8x128xi1>, vector<2x10x8x128xf32>
    %134 = arith.truncf %126 : vector<2x10x8x128xf32> to vector<2x10x8x128xbf16>
    %c0_124 = arith.constant 0 : index
    %c0_125 = arith.constant 0 : index
    %c0_126 = arith.constant 0 : index
    %c0_127 = arith.constant 0 : index
    %135 = vector.load %arg14[%c0_124, %c0_125, %c0_126, %c0_127] : memref<2x10x8x128xbf16, #tpu.memory_space<vmem>>, vector<2x10x8x128xbf16>
    tpu.vector_store %arg14[%c0_124, %c0_125, %c0_126, %c0_127], %134 {strides = array<i32>} : memref<2x10x8x128xbf16, #tpu.memory_space<vmem>>, vector<2x10x8x128xbf16>,
    %136 = arith.truncf %133 : vector<2x10x8x128xf32> to vector<2x10x8x128xbf16>
    %c0_128 = arith.constant 0 : index
    %c0_129 = arith.constant 0 : index
    %c0_130 = arith.constant 0 : index
    %c0_131 = arith.constant 0 : index
    %137 = vector.load %arg15[%c0_128, %c0_129, %c0_130, %c0_131] : memref<2x10x8x128xbf16, #tpu.memory_space<vmem>>, vector<2x10x8x128xbf16>
    tpu.vector_store %arg15[%c0_128, %c0_129, %c0_130, %c0_131], %136 {strides = array<i32>} : memref<2x10x8x128xbf16, #tpu.memory_space<vmem>>, vector<2x10x8x128xbf16>,
    %cst_132 = arith.constant 0.000000e+00 : f32
    %138 = vector.broadcast %cst_132 : f32 to vector<128x128xf32>
    %c0_133 = arith.constant 0 : index
    %c0_134 = arith.constant 0 : index
    %c0_135 = arith.constant 0 : index
    %c0_136 = arith.constant 0 : index
    %139 = vector.load %arg14[%c0_133, %c0_134, %c0_135, %c0_136] : memref<2x10x8x128xbf16, #tpu.memory_space<vmem>>, vector<2x8x8x128xbf16>
    %140 = vector.shape_cast %139 : vector<2x8x8x128xbf16> to vector<128x128xbf16>
    %c0_137 = arith.constant 0 : index
    %c0_138 = arith.constant 0 : index
    %c0_139 = arith.constant 0 : index
    %141 = vector.load %arg7[%c0_137, %c0_138, %c0_139] : memref<9x128x128xbf16, #tpu.memory_space<vmem>>, vector<1x128x128xbf16>
    %142 = vector.shape_cast %141 : vector<1x128x128xbf16> to vector<128x128xbf16>
    %cst_140 = arith.constant dense<0.000000e+00> : vector<128x128xf32>
    %143 = tpu.matmul %140, %142, %cst_140 {dimension_numbers = #tpu.dot_dimension_numbers<[1], [0], [0], [1], [0, 0, 1, 1], [], []>} : vector<128x128xbf16>, vector<128x128xbf16>, vector<128x128xf32> -> vector<128x128xf32>
    %144 = arith.addf %138, %143 : vector<128x128xf32>
    %c0_141 = arith.constant 0 : index
    %c0_142 = arith.constant 0 : index
    %c0_143 = arith.constant 0 : index
    %c0_144 = arith.constant 0 : index
    %145 = vector.load %arg13[%c0_141, %c0_142, %c0_143, %c0_144] : memref<2x10x8x128xbf16, #tpu.memory_space<vmem>>, vector<2x8x8x128xbf16>
    %146 = vector.shape_cast %145 : vector<2x8x8x128xbf16> to vector<128x128xbf16>
    %c1_145 = arith.constant 1 : index
    %c0_146 = arith.constant 0 : index
    %c0_147 = arith.constant 0 : index
    %147 = vector.load %arg7[%c1_145, %c0_146, %c0_147] : memref<9x128x128xbf16, #tpu.memory_space<vmem>>, vector<1x128x128xbf16>
    %148 = vector.shape_cast %147 : vector<1x128x128xbf16> to vector<128x128xbf16>
    %cst_148 = arith.constant dense<0.000000e+00> : vector<128x128xf32>
    %149 = tpu.matmul %146, %148, %cst_148 {dimension_numbers = #tpu.dot_dimension_numbers<[1], [0], [0], [1], [0, 0, 1, 1], [], []>} : vector<128x128xbf16>, vector<128x128xbf16>, vector<128x128xf32> -> vector<128x128xf32>
    %150 = arith.addf %144, %149 : vector<128x128xf32>
    %c0_149 = arith.constant 0 : index
    %c0_150 = arith.constant 0 : index
    %c0_151 = arith.constant 0 : index
    %c0_152 = arith.constant 0 : index
    %151 = vector.load %arg15[%c0_149, %c0_150, %c0_151, %c0_152] : memref<2x10x8x128xbf16, #tpu.memory_space<vmem>>, vector<2x8x8x128xbf16>
    %152 = vector.shape_cast %151 : vector<2x8x8x128xbf16> to vector<128x128xbf16>
    %c2_153 = arith.constant 2 : index
    %c0_154 = arith.constant 0 : index
    %c0_155 = arith.constant 0 : index
    %153 = vector.load %arg7[%c2_153, %c0_154, %c0_155] : memref<9x128x128xbf16, #tpu.memory_space<vmem>>, vector<1x128x128xbf16>
    %154 = vector.shape_cast %153 : vector<1x128x128xbf16> to vector<128x128xbf16>
    %cst_156 = arith.constant dense<0.000000e+00> : vector<128x128xf32>
    %155 = tpu.matmul %152, %154, %cst_156 {dimension_numbers = #tpu.dot_dimension_numbers<[1], [0], [0], [1], [0, 0, 1, 1], [], []>} : vector<128x128xbf16>, vector<128x128xbf16>, vector<128x128xf32> -> vector<128x128xf32>
    %156 = arith.addf %150, %155 : vector<128x128xf32>
    %c0_157 = arith.constant 0 : index
    %c1_158 = arith.constant 1 : index
    %c0_159 = arith.constant 0 : index
    %c0_160 = arith.constant 0 : index
    %157 = vector.load %arg14[%c0_157, %c1_158, %c0_159, %c0_160] : memref<2x10x8x128xbf16, #tpu.memory_space<vmem>>, vector<2x8x8x128xbf16>
    %158 = vector.shape_cast %157 : vector<2x8x8x128xbf16> to vector<128x128xbf16>
    %c3_161 = arith.constant 3 : index
    %c0_162 = arith.constant 0 : index
    %c0_163 = arith.constant 0 : index
    %159 = vector.load %arg7[%c3_161, %c0_162, %c0_163] : memref<9x128x128xbf16, #tpu.memory_space<vmem>>, vector<1x128x128xbf16>
    %160 = vector.shape_cast %159 : vector<1x128x128xbf16> to vector<128x128xbf16>
    %cst_164 = arith.constant dense<0.000000e+00> : vector<128x128xf32>
    %161 = tpu.matmul %158, %160, %cst_164 {dimension_numbers = #tpu.dot_dimension_numbers<[1], [0], [0], [1], [0, 0, 1, 1], [], []>} : vector<128x128xbf16>, vector<128x128xbf16>, vector<128x128xf32> -> vector<128x128xf32>
    %162 = arith.addf %156, %161 : vector<128x128xf32>
    %c0_165 = arith.constant 0 : index
    %c1_166 = arith.constant 1 : index
    %c0_167 = arith.constant 0 : index
    %c0_168 = arith.constant 0 : index
    %163 = vector.load %arg13[%c0_165, %c1_166, %c0_167, %c0_168] : memref<2x10x8x128xbf16, #tpu.memory_space<vmem>>, vector<2x8x8x128xbf16>
    %164 = vector.shape_cast %163 : vector<2x8x8x128xbf16> to vector<128x128xbf16>
    %c4_169 = arith.constant 4 : index
    %c0_170 = arith.constant 0 : index
    %c0_171 = arith.constant 0 : index
    %165 = vector.load %arg7[%c4_169, %c0_170, %c0_171] : memref<9x128x128xbf16, #tpu.memory_space<vmem>>, vector<1x128x128xbf16>
    %166 = vector.shape_cast %165 : vector<1x128x128xbf16> to vector<128x128xbf16>
    %cst_172 = arith.constant dense<0.000000e+00> : vector<128x128xf32>
    %167 = tpu.matmul %164, %166, %cst_172 {dimension_numbers = #tpu.dot_dimension_numbers<[1], [0], [0], [1], [0, 0, 1, 1], [], []>} : vector<128x128xbf16>, vector<128x128xbf16>, vector<128x128xf32> -> vector<128x128xf32>
    %168 = arith.addf %162, %167 : vector<128x128xf32>
    %c0_173 = arith.constant 0 : index
    %c1_174 = arith.constant 1 : index
    %c0_175 = arith.constant 0 : index
    %c0_176 = arith.constant 0 : index
    %169 = vector.load %arg15[%c0_173, %c1_174, %c0_175, %c0_176] : memref<2x10x8x128xbf16, #tpu.memory_space<vmem>>, vector<2x8x8x128xbf16>
    %170 = vector.shape_cast %169 : vector<2x8x8x128xbf16> to vector<128x128xbf16>
    %c5_177 = arith.constant 5 : index
    %c0_178 = arith.constant 0 : index
    %c0_179 = arith.constant 0 : index
    %171 = vector.load %arg7[%c5_177, %c0_178, %c0_179] : memref<9x128x128xbf16, #tpu.memory_space<vmem>>, vector<1x128x128xbf16>
    %172 = vector.shape_cast %171 : vector<1x128x128xbf16> to vector<128x128xbf16>
    %cst_180 = arith.constant dense<0.000000e+00> : vector<128x128xf32>
    %173 = tpu.matmul %170, %172, %cst_180 {dimension_numbers = #tpu.dot_dimension_numbers<[1], [0], [0], [1], [0, 0, 1, 1], [], []>} : vector<128x128xbf16>, vector<128x128xbf16>, vector<128x128xf32> -> vector<128x128xf32>
    %174 = arith.addf %168, %173 : vector<128x128xf32>
    %c0_181 = arith.constant 0 : index
    %c2_182 = arith.constant 2 : index
    %c0_183 = arith.constant 0 : index
    %c0_184 = arith.constant 0 : index
    %175 = vector.load %arg14[%c0_181, %c2_182, %c0_183, %c0_184] : memref<2x10x8x128xbf16, #tpu.memory_space<vmem>>, vector<2x8x8x128xbf16>
    %176 = vector.shape_cast %175 : vector<2x8x8x128xbf16> to vector<128x128xbf16>
    %c6_185 = arith.constant 6 : index
    %c0_186 = arith.constant 0 : index
    %c0_187 = arith.constant 0 : index
    %177 = vector.load %arg7[%c6_185, %c0_186, %c0_187] : memref<9x128x128xbf16, #tpu.memory_space<vmem>>, vector<1x128x128xbf16>
    %178 = vector.shape_cast %177 : vector<1x128x128xbf16> to vector<128x128xbf16>
    %cst_188 = arith.constant dense<0.000000e+00> : vector<128x128xf32>
    %179 = tpu.matmul %176, %178, %cst_188 {dimension_numbers = #tpu.dot_dimension_numbers<[1], [0], [0], [1], [0, 0, 1, 1], [], []>} : vector<128x128xbf16>, vector<128x128xbf16>, vector<128x128xf32> -> vector<128x128xf32>
    %180 = arith.addf %174, %179 : vector<128x128xf32>
    %c0_189 = arith.constant 0 : index
    %c2_190 = arith.constant 2 : index
    %c0_191 = arith.constant 0 : index
    %c0_192 = arith.constant 0 : index
    %181 = vector.load %arg13[%c0_189, %c2_190, %c0_191, %c0_192] : memref<2x10x8x128xbf16, #tpu.memory_space<vmem>>, vector<2x8x8x128xbf16>
    %182 = vector.shape_cast %181 : vector<2x8x8x128xbf16> to vector<128x128xbf16>
    %c7_193 = arith.constant 7 : index
    %c0_194 = arith.constant 0 : index
    %c0_195 = arith.constant 0 : index
    %183 = vector.load %arg7[%c7_193, %c0_194, %c0_195] : memref<9x128x128xbf16, #tpu.memory_space<vmem>>, vector<1x128x128xbf16>
    %184 = vector.shape_cast %183 : vector<1x128x128xbf16> to vector<128x128xbf16>
    %cst_196 = arith.constant dense<0.000000e+00> : vector<128x128xf32>
    %185 = tpu.matmul %182, %184, %cst_196 {dimension_numbers = #tpu.dot_dimension_numbers<[1], [0], [0], [1], [0, 0, 1, 1], [], []>} : vector<128x128xbf16>, vector<128x128xbf16>, vector<128x128xf32> -> vector<128x128xf32>
    %186 = arith.addf %180, %185 : vector<128x128xf32>
    %c0_197 = arith.constant 0 : index
    %c2_198 = arith.constant 2 : index
    %c0_199 = arith.constant 0 : index
    %c0_200 = arith.constant 0 : index
    %187 = vector.load %arg15[%c0_197, %c2_198, %c0_199, %c0_200] : memref<2x10x8x128xbf16, #tpu.memory_space<vmem>>, vector<2x8x8x128xbf16>
    %188 = vector.shape_cast %187 : vector<2x8x8x128xbf16> to vector<128x128xbf16>
    %c8_201 = arith.constant 8 : index
    %c0_202 = arith.constant 0 : index
    %c0_203 = arith.constant 0 : index
    %189 = vector.load %arg7[%c8_201, %c0_202, %c0_203] : memref<9x128x128xbf16, #tpu.memory_space<vmem>>, vector<1x128x128xbf16>
    %190 = vector.shape_cast %189 : vector<1x128x128xbf16> to vector<128x128xbf16>
    %cst_204 = arith.constant dense<0.000000e+00> : vector<128x128xf32>
    %191 = tpu.matmul %188, %190, %cst_204 {dimension_numbers = #tpu.dot_dimension_numbers<[1], [0], [0], [1], [0, 0, 1, 1], [], []>} : vector<128x128xbf16>, vector<128x128xbf16>, vector<128x128xf32> -> vector<128x128xf32>
    %192 = arith.addf %186, %191 : vector<128x128xf32>
    %193 = vector.broadcast %116 : vector<1x128xf32> to vector<128x128xf32>
    %194 = arith.addf %192, %193 : vector<128x128xf32>
    %c0_205 = arith.constant 0 : index
    %c0_206 = arith.constant 0 : index
    %195 = vector.load %arg9[%c0_205, %c0_206] : memref<1x128xf32, #tpu.memory_space<vmem>>, vector<1x128xf32>
    %c0_207 = arith.constant 0 : index
    %c0_208 = arith.constant 0 : index
    %196 = vector.load %arg10[%c0_207, %c0_208] : memref<1x128xf32, #tpu.memory_space<vmem>>, vector<1x128xf32>
    %cst_209 = arith.constant dense<0.000000e+00> : vector<128xf32>
    %197 = vector.multi_reduction <add>, %194, %cst_209 [0] : vector<128x128xf32> to vector<128xf32>
    %198 = vector.shape_cast %197 : vector<128xf32> to vector<1x128xf32>
    %cst_210 = arith.constant 1.280000e+02 : f32
    %199 = vector.broadcast %cst_210 : f32 to vector<1x128xf32>
    %200 = arith.divf %198, %199 : vector<1x128xf32>
    %201 = vector.broadcast %200 : vector<1x128xf32> to vector<128x128xf32>
    %202 = arith.subf %194, %201 : vector<128x128xf32>
    %203 = arith.mulf %202, %202 : vector<128x128xf32>
    %cst_211 = arith.constant dense<0.000000e+00> : vector<128xf32>
    %204 = vector.multi_reduction <add>, %203, %cst_211 [0] : vector<128x128xf32> to vector<128xf32>
    %205 = vector.shape_cast %204 : vector<128xf32> to vector<1x128xf32>
    %cst_212 = arith.constant 1.280000e+02 : f32
    %206 = vector.broadcast %cst_212 : f32 to vector<1x128xf32>
    %207 = arith.divf %205, %206 : vector<1x128xf32>
    %cst_213 = arith.constant 9.99999974E-6 : f32
    %208 = vector.broadcast %cst_213 : f32 to vector<1x128xf32>
    %209 = arith.addf %207, %208 : vector<1x128xf32>
    %210 = math.rsqrt %209 : vector<1x128xf32>
    %211 = vector.broadcast %210 : vector<1x128xf32> to vector<128x128xf32>
    %212 = arith.mulf %202, %211 : vector<128x128xf32>
    %213 = vector.broadcast %195 : vector<1x128xf32> to vector<128x128xf32>
    %214 = arith.mulf %212, %213 : vector<128x128xf32>
    %215 = vector.broadcast %196 : vector<1x128xf32> to vector<128x128xf32>
    %216 = arith.addf %214, %215 : vector<128x128xf32>
    %c0_214 = arith.constant 0 : index
    %c0_215 = arith.constant 0 : index
    %c0_216 = arith.constant 0 : index
    %c0_217 = arith.constant 0 : index
    %217 = vector.load %arg1[%c0_214, %c0_215, %c0_216, %c0_217] : memref<2x8x8x128xf32, #tpu.memory_space<vmem>>, vector<2x8x8x128xf32>
    %218 = vector.shape_cast %217 : vector<2x8x8x128xf32> to vector<128x128xf32>
    %219 = arith.addf %216, %218 : vector<128x128xf32>
    %c0_218 = arith.constant 0 : index
    %c0_219 = arith.constant 0 : index
    %220 = vector.load %arg11[%c0_218, %c0_219] : memref<1x128xf32, #tpu.memory_space<vmem>>, vector<1x128xf32>
    %cst_220 = arith.constant 0.000000e+00 : f32
    %221 = vector.broadcast %cst_220 : f32 to vector<128x128xf32>
    %222 = arith.cmpf oge, %219, %221 : vector<128x128xf32>
    %223 = vector.broadcast %220 : vector<1x128xf32> to vector<128x128xf32>
    %224 = arith.mulf %223, %219 : vector<128x128xf32>
    %225 = arith.select %222, %219, %224 : vector<128x128xi1>, vector<128x128xf32>
    %226 = vector.shape_cast %225 : vector<128x128xf32> to vector<2x8x8x128xf32>
    %c0_221 = arith.constant 0 : index
    %c0_222 = arith.constant 0 : index
    %c0_223 = arith.constant 0 : index
    %c0_224 = arith.constant 0 : index
    %227 = vector.load %arg12[%c0_221, %c0_222, %c0_223, %c0_224] : memref<2x8x8x128xf32, #tpu.memory_space<vmem>>, vector<2x8x8x128xf32>
    tpu.vector_store %arg12[%c0_221, %c0_222, %c0_223, %c0_224], %226 {strides = array<i32>} : memref<2x8x8x128xf32, #tpu.memory_space<vmem>>, vector<2x8x8x128xf32>,
    return
  }
  func.func @transform_0(%arg0: i32) -> (i32, i32, i32, i32) {
    %c0_i32 = arith.constant 0 : i32
    %c0_i32_0 = arith.constant 0 : i32
    %c0_i32_1 = arith.constant 0 : i32
    %c0_i32_2 = arith.constant 0 : i32
    %c0_i32_3 = arith.constant 0 : i32
    return %c0_i32, %c0_i32_0, %c0_i32_1, %c0_i32_2 : i32, i32, i32, i32
  }
  func.func @transform_1(%arg0: i32) -> (i32, i32, i32) {
    %c0_i32 = arith.constant 0 : i32
    %c0_i32_0 = arith.constant 0 : i32
    %c0_i32_1 = arith.constant 0 : i32
    %c0_i32_2 = arith.constant 0 : i32
    return %c0_i32, %c0_i32_0, %c0_i32_1 : i32, i32, i32
  }
  func.func @transform_2(%arg0: i32) -> (i32, i32) {
    %c0_i32 = arith.constant 0 : i32
    %c0_i32_0 = arith.constant 0 : i32
    %c0_i32_1 = arith.constant 0 : i32
    return %c0_i32, %c0_i32_0 : i32, i32
  }
  func.func @transform_3(%arg0: i32) -> (i32, i32) {
    %c0_i32 = arith.constant 0 : i32
    %c0_i32_0 = arith.constant 0 : i32
    %c0_i32_1 = arith.constant 0 : i32
    return %c0_i32, %c0_i32_0 : i32, i32
  }
  func.func @transform_4(%arg0: i32) -> (i32, i32) {
    %c0_i32 = arith.constant 0 : i32
    %c0_i32_0 = arith.constant 0 : i32
    %c0_i32_1 = arith.constant 0 : i32
    return %c0_i32, %c0_i32_0 : i32, i32
  }
  func.func @transform_5(%arg0: i32) -> (i32, i32) {
    %c0_i32 = arith.constant 0 : i32
    %c0_i32_0 = arith.constant 0 : i32
    %c0_i32_1 = arith.constant 0 : i32
    return %c0_i32, %c0_i32_0 : i32, i32
  }
  func.func @transform_6(%arg0: i32) -> (i32, i32, i32) {
    %c0_i32 = arith.constant 0 : i32
    %c0_i32_0 = arith.constant 0 : i32
    %c0_i32_1 = arith.constant 0 : i32
    %c0_i32_2 = arith.constant 0 : i32
    return %c0_i32, %c0_i32_0, %c0_i32_1 : i32, i32, i32
  }
  func.func @transform_7(%arg0: i32) -> (i32, i32) {
    %c0_i32 = arith.constant 0 : i32
    %c0_i32_0 = arith.constant 0 : i32
    %c0_i32_1 = arith.constant 0 : i32
    return %c0_i32, %c0_i32_0 : i32, i32
  }
  func.func @transform_8(%arg0: i32) -> (i32, i32) {
    %c0_i32 = arith.constant 0 : i32
    %c0_i32_0 = arith.constant 0 : i32
    %c0_i32_1 = arith.constant 0 : i32
    return %c0_i32, %c0_i32_0 : i32, i32
  }
  func.func @transform_9(%arg0: i32) -> (i32, i32) {
    %c0_i32 = arith.constant 0 : i32
    %c0_i32_0 = arith.constant 0 : i32
    %c0_i32_1 = arith.constant 0 : i32
    return %c0_i32, %c0_i32_0 : i32, i32
  }
  func.func @transform_10(%arg0: i32) -> (i32, i32) {
    %c0_i32 = arith.constant 0 : i32
    %c0_i32_0 = arith.constant 0 : i32
    %c0_i32_1 = arith.constant 0 : i32
    return %c0_i32, %c0_i32_0 : i32, i32
  }
  func.func @transform_11(%arg0: i32) -> (i32, i32, i32, i32) {
    %c0_i32 = arith.constant 0 : i32
    %c0_i32_0 = arith.constant 0 : i32
    %c0_i32_1 = arith.constant 0 : i32
    %c0_i32_2 = arith.constant 0 : i32
    %c0_i32_3 = arith.constant 0 : i32
    return %c0_i32, %c0_i32_0, %c0_i32_1, %c0_i32_2 : i32, i32, i32, i32
  }
}

</mosaic_0001>

<bundles_post_ra>
// kernel: basic_block.1
= control target key start
LH: loop header
LB: loop body
LE: loop exit
PB: predicated region body
PF: predicated region fallthrough
CT: control target
= control target key end

     0   :  { %v7432_v1 = vmov 0   ;;  %v94_v11 = vlaneseq  ;;  %s8961_s1 = inlined_call_operand.vmem [shape: bf16[9,128,128], index: 1, kind: input, shape index: {}]   ;;  %s8962_s0 = inlined_call_operand.vmem [shape: f32[2,8,8,128], index: 0, kind: input, shape index: {}, may-alias: {0,11}]   ;;  %s8963_s6 = inlined_call_operand.vmem [shape: bf16[9,128,128], index: 6, kind: input, shape index: {}]   ;;  %s8964_s2 = inlined_call_operand.vmem [shape: f32[1,128], index: 2, kind: input, shape index: {}]   ;;  %s8965_s3 = inlined_call_operand.vmem [shape: f32[1,128], index: 3, kind: input, shape index: {}]   ;;  %s8966_s4 = inlined_call_operand.vmem [shape: f32[1,128], index: 4, kind: input, shape index: {}]   ;;  %s8967_s5 = inlined_call_operand.vmem [shape: f32[1,128], index: 5, kind: input, shape index: {}]   ;;  %s8968_s7 = inlined_call_operand.vmem [shape: f32[1,128], index: 7, kind: input, shape index: {}]   ;;  %s8969_s8 = inlined_call_operand.vmem [shape: f32[1,128], index: 8, kind: input, shape index: {}]   ;;  %s8970_s9 = inlined_call_operand.vmem [shape: f32[1,128], index: 9, kind: input, shape index: {}]   ;;  %s8971_s10 = inlined_call_operand.vmem [shape: f32[1,128], index: 10, kind: input, shape index: {}]   ;;  %s8972_s11 = inlined_call_operand.vmem [shape: f32[2,8,8,128], index: 11, kind: output, shape index: {}, may-alias: {0,11}]  }
   0x1   :  { %v7140_v0 = vld [vmem:[%s8961_s1 + $0x78] sm:$0xff]   ;;  %39 = vst [vmem:[#allocation2] sm:$0xf] %v7432_v1  ;;  %42 = vst [vmem:[#allocation2 + $0x24] sm:$0xf] %v7432_v1  ;;  %v7142_v3 = vld [vmem:[%s8961_s1 + $0x70] sm:$0xff]  }
   0x2   :  { %43 = vst [vmem:[#allocation2 + $0x4c] sm:$0xf] %v7432_v1  ;;  %40 = vst [vmem:[#allocation2 + $0x28] sm:$0xf] %v7432_v1  ;;  %v7141_v2 = vld [vmem:[%s8961_s1 + $0x38] sm:$0xff]   ;;  %6563 = vmatprep.subr.bf16.mxu0 %v7140_v0  ;;  %v7143_v4 = vld [vmem:[%s8961_s1 + $0x30] sm:$0xff]  }
   0x3   :  { %6595 = vmatprep.subr.bf16.mxu1 %v7141_v2  ;;  %6564 = vmatpush3.bf16.msra.mxu0 %v7140_v0  ;;  %v7144_v5 = vld [vmem:[%s8961_s1 + $0x68] sm:$0xff]   ;;  %v7146_v7 = vld [vmem:[%s8961_s1 + $0x60] sm:$0xff]   ;;  %v7148_v9 = vld [vmem:[%s8961_s1 + $0x58] sm:$0xff]   ;;  %v7535_v17 = vshrl.u32 %v94_v11, 7 }
   0x4   :  { %6596 = vmatpush3.bf16.msra.mxu1 %v7141_v2  ;;  %6565 = vmatprep.subr.bf16.mxu0 %v7142_v3  ;;  %v7145_v6 = vld [vmem:[%s8961_s1 + $0x28] sm:$0xff]   ;;  %v7147_v8 = vld [vmem:[%s8961_s1 + $0x20] sm:$0xff]   ;;  %v7149_v10 = vld [vmem:[%s8961_s1 + $0x18] sm:$0xff]  }
   0x5   :  { %6597 = vmatprep.subr.bf16.mxu1 %v7143_v4  ;;  %v7150_v12 = vld [vmem:[%s8961_s1 + $0x50] sm:$0xff]   ;;  %v44_v14 = vld [vmem:[%s8962_s0] sm:$0xff]  ;;  %v45_v15 = vld [vmem:[%s8962_s0 + $0x8] sm:$0xff]  ;;  %8977 = vst [vmem:[#allocation5_spill] sm:$0xff] %v7535_v17  ;;  %vm8976_vm0 = vcmp.eq.s32.totalorder %v7535_v17, 0  ;;  %vm8975_vm1 = vcmp.eq.s32.totalorder %v7535_v17, 7 }
   0x6   :  { %v7151_v13 = vld [vmem:[%s8961_s1 + $0x10] sm:$0xff]   ;;  %v60_v16 = vpack.c.bf16 %v44_v14, %v44_v14  ;;  %v7152_v20 = vld [vmem:[%s8961_s1 + $0x48] sm:$0xff]   ;;  %v7550_v22 = vld [vmem:[%s8962_s0 + $0x18] sm:$0xff]  ;;  %v139_v24 = vrot.slane %v45_v15, 7  ;;  %v182_v26 = vrot.slane %v45_v15, 1 }
   0x7   :  { %6566 = vmatpush3.bf16.msra.mxu0 %v7142_v3  ;;  %v46_v18 = vld [vmem:[%s8962_s0 + $0x10] sm:$0xff]  ;;  %v7153_v21 = vld [vmem:[%s8961_s1 + $0x8] sm:$0xff]   ;;  %v7555_v23 = vld [vmem:[%s8962_s0 + $0x20] sm:$0xff]  ;;  %v141_v44 = vrot.slane %v7550_v22, 7 }
   0x8   :  { %6598 = vmatpush3.bf16.msra.mxu1 %v7143_v4  ;;  %6567 = vmatprep.subr.bf16.mxu0 %v7144_v5  ;;  %v5872_v19 = vpack.c.bf16 %v46_v18, %v45_v15  ;;  %77 = vst [vmem:[#allocation2 + $0x4] sm:$0xf] %v60_v16  ;;  %v140_v25 = vrot.slane %v46_v18, 7  ;;  %v183_v27 = vrot.slane %v46_v18, 1  ;;  %v7560_v28 = vld [vmem:[%s8962_s0 + $0x28] sm:$0xff]  ;;  %v7565_v29 = vld [vmem:[%s8962_s0 + $0x30] sm:$0xff]  ;;  %v5877_v31 = vpack.c.bf16 %v7555_v23, %v7550_v22 }
   0x9   :  { %6599 = vmatprep.subr.bf16.mxu1 %v7145_v6  ;;  %v7154_v30 = vld [vmem:[%s8961_s1 + $0x40] sm:$0xff]   ;;  %v5882_v32 = vpack.c.bf16 %v7565_v29, %v7560_v28  ;;  %v161_v33 = vsel %vm8976_vm0, 0.0, %v139_v24  ;;  %v204_v39 = vsel %vm8975_vm1, 0.0, %v182_v26  ;;  %v7160_v43 = vld [vmem:[%s8961_s1 + $0xb8] sm:$0xff]   ;;  %v142_v47 = vrot.slane %v7555_v23, 7  ;;  %v7162_v54 = vld [vmem:[%s8961_s1 + $0xb0] sm:$0xff]  }
   0xa   :  { %6209 = vst [vmem:[#allocation2 + $0x8] sm:$0xff] %v5872_v19   ;;  %v162_v34 = vsel %vm8976_vm0, 0.0, %v140_v25  ;;  %v7155_v35 = vld [vmem:[%s8961_s1] sm:$0xff]   ;;  %6210 = vst [vmem:[#allocation2 + $0x10] sm:$0xff] %v5877_v31   ;;  %v205_v40 = vsel %vm8975_vm1, 0.0, %v183_v27  ;;  %v7593_v46 = vld [vmem:[%s8961_s1 + $0xf8] sm:$0xff]  }
   0xb   :  { %6568 = vmatpush3.bf16.msra.mxu0 %v7144_v5  ;;  %v5947_v36 = vpack.c.bf16 %v162_v34, %v161_v33  ;;  %6211 = vst [vmem:[#allocation2 + $0x18] sm:$0xff] %v5882_v32   ;;  %v5997_v45 = vpack.c.bf16 %v205_v40, %v204_v39  ;;  %v143_v48 = vrot.slane %v7560_v28, 7  ;;  %v144_v49 = vrot.slane %v7565_v29, 7  ;;  %v52_v58 = vld [vmem:[%s8962_s0 + $0x40] sm:$0xff]  ;;  %v7619_v63 = vld [vmem:[%s8962_s0 + $0x48] sm:$0xff]  ;;  %v7624_v0 = vld [vmem:[%s8962_s0 + $0x50] sm:$0xff] }
   0xc   :  { %6600 = vmatpush3.bf16.msra.mxu1 %v7145_v6  ;;  %6569 = vmatprep.subr.bf16.mxu0 %v7146_v7  ;;  %v163_v53 = vsel %vm8976_vm0, 0.0, %v141_v44  ;;  %v164_v55 = vsel %vm8976_vm0, 0.0, %v142_v47  ;;  %v68_v3 = vpack.c.bf16 %v52_v58, %v52_v58  ;;  %v5887_v4 = vpack.c.bf16 %v7624_v0, %v7619_v63  ;;  %v7170_v15 = vld [vmem:[%s8961_s1 + $0xa0] sm:$0xff]   ;;  %v7648_v19 = vld [vmem:[%s8962_s0 + $0x58] sm:$0xff]  ;;  %v7658_v24 = vld [vmem:[%s8962_s0 + $0x68] sm:$0xff] }
   0xd   :  { %6601 = vmatprep.subr.bf16.mxu1 %v7147_v8  ;;  %6224 = vst [vmem:[#allocation3 + $0x8] sm:$0xff] %v5947_v36   ;;  %6233 = vst [vmem:[#allocation4 + $0x8] sm:$0xff] %v5997_v45   ;;  %v165_v56 = vsel %vm8976_vm0, 0.0, %v143_v48  ;;  %v166_v57 = vsel %vm8976_vm0, 0.0, %v144_v49  ;;  %v5952_v61 = vpack.c.bf16 %v164_v55, %v163_v53  ;;  %v149_v11 = vrot.slane %v7619_v63, 7  ;;  %v7663_v25 = vld [vmem:[%s8962_s0 + $0x70] sm:$0xff] }
   0xe   :  { %v5957_v62 = vpack.c.bf16 %v166_v57, %v165_v56  ;;  %85 = vst [vmem:[#allocation2 + $0x2c] sm:$0xf] %v68_v3  ;;  %6212 = vst [vmem:[#allocation2 + $0x30] sm:$0xff] %v5887_v4   ;;  %v184_v26 = vrot.slane %v7550_v22, 1  ;;  %v185_v27 = vrot.slane %v7555_v23, 1  ;;  %v5897_v32 = vpack.c.bf16 %v7663_v25, %v7658_v24  ;;  %v7184_v4 = vld [vmem:[%s8961_s1 + $0x88] sm:$0xff]  }
   0xf   :  { %6570 = vmatpush3.bf16.msra.mxu0 %v7146_v7  ;;  %v7156_v37 = vld [vmem:[#allocation2] sm:$0xff]   ;;  %6225 = vst [vmem:[#allocation3 + $0x10] sm:$0xff] %v5952_v61   ;;  %v171_v16 = vsel %vm8976_vm0, 0.0, %v149_v11  ;;  %v153_v44 = vrot.slane %v7658_v24, 7  ;;  %v154_v45 = vrot.slane %v7663_v25, 7  ;;  %v187_v47 = vrot.slane %v7565_v29, 1 }
  0x10   :  { %6602 = vmatpush3.bf16.msra.mxu1 %v7147_v8  ;;  %6571 = vmatprep.subr.bf16.mxu0 %v7148_v9  ;;  %v5900_v38 = vld [vmem:[#allocation2] sm:$0xff]   ;;  %6226 = vst [vmem:[#allocation3 + $0x18] sm:$0xff] %v5957_v62   ;;  %v206_v34 = vsel %vm8975_vm1, 0.0, %v184_v26  ;;  %6214 = vst [vmem:[#allocation2 + $0x40] sm:$0xff] %v5897_v32   ;;  %v207_v36 = vsel %vm8975_vm1, 0.0, %v185_v27  ;;  %v7185_v32 = vld [vmem:[%s8961_s1 + $0xc8] sm:$0xff]  }
  0x11   :  { %6603 = vmatprep.subr.bf16.mxu1 %v7149_v10  ;;  %v5901_v41 = vunpack.c.l.bf16 %v5900_v38  ;;  %v5902_v42 = vunpack.c.h.bf16 %v5900_v38  ;;  %6579 = vmatprep.mubr.bf16.mxu0 %v7156_v37  ;;  %v7158_v52 = vld [vmem:[#allocation2 + $0x8] sm:$0xff]   ;;  %v7164_v2 = vld [vmem:[#allocation2 + $0x10] sm:$0xff]   ;;  %v186_v37 = vrot.slane %v7560_v28, 1  ;;  %v175_v29 = vsel %vm8976_vm0, 0.0, %v153_v44 }
  0x12   :  { %v7169_v38 = vld [vmem:[%s8961_s1 + $0xe8] sm:$0xff]   ;;  %v209_v62 = vsel %vm8975_vm1, 0.0, %v187_v47 }
  0x13   :  { %6572 = vmatpush3.bf16.msra.mxu0 %v7148_v9  ;;  %v137_v50 = vrot.slane %v5901_v41, 7  ;;  %v138_v51 = vrot.slane %v5902_v42, 7  ;;  %v180_v5 = vrot.slane %v5901_v41, 1  ;;  %v181_v6 = vrot.slane %v5902_v42, 1  ;;  %v7166_v9 = vld [vmem:[#allocation2 + $0x18] sm:$0xff]  }
  0x14   :  { %6604 = vmatpush3.bf16.msra.mxu1 %v7149_v10  ;;  %6573 = vmatprep.subr.bf16.mxu0 %v7150_v12  ;;  %v7168_v10 = vld [vmem:[%s8961_s1 + $0xa8] sm:$0xff]   ;;  %v7159_v14 = vld [vmem:[#allocation3 + $0x8] sm:$0xff]   ;;  %v151_v42 = vrot.slane %v7648_v19, 7  ;;  %v208_v55 = vsel %vm8975_vm1, 0.0, %v186_v37 }
  0x15   :  { %6605 = vmatprep.subr.bf16.mxu1 %v7151_v13  ;;  %v159_v59 = vsel %vm8976_vm0, 0.0, %v137_v50  ;;  %v160_v60 = vsel %vm8976_vm0, 0.0, %v138_v51  ;;  %v202_v7 = vsel %vm8975_vm1, 0.0, %v180_v5  ;;  %v203_v8 = vsel %vm8975_vm1, 0.0, %v181_v6  ;;  %v7172_v22 = vld [vmem:[#allocation2 + $0x28] sm:$0xff]   ;;  %v7176_v41 = vld [vmem:[%s8961_s1 + $0x98] sm:$0xff]  }
  0x16   :  { %v5942_v1 = vpack.c.bf16 %v160_v60, %v159_v59  ;;  %v6219_v23 = vld [vmem:[#allocation2 + $0x28] sm:$0xff]   ;;  %v7174_v51 = vld [vmem:[#allocation2 + $0x30] sm:$0xff]   ;;  %v7171_v60 = vld [vmem:[%s8961_s1 + $0xe0] sm:$0xff]  }
  0x17   :  { %6574 = vmatpush3.bf16.msra.mxu0 %v7150_v12  ;;  %v150_v12 = vrot.slane %v7624_v0, 7  ;;  %v5921_v39 = vunpack.c.l.bf16 %v6219_v23  ;;  %v5922_v40 = vunpack.c.h.bf16 %v6219_v23  ;;  %v7167_v48 = vld [vmem:[#allocation3 + $0x18] sm:$0xff]   ;;  %v7177_v6 = vld [vmem:[%s8961_s1 + $0xd8] sm:$0xff]   ;;  %v7194_v23 = vld [vmem:[%s8961_s1 + $0x130] sm:$0xff]  }
  0x18   :  { %6606 = vmatpush3.bf16.msra.mxu1 %v7151_v13  ;;  %6575 = vmatprep.subr.bf16.mxu0 %v7152_v20  ;;  %5943 = vst [vmem:[#allocation3] sm:$0xff] %v5942_v1   ;;  %v5992_v13 = vpack.c.bf16 %v203_v8, %v202_v7  ;;  %v7182_v8 = vld [vmem:[#allocation2 + $0x40] sm:$0xff]  }
  0x19   :  { %6607 = vmatprep.subr.bf16.mxu1 %v7153_v21  ;;  %v172_v18 = vsel %vm8976_vm0, 0.0, %v150_v12  ;;  %v147_v49 = vrot.slane %v5921_v39, 7  ;;  %v148_v50 = vrot.slane %v5922_v40, 7  ;;  %v190_v3 = vrot.slane %v5921_v39, 1 }
  0x1a   :  { %5993 = vst [vmem:[#allocation4] sm:$0xff] %v5992_v13   ;;  %v191_v5 = vrot.slane %v5922_v40, 1  ;;  %v192_v13 = vrot.slane %v7619_v63, 1  ;;  %v7179_v63 = vld [vmem:[%s8961_s1 + $0xd0] sm:$0xff]  }
  0x1b   :  { %6576 = vmatpush3.bf16.msra.mxu0 %v7152_v20  ;;  %v5972_v20 = vpack.c.bf16 %v172_v18, %v171_v16  ;;  %v169_v56 = vsel %vm8976_vm0, 0.0, %v147_v49  ;;  %v170_v57 = vsel %vm8976_vm0, 0.0, %v148_v50  ;;  %v212_v7 = vsel %vm8975_vm1, 0.0, %v190_v3  ;;  %v7199_v49 = vld [vmem:[#allocation3 + $0x14] sm:$0xff]   ;;  %v7195_v50 = vld [vmem:[%s8961_s1 + $0x170] sm:$0xff]  }
  0x1c   :  { %6608 = vmatpush3.bf16.msra.mxu1 %v7153_v21  ;;  %6577 = vmatprep.subr.bf16.mxu0 %v7154_v30  ;;  %v7653_v21 = vld [vmem:[%s8962_s0 + $0x60] sm:$0xff]  ;;  %v5967_v61 = vpack.c.bf16 %v170_v57, %v169_v56  ;;  %v214_v18 = vsel %vm8975_vm1, 0.0, %v192_v13 }
  0x1d   :  { %6609 = vmatprep.subr.bf16.mxu1 %v7155_v35  ;;  %v5892_v31 = vpack.c.bf16 %v7653_v21, %v7648_v19  ;;  %6229 = vst [vmem:[#allocation3 + $0x30] sm:$0xff] %v5972_v20   ;;  %v152_v28 = vrot.slane %v7653_v21, 7 }
  0x1e   :  { %6228 = vst [vmem:[#allocation3 + $0x28] sm:$0xff] %v5967_v61   ;;  %v7203_v61 = vld [vmem:[%s8961_s1 + $0x160] sm:$0xff]  }
  0x1f   :  { %6578 = vmatpush3.bf16.msra.mxu0 %v7154_v30  ;;  %v7165_v30 = vld [vmem:[#allocation3 + $0x10] sm:$0xff]   ;;  %v7157_v33 = vld [vmem:[#allocation3] sm:$0xff]   ;;  %6213 = vst [vmem:[#allocation2 + $0x38] sm:$0xff] %v5892_v31   ;;  %v174_v53 = vsel %vm8976_vm0, 0.0, %v152_v28  ;;  %v195_v31 = vrot.slane %v7653_v21, 1  ;;  %v196_v21 = vrot.slane %v7658_v24, 1 }
  0x20   :  { %6610 = vmatpush3.bf16.msra.mxu1 %v7155_v35  ;;  %6627 = vmatprep.subr.bf16.mxu0 %v7160_v43  ;;  %v7163_v35 = vld [vmem:[%s8961_s1 + $0xf0] sm:$0xff]   ;;  %v7187_v24 = vld [vmem:[%s8961_s1 + $0xc0] sm:$0xff]  }
  0x21   :  { %6659 = vmatprep.subr.bf16.mxu1 %v7593_v46  ;;  %6611 = vmatprep.mubr.bf16.mxu1 %v7157_v33  ;;  %v7188_v11 = vld [vmem:[#allocation4] sm:$0xff]   ;;  %v7191_v39 = vld [vmem:[#allocation3 + $0x4] sm:$0xff]  }
  0x22   :  { %6580 = vmatmul.mubr.bf16.vlgmr.msra.gmra.mxu0 %v7158_v52  ;;  %v7178_v52 = vld [vmem:[%s8961_s1 + $0x90] sm:$0xff]  }
  0x23   :  { %6628 = vmatpush3.bf16.msra.mxu0 %v7160_v43  ;;  %6583 = vmatprep.mubr.bf16.mxu0 %v7164_v2  ;;  %v6002_v43 = vpack.c.bf16 %v207_v36, %v206_v34  ;;  %v6007_v2 = vpack.c.bf16 %v209_v62, %v208_v55  ;;  %v217_v34 = vsel %vm8975_vm1, 0.0, %v195_v31  ;;  %v197_v36 = vrot.slane %v7663_v25, 1  ;;  %v7198_v25 = vld [vmem:[%s8961_s1 + $0x128] sm:$0xff]   ;;  %v7210_v55 = vld [vmem:[%s8961_s1 + $0x110] sm:$0xff]  }
  0x24   :  { %6629 = vmatprep.subr.bf16.mxu0 %v7162_v54  ;;  %6612 = vmatmul.mubr.bf16.vlgmr.msra.gmra.mxu1 %v7159_v14  ;;  %v7175_v14 = vld [vmem:[#allocation3 + $0x30] sm:$0xff]   ;;  %v7214_v62 = vld [vmem:[%s8961_s1 + $0x108] sm:$0xff]  }
  0x25   :  { %6660 = vmatpush3.bf16.msra.mxu1 %v7593_v46  ;;  %6615 = vmatprep.mubr.bf16.mxu1 %v7165_v30  ;;  %v173_v46 = vsel %vm8976_vm0, 0.0, %v151_v42  ;;  %6234 = vst [vmem:[#allocation4 + $0x10] sm:$0xff] %v6002_v43   ;;  %6235 = vst [vmem:[#allocation4 + $0x18] sm:$0xff] %v6007_v2   ;;  %v7173_v20 = vld [vmem:[#allocation3 + $0x28] sm:$0xff]   ;;  %v219_v40 = vsel %vm8975_vm1, 0.0, %v197_v36  ;;  %v7230_v36 = vld [vmem:[%s8961_s1 + $0x1a8] sm:$0xff]  }
  0x26   :  { %6661 = vmatprep.subr.bf16.mxu1 %v7163_v35  ;;  %v5977_v58 = vpack.c.bf16 %v174_v53, %v173_v46  ;;  %v7180_v1 = vld [vmem:[#allocation2 + $0x38] sm:$0xff]  }
  0x27   :  { %6630 = vmatpush3.bf16.msra.mxu0 %v7162_v54  ;;  %v176_v54 = vsel %vm8976_vm0, 0.0, %v154_v45  ;;  %v7190_v30 = vld [vmem:[%s8961_s1 + $0x138] sm:$0xff]   ;;  %v7202_v45 = vld [vmem:[%s8961_s1 + $0x120] sm:$0xff]  }
  0x28   :  { %6631 = vmatprep.subr.bf16.mxu0 %v7168_v10  ;;  %v5982_v59 = vpack.c.bf16 %v176_v54, %v175_v29  ;;  %6230 = vst [vmem:[#allocation3 + $0x38] sm:$0xff] %v5977_v58   ;;  %v51_v42 = vld [vmem:[%s8962_s0 + $0x38] sm:$0xff]  ;;  %v7201_v54 = vld [vmem:[%s8961_s1 + $0x168] sm:$0xff]  }
  0x29   :  { %6662 = vmatpush3.bf16.msra.mxu1 %v7163_v35  ;;  %v7193_v43 = vld [vmem:[%s8961_s1 + $0x178] sm:$0xff]   ;;  %v67_v28 = vpack.c.bf16 %v51_v42, %v51_v42  ;;  %v7236_v42 = vld [vmem:[#allocation2 + $0x2c] sm:$0xff]  }
  0x2a   :  { %6584 = vmatmul.mubr.bf16.gmra.mxu0 %v7166_v9  ;;  %6663 = vmatprep.subr.bf16.mxu1 %v7169_v38  ;;  %6231 = vst [vmem:[#allocation3 + $0x40] sm:$0xff] %v5982_v59   ;;  %v7186_v9 = vld [vmem:[%s8961_s1 + $0x80] sm:$0xff]   ;;  %v59_v2 = vld [vmem:[%s8962_s0 + $0x78] sm:$0xff] }
  0x2b   :  { %6632 = vmatpush3.bf16.msra.mxu0 %v7168_v10  ;;  %6587 = vmatprep.mubr.bf16.mxu0 %v7172_v22  ;;  %v213_v10 = vsel %vm8975_vm1, 0.0, %v191_v5  ;;  %84 = vst [vmem:[#allocation2 + $0x20] sm:$0xf] %v67_v28  ;;  %v75_v5 = vpack.c.bf16 %v59_v2, %v59_v2  ;;  %v7207_v13 = vld [vmem:[#allocation3 + $0x2c] sm:$0xff]  }
  0x2c   :  { %6633 = vmatprep.subr.bf16.mxu0 %v7170_v15  ;;  %6616 = vmatmul.mubr.bf16.gmra.mxu1 %v7167_v48  ;;  %v6017_v12 = vpack.c.bf16 %v213_v10, %v212_v7  ;;  %v7196_v37 = vld [vmem:[#allocation4 + $0x10] sm:$0xff]   ;;  %v7197_v44 = vld [vmem:[#allocation4 + $0x18] sm:$0xff]  }
  0x2d   :  { %6664 = vmatpush3.bf16.msra.mxu1 %v7169_v38  ;;  %6619 = vmatprep.mubr.bf16.mxu1 %v7173_v20  ;;  %v218_v38 = vsel %vm8975_vm1, 0.0, %v196_v21  ;;  %v7192_v48 = vld [vmem:[#allocation3 + $0xc] sm:$0xff]   ;;  %92 = vst [vmem:[#allocation2 + $0x48] sm:$0xf] %v75_v5  ;;  %v7217_v20 = vld [vmem:[%s8961_s1 + $0x148] sm:$0xff]  }
  0x2e   :  { %6665 = vmatprep.subr.bf16.mxu1 %v7171_v60  ;;  %6237 = vst [vmem:[#allocation4 + $0x28] sm:$0xff] %v6017_v12   ;;  %v7219_v21 = vld [vmem:[%s8961_s1 + $0x140] sm:$0xff]   ;;  %v7249_v5 = vld [vmem:[%s8961_s1 + $0x1c8] sm:$0xff]  }
  0x2f   :  { %6634 = vmatpush3.bf16.msra.mxu0 %v7170_v15  ;;  %v193_v15 = vrot.slane %v7624_v0, 1  ;;  %v7181_v16 = vld [vmem:[#allocation3 + $0x38] sm:$0xff]   ;;  %v194_v0 = vrot.slane %v7648_v19, 1 }
  0x30   :  { %6635 = vmatprep.subr.bf16.mxu0 %v7176_v41  ;;  %v7189_v19 = vld [vmem:[#allocation4 + $0x8] sm:$0xff]  }
  0x31   :  { %6666 = vmatpush3.bf16.msra.mxu1 %v7171_v60  ;;  %v215_v26 = vsel %vm8975_vm1, 0.0, %v193_v15  ;;  %v216_v33 = vsel %vm8975_vm1, 0.0, %v194_v0  ;;  %v7183_v35 = vld [vmem:[#allocation3 + $0x40] sm:$0xff]   ;;  %v7222_v15 = vld [vmem:[%s8961_s1 + $0x1b8] sm:$0xff]  }
  0x32   :  { %6588 = vmatmul.mubr.bf16.gmra.mxu0 %v7174_v51  ;;  %6667 = vmatprep.subr.bf16.mxu1 %v7177_v6  ;;  %v6022_v27 = vpack.c.bf16 %v215_v26, %v214_v18  ;;  %v6027_v22 = vpack.c.bf16 %v217_v34, %v216_v33  ;;  %v7206_v51 = vld [vmem:[%s8961_s1 + $0x118] sm:$0xff]   ;;  %v6218_v46 = vld [vmem:[#allocation2 + $0x20] sm:$0xff]   ;;  %v7226_v0 = vld [vmem:[%s8961_s1 + $0x1b0] sm:$0xff]  }
  0x33   :  { %6636 = vmatpush3.bf16.msra.mxu0 %v7176_v41  ;;  %6591 = vmatprep.mubr.bf16.mxu0 %v7180_v1  ;;  %v6032_v41 = vpack.c.bf16 %v219_v40, %v218_v38  ;;  %v5917_v53 = vunpack.c.l.bf16 %v6218_v46  ;;  %v5918_v29 = vunpack.c.h.bf16 %v6218_v46  ;;  %v7228_v33 = vld [vmem:[#allocation2 + $0x14] sm:$0xff]   ;;  %v7215_v34 = vld [vmem:[#allocation3 + $0x3c] sm:$0xff]   ;;  %v7229_v40 = vld [vmem:[#allocation2 + $0x1c] sm:$0xff]  }
  0x34   :  { %6637 = vmatprep.subr.bf16.mxu0 %v7178_v52  ;;  %6620 = vmatmul.mubr.bf16.gmra.mxu1 %v7175_v14  ;;  %6238 = vst [vmem:[#allocation4 + $0x30] sm:$0xff] %v6022_v27   ;;  %6239 = vst [vmem:[#allocation4 + $0x38] sm:$0xff] %v6027_v22   ;;  %v7211_v14 = vld [vmem:[%s8961_s1 + $0x150] sm:$0xff]   ;;  %v6223_v18 = vld [vmem:[#allocation2 + $0x48] sm:$0xff]  }
  0x35   :  { %6668 = vmatpush3.bf16.msra.mxu1 %v7177_v6  ;;  %6623 = vmatprep.mubr.bf16.mxu1 %v7181_v16  ;;  %6240 = vst [vmem:[#allocation4 + $0x40] sm:$0xff] %v6032_v41   ;;  %v7204_v47 = vld [vmem:[#allocation4 + $0x28] sm:$0xff]   ;;  %v145_v56 = vrot.slane %v5917_v53, 7  ;;  %v146_v57 = vrot.slane %v5918_v29, 7  ;;  %v188_v3 = vrot.slane %v5917_v53, 1  ;;  %v189_v6 = vrot.slane %v5918_v29, 1 }
  0x36   :  { %6669 = vmatprep.subr.bf16.mxu1 %v7179_v63  ;;  %v5937_v26 = vunpack.c.l.bf16 %v6223_v18  ;;  %v7221_v27 = vld [vmem:[#allocation2 + $0xc] sm:$0xff]   ;;  %v7225_v38 = vld [vmem:[%s8961_s1 + $0x1f8] sm:$0xff]   ;;  %v7245_v46 = vld [vmem:[#allocation2 + $0x44] sm:$0xff]  }
  0x37   :  { %6638 = vmatpush3.bf16.msra.mxu0 %v7178_v52  ;;  %v167_v59 = vsel %vm8976_vm0, 0.0, %v145_v56  ;;  %v168_v60 = vsel %vm8976_vm0, 0.0, %v146_v57  ;;  %v211_v10 = vsel %vm8975_vm1, 0.0, %v189_v6  ;;  %v7233_v53 = vld [vmem:[%s8961_s1 + $0x1e8] sm:$0xff]   ;;  %v7250_v29 = vld [vmem:[%s8961_s1 + $0x180] sm:$0xff]  }
  0x38   :  { %6639 = vmatprep.subr.bf16.mxu0 %v7184_v4  ;;  %v5962_v1 = vpack.c.bf16 %v168_v60, %v167_v59  ;;  %v155_v31 = vrot.slane %v5937_v26, 7  ;;  %v7235_v57 = vld [vmem:[%s8961_s1 + $0x1e0] sm:$0xff]   ;;  %v7241_v59 = vld [vmem:[%s8961_s1 + $0x1d8] sm:$0xff]  }
  0x39   :  { %6670 = vmatpush3.bf16.msra.mxu1 %v7179_v63  ;;  %v5938_v63 = vunpack.c.h.bf16 %v6223_v18  ;;  %v7253_v60 = vld [vmem:[#allocation3 + $0x10] sm:$0xff]   ;;  %v7261_v18 = vld [vmem:[#allocation2 + $0x18] sm:$0xff]  }
  0x3a   :  { %6592 = vmatmul.mubr.bf16.gmra.mxu0 %v7182_v8  ;;  %6671 = vmatprep.subr.bf16.mxu1 %v7185_v32  ;;  %6227 = vst [vmem:[#allocation3 + $0x20] sm:$0xff] %v5962_v1   ;;  %v210_v8 = vsel %vm8975_vm1, 0.0, %v188_v3  ;;  %v7243_v3 = vld [vmem:[%s8961_s1 + $0x1d0] sm:$0xff]  }
  0x3b   :  { %6640 = vmatpush3.bf16.msra.mxu0 %v7184_v4  ;;  %6643 = vmatprep.mubr.bf16.mxu0 %v7188_v11  ;;  %v7205_v52 = vld [vmem:[#allocation4 + $0x30] sm:$0xff]   ;;  %v7212_v58 = vld [vmem:[#allocation4 + $0x38] sm:$0xff]   ;;  %v7220_v11 = vld [vmem:[#allocation2 + $0x4] sm:$0xff]   ;;  %v6012_v12 = vpack.c.bf16 %v211_v10, %v210_v8 }
  0x3c   :  { %6641 = vmatprep.subr.bf16.mxu0 %v7186_v9  ;;  %6624 = vmatmul.mubr.bf16.gmra.mxu1 %v7183_v35  ;;  %v7209_v4 = vld [vmem:[%s8961_s1 + $0x158] sm:$0xff]   ;;  %v7213_v7 = vld [vmem:[#allocation4 + $0x40] sm:$0xff]   ;;  %v177_v35 = vsel %vm8976_vm0, 0.0, %v155_v31  ;;  %v7239_v56 = vld [vmem:[#allocation4 + $0x2c] sm:$0xff]  }
  0x3d   :  { %6672 = vmatpush3.bf16.msra.mxu1 %v7185_v32  ;;  %6675 = vmatprep.mubr.bf16.mxu1 %v7191_v39  ;;  %6236 = vst [vmem:[#allocation4 + $0x20] sm:$0xff] %v6012_v12   ;;  %v156_v32 = vrot.slane %v5938_v63, 7  ;;  %v7240_v1 = vld [vmem:[#allocation4 + $0x34] sm:$0xff]   ;;  %v7247_v2 = vld [vmem:[#allocation4 + $0x3c] sm:$0xff]   ;;  %v7255_v10 = vld [vmem:[#allocation2 + $0x8] sm:$0xff]  }
  0x3e   :  { %6673 = vmatprep.subr.bf16.mxu1 %v7187_v24  ;;  %v7264_v8 = vld [vmem:[#allocation3 + $0x30] sm:$0xff]   ;;  %v7266_v12 = vld [vmem:[%s8961_s1 + $0x218] sm:$0xff]   ;;  %v7277_v31 = vld [vmem:[#allocation4 + $0x10] sm:$0xff]  }
  0x3f   :  { %6642 = vmatpush3.bf16.msra.mxu0 %v7186_v9  ;;  %v7218_v9 = vld [vmem:[%s8961_s1 + $0x100] sm:$0xff]   ;;  %v178_v22 = vsel %vm8976_vm0, 0.0, %v156_v32  ;;  %v7278_v32 = vld [vmem:[#allocation4 + $0x18] sm:$0xff]  }
  0x40   :  { %6691 = vmatprep.subr.bf16.mxu0 %v7190_v30 }
  0x41   :  { %6674 = vmatpush3.bf16.msra.mxu1 %v7187_v24  ;;  %v7200_v16 = vld [vmem:[#allocation3 + $0x1c] sm:$0xff]  }
  0x42   :  { %6644 = vmatmul.mubr.bf16.vlgmr.msra.gmra.mxu0 %v7189_v19  ;;  %6723 = vmatprep.subr.bf16.mxu1 %v7193_v43  ;;  %v198_v19 = vrot.slane %v5937_v26, 1  ;;  %v7259_v6 = vld [vmem:[#allocation3 + $0x20] sm:$0xff]  }
  0x43   :  { %6692 = vmatpush3.bf16.msra.mxu0 %v7190_v30  ;;  %6647 = vmatprep.mubr.bf16.mxu0 %v7196_v37  ;;  %v7208_v30 = vld [vmem:[#allocation3 + $0x34] sm:$0xff]   ;;  %v199_v37 = vrot.slane %v5938_v63, 1 }
  0x44   :  { %6693 = vmatprep.subr.bf16.mxu0 %v7194_v23  ;;  %6676 = vmatmul.mubr.bf16.vlgmr.msra.gmra.mxu1 %v7192_v48  ;;  %v220_v39 = vsel %vm8975_vm1, 0.0, %v198_v19  ;;  %v7244_v48 = vld [vmem:[#allocation2 + $0x3c] sm:$0xff]  }
  0x45   :  { %6724 = vmatpush3.bf16.msra.mxu1 %v7193_v43  ;;  %6679 = vmatprep.mubr.bf16.mxu1 %v7199_v49  ;;  %v221_v24 = vsel %vm8975_vm1, 0.0, %v199_v37  ;;  %v7223_v43 = vld [vmem:[#allocation4 + $0x4] sm:$0xff]   ;;  %v7224_v49 = vld [vmem:[#allocation4 + $0xc] sm:$0xff]  }
  0x46   :  { %6725 = vmatprep.subr.bf16.mxu1 %v7195_v50  ;;  %v6037_v41 = vpack.c.bf16 %v221_v24, %v220_v39  ;;  %v7275_v63 = vld [vmem:[%s8961_s1 + $0x200] sm:$0xff]  }
  0x47   :  { %6694 = vmatpush3.bf16.msra.mxu0 %v7194_v23  ;;  %v5987_v23 = vpack.c.bf16 %v178_v22, %v177_v35  ;;  %v7273_v19 = vld [vmem:[#allocation2 + $0x40] sm:$0xff]   ;;  %v7280_v35 = vld [vmem:[#allocation4 + $0x30] sm:$0xff]   ;;  %v7274_v22 = vld [vmem:[#allocation2 + $0x48] sm:$0xff]  }
  0x48   :  { %6695 = vmatprep.subr.bf16.mxu0 %v7198_v25  ;;  %6241 = vst [vmem:[#allocation4 + $0x48] sm:$0xff] %v6037_v41  }
  0x49   :  { %6726 = vmatpush3.bf16.msra.mxu1 %v7195_v50  ;;  %6232 = vst [vmem:[#allocation3 + $0x48] sm:$0xff] %v5987_v23   ;;  %v7231_v50 = vld [vmem:[#allocation4 + $0x14] sm:$0xff]   ;;  %v7282_v23 = vld [vmem:[#allocation4 + $0x40] sm:$0xff]  }
  0x4a   :  { %6648 = vmatmul.mubr.bf16.gmra.mxu0 %v7197_v44  ;;  %6727 = vmatprep.subr.bf16.mxu1 %v7201_v54  ;;  %v7238_v44 = vld [vmem:[%s8961_s1 + $0x198] sm:$0xff]  }
  0x4b   :  { %6696 = vmatpush3.bf16.msra.mxu0 %v7198_v25  ;;  %6651 = vmatprep.mubr.bf16.mxu0 %v7204_v47  ;;  %v7234_v25 = vld [vmem:[%s8961_s1 + $0x1a0] sm:$0xff]   ;;  %v7242_v47 = vld [vmem:[%s8961_s1 + $0x190] sm:$0xff]  }
  0x4c   :  { %6697 = vmatprep.subr.bf16.mxu0 %v7202_v45  ;;  %6680 = vmatmul.mubr.bf16.gmra.mxu1 %v7200_v16  ;;  %v7256_v16 = vld [vmem:[#allocation2 + $0x10] sm:$0xff]  }
  0x4d   :  { %6728 = vmatpush3.bf16.msra.mxu1 %v7201_v54  ;;  %6683 = vmatprep.mubr.bf16.mxu1 %v7207_v13  ;;  %v7252_v54 = vld [vmem:[#allocation3 + $0x8] sm:$0xff]   ;;  %v7265_v13 = vld [vmem:[#allocation3 + $0x38] sm:$0xff]  }
  0x4e   :  { %6729 = vmatprep.subr.bf16.mxu1 %v7203_v61 }
  0x4f   :  { %6698 = vmatpush3.bf16.msra.mxu0 %v7202_v45  ;;  %v7237_v45 = vld [vmem:[#allocation2 + $0x34] sm:$0xff]  }
  0x50   :  { %6699 = vmatprep.subr.bf16.mxu0 %v7206_v51  ;;  %v7216_v28 = vld [vmem:[#allocation3 + $0x44] sm:$0xff]  }
  0x51   :  { %6730 = vmatpush3.bf16.msra.mxu1 %v7203_v61  ;;  %v7257_v61 = vld [vmem:[%s8961_s1 + $0x230] sm:$0xff]   ;;  %v7271_v26 = vld [vmem:[#allocation3 + $0x48] sm:$0xff]  }
  0x52   :  { %6652 = vmatmul.mubr.bf16.gmra.mxu0 %v7205_v52  ;;  %6731 = vmatprep.subr.bf16.mxu1 %v7209_v4  ;;  %v7246_v52 = vld [vmem:[%s8961_s1 + $0x188] sm:$0xff]  }
  0x53   :  { %6700 = vmatpush3.bf16.msra.mxu0 %v7206_v51  ;;  %6655 = vmatprep.mubr.bf16.mxu0 %v7212_v58  ;;  %v7227_v51 = vld [vmem:[%s8961_s1 + $0x1f0] sm:$0xff]   ;;  %v7254_v58 = vld [vmem:[%s8961_s1 + $0x238] sm:$0xff]  }
  0x54   :  { %6701 = vmatprep.subr.bf16.mxu0 %v7210_v55  ;;  %6684 = vmatmul.mubr.bf16.gmra.mxu1 %v7208_v30  ;;  %v7267_v30 = vld [vmem:[#allocation2 + $0x30] sm:$0xff]  }
  0x55   :  { %6732 = vmatpush3.bf16.msra.mxu1 %v7209_v4  ;;  %6687 = vmatprep.mubr.bf16.mxu1 %v7215_v34  ;;  %v7260_v4 = vld [vmem:[%s8961_s1 + $0x228] sm:$0xff]   ;;  %v7279_v34 = vld [vmem:[#allocation4 + $0x20] sm:$0xff]  }
  0x56   :  { %6733 = vmatprep.subr.bf16.mxu1 %v7211_v14 }
  0x57   :  { %6702 = vmatpush3.bf16.msra.mxu0 %v7210_v55  ;;  %v7232_v55 = vld [vmem:[#allocation4 + $0x1c] sm:$0xff]  }
  0x58   :  { %6703 = vmatprep.subr.bf16.mxu0 %v7214_v62 }
  0x59   :  { %6734 = vmatpush3.bf16.msra.mxu1 %v7211_v14  ;;  %v7270_v14 = vld [vmem:[#allocation3 + $0x40] sm:$0xff]  }
  0x5a   :  { %6656 = vmatmul.mubr.bf16.gmra.mxu0 %v7213_v7  ;;  %6735 = vmatprep.subr.bf16.mxu1 %v7217_v20  ;;  %v7263_v7 = vld [vmem:[%s8961_s1 + $0x220] sm:$0xff]  }
  0x5b   :  { %6704 = vmatpush3.bf16.msra.mxu0 %v7214_v62  ;;  %6707 = vmatprep.mubr.bf16.mxu0 %v7220_v11  ;;  %v7258_v62 = vld [vmem:[#allocation3 + $0x18] sm:$0xff]   ;;  %v7251_v11 = vld [vmem:[%s8961_s1 + $0x1c0] sm:$0xff]  }
  0x5c   :  { %6705 = vmatprep.subr.bf16.mxu0 %v7218_v9  ;;  %6688 = vmatmul.mubr.bf16.gmra.mxu1 %v7216_v28 }
  0x5d   :  { %6736 = vmatpush3.bf16.msra.mxu1 %v7217_v20  ;;  %6739 = vmatprep.mubr.bf16.mxu1 %v7223_v43  ;;  %v7272_v20 = vld [vmem:[%s8961_s1 + $0x208] sm:$0xff]  }
  0x5e   :  { %6737 = vmatprep.subr.bf16.mxu1 %v7219_v21 }
  0x5f   :  { %6706 = vmatpush3.bf16.msra.mxu0 %v7218_v9  ;;  %v7248_v9 = vld [vmem:[#allocation4 + $0x44] sm:$0xff]  }
  0x60   :  { %6755 = vmatprep.subr.bf16.mxu0 %v7222_v15 }
  0x61   :  { %6738 = vmatpush3.bf16.msra.mxu1 %v7219_v21  ;;  %v7281_v21 = vld [vmem:[#allocation4 + $0x38] sm:$0xff]  }
  0x62   :  { %6708 = vmatmul.mubr.bf16.vlgmr.msra.gmra.mxu0 %v7221_v27  ;;  %6787 = vmatprep.subr.bf16.mxu1 %v7225_v38  ;;  %v7276_v27 = vld [vmem:[#allocation4 + $0x8] sm:$0xff]  }
  0x63   :  { %6756 = vmatpush3.bf16.msra.mxu0 %v7222_v15  ;;  %6711 = vmatprep.mubr.bf16.mxu0 %v7228_v33  ;;  %v7269_v15 = vld [vmem:[%s8961_s1 + $0x210] sm:$0xff]   ;;  %v7268_v33 = vld [vmem:[#allocation2 + $0x38] sm:$0xff]  }
  0x64   :  { %6757 = vmatprep.subr.bf16.mxu0 %v7226_v0  ;;  %6740 = vmatmul.mubr.bf16.vlgmr.msra.gmra.mxu1 %v7224_v49 }
  0x65   :  { %6788 = vmatpush3.bf16.msra.mxu1 %v7225_v38  ;;  %6743 = vmatprep.mubr.bf16.mxu1 %v7231_v50 }
  0x66   :  { %6789 = vmatprep.subr.bf16.mxu1 %v7227_v51 }
  0x67   :  { %6758 = vmatpush3.bf16.msra.mxu0 %v7226_v0  ;;  %v7262_v0 = vld [vmem:[#allocation2 + $0x20] sm:$0xff]  }
  0x68   :  { %6759 = vmatprep.subr.bf16.mxu0 %v7230_v36 }
  0x69   :  { %6790 = vmatpush3.bf16.msra.mxu1 %v7227_v51 }
  0x6a   :  { %6712 = vmatmul.mubr.bf16.gmra.mxu0 %v7229_v40  ;;  %6791 = vmatprep.subr.bf16.mxu1 %v7233_v53 }
  0x6b   :  { %6760 = vmatpush3.bf16.msra.mxu0 %v7230_v36  ;;  %6715 = vmatprep.mubr.bf16.mxu0 %v7236_v42  ;;  %v7283_v36 = vld [vmem:[#allocation4 + $0x48] sm:$0xff]  }
  0x6c   :  { %6761 = vmatprep.subr.bf16.mxu0 %v7234_v25  ;;  %6744 = vmatmul.mubr.bf16.gmra.mxu1 %v7232_v55 }
  0x6d   :  { %6792 = vmatpush3.bf16.msra.mxu1 %v7233_v53  ;;  %6747 = vmatprep.mubr.bf16.mxu1 %v7239_v56 }
  0x6e   :  { %6793 = vmatprep.subr.bf16.mxu1 %v7235_v57 }
  0x6f   :  { %6762 = vmatpush3.bf16.msra.mxu0 %v7234_v25 }
  0x70   :  { %6763 = vmatprep.subr.bf16.mxu0 %v7238_v44 }
  0x71   :  { %6794 = vmatpush3.bf16.msra.mxu1 %v7235_v57 }
  0x72   :  { %6716 = vmatmul.mubr.bf16.gmra.mxu0 %v7237_v45  ;;  %6795 = vmatprep.subr.bf16.mxu1 %v7241_v59 }
  0x73   :  { %6764 = vmatpush3.bf16.msra.mxu0 %v7238_v44  ;;  %6719 = vmatprep.mubr.bf16.mxu0 %v7244_v48 }
  0x74   :  { %6765 = vmatprep.subr.bf16.mxu0 %v7242_v47  ;;  %6748 = vmatmul.mubr.bf16.gmra.mxu1 %v7240_v1 }
  0x75   :  { %6796 = vmatpush3.bf16.msra.mxu1 %v7241_v59  ;;  %6751 = vmatprep.mubr.bf16.mxu1 %v7247_v2 }
  0x76   :  { %6797 = vmatprep.subr.bf16.mxu1 %v7243_v3 }
  0x77   :  { %6766 = vmatpush3.bf16.msra.mxu0 %v7242_v47 }
  0x78   :  { %6767 = vmatprep.subr.bf16.mxu0 %v7246_v52 }
  0x79   :  { %6798 = vmatpush3.bf16.msra.mxu1 %v7243_v3 }
  0x7a   :  { %6720 = vmatmul.mubr.bf16.gmra.mxu0 %v7245_v46  ;;  %6799 = vmatprep.subr.bf16.mxu1 %v7249_v5 }
  0x7b   :  { %6771 = vmatprep.mubr.bf16.mxu0 %v7252_v54  ;;  %6768 = vmatpush3.bf16.msra.mxu0 %v7246_v52 }
  0x7c   :  { %6769 = vmatprep.subr.bf16.mxu0 %v7250_v29  ;;  %6752 = vmatmul.mubr.bf16.gmra.mxu1 %v7248_v9 }
  0x7d   :  { %6800 = vmatpush3.bf16.msra.mxu1 %v7249_v5  ;;  %6803 = vmatprep.mubr.bf16.mxu1 %v7255_v10 }
  0x7e   :  { %6801 = vmatprep.subr.bf16.mxu1 %v7251_v11 }
  0x7f   :  { %6770 = vmatpush3.bf16.msra.mxu0 %v7250_v29 }
  0x80   :  { %6819 = vmatprep.subr.bf16.mxu0 %v7254_v58 }
  0x81   :  { %6802 = vmatpush3.bf16.msra.mxu1 %v7251_v11 }
  0x82   :  { %6772 = vmatmul.mubr.bf16.vlgmr.msra.gmra.mxu0 %v7253_v60 }
  0x83   :  { %6820 = vmatpush3.bf16.msra.mxu0 %v7254_v58  ;;  %6775 = vmatprep.mubr.bf16.mxu0 %v7258_v62 }
  0x84   :  { %6821 = vmatprep.subr.bf16.mxu0 %v7257_v61  ;;  %6804 = vmatmul.mubr.bf16.vlgmr.msra.gmra.mxu1 %v7256_v16 }
  0x85   :  { %6807 = vmatprep.mubr.bf16.mxu1 %v7261_v18 }
  0x87   :  { %6822 = vmatpush3.bf16.msra.mxu0 %v7257_v61 }
  0x88   :  { %6823 = vmatprep.subr.bf16.mxu0 %v7260_v4 }
  0x8a   :  { %6776 = vmatmul.mubr.bf16.gmra.mxu0 %v7259_v6 }
  0x8b   :  { %6824 = vmatpush3.bf16.msra.mxu0 %v7260_v4  ;;  %6779 = vmatprep.mubr.bf16.mxu0 %v7264_v8 }
  0x8c   :  { %6825 = vmatprep.subr.bf16.mxu0 %v7263_v7  ;;  %6808 = vmatmul.mubr.bf16.gmra.mxu1 %v7262_v0 }
  0x8d   :  { %6811 = vmatprep.mubr.bf16.mxu1 %v7267_v30 }
  0x8f   :  { %6826 = vmatpush3.bf16.msra.mxu0 %v7263_v7 }
  0x90   :  { %6827 = vmatprep.subr.bf16.mxu0 %v7266_v12 }
  0x92   :  { %6780 = vmatmul.mubr.bf16.gmra.mxu0 %v7265_v13 }
  0x93   :  { %6828 = vmatpush3.bf16.msra.mxu0 %v7266_v12  ;;  %6783 = vmatprep.mubr.bf16.mxu0 %v7270_v14 }
  0x94   :  { %6829 = vmatprep.subr.bf16.mxu0 %v7269_v15  ;;  %6812 = vmatmul.mubr.bf16.gmra.mxu1 %v7268_v33 }
  0x95   :  { %6815 = vmatprep.mubr.bf16.mxu1 %v7273_v19 }
  0x97   :  { %6830 = vmatpush3.bf16.msra.mxu0 %v7269_v15 }
  0x98   :  { %6831 = vmatprep.subr.bf16.mxu0 %v7272_v20 }
  0x9a   :  { %6784 = vmatmul.mubr.bf16.gmra.mxu0 %v7271_v26 }
  0x9b   :  { %6832 = vmatpush3.bf16.msra.mxu0 %v7272_v20  ;;  %6835 = vmatprep.mubr.bf16.mxu0 %v7276_v27 }
  0x9c   :  { %6833 = vmatprep.subr.bf16.mxu0 %v7275_v63  ;;  %6816 = vmatmul.mubr.bf16.gmra.mxu1 %v7274_v22 }
  0x9f   :  { %6834 = vmatpush3.bf16.msra.mxu0 %v7275_v63 }
  0xa2   :  { %6836 = vmatmul.mubr.bf16.vlgmr.msra.gmra.mxu0 %v7277_v31 }
  0xa3   :  { %6839 = vmatprep.mubr.bf16.mxu0 %v7278_v32 }
  0xaa   :  { %6840 = vmatmul.mubr.bf16.gmra.mxu0 %v7279_v34 }
  0xab   :  { %6843 = vmatprep.mubr.bf16.mxu0 %v7280_v35 }
  0xb2   :  { %6844 = vmatmul.mubr.bf16.gmra.mxu0 %v7281_v21 }
  0xb3   :  { %6847 = vmatprep.mubr.bf16.mxu0 %v7282_v23 }
  0xba   :  { %6848 = vmatmul.mubr.bf16.gmra.mxu0 %v7283_v36 }
  0xe2   :  { %v6581_v37 = vpop.f32.mrf.mxu0 }
  0xe4   :  { %v497_v38 = vpop.f32.mrf.mxu0  ;;  %v6613_v41 = vpop.f32.mrf.mxu1 }
  0xe5   :  { %v699_v42 = vadd.f32 %v6613_v41, %v6581_v37 }
  0xe6   :  { %v6582_v39 = vpop.f32.mrf.mxu0  ;;  %v690_v43 = vpop.f32.mrf.mxu1 }
  0xe7   :  { %v691_v44 = vadd.f32 %v690_v43, %v497_v38 }
  0xe8   :  { %v7895_v40 = vpop.f32.mrf.mxu0  ;;  %v6614_v45 = vpop.f32.mrf.mxu1 }
  0xe9   :  { %v702_v48 = vadd.f32 %v6614_v45, %v6582_v39 }
  0xea   :  { %v6585_v24 = vpop.f32.mrf.mxu0  ;;  %v7899_v49 = vpop.f32.mrf.mxu1 }
  0xec   :  { %v513_v25 = vpop.f32.mrf.mxu0  ;;  %v6617_v51 = vpop.f32.mrf.mxu1 }
  0xed   :  { %v715_v46 = vadd.f32 %v6617_v51, %v6585_v24 }
  0xee   :  { %v6586_v28 = vpop.f32.mrf.mxu0  ;;  %v706_v53 = vpop.f32.mrf.mxu1 }
  0xef   :  { %v707_v54 = vadd.f32 %v706_v53, %v513_v25 }
  0xf0   :  { %v7897_v47 = vpop.f32.mrf.mxu0  ;;  %v6618_v55 = vpop.f32.mrf.mxu1 }
  0xf1   :  { %v718_v57 = vadd.f32 %v6618_v55, %v6586_v28 }
  0xf2   :  { %v6589_v50 = vpop.f32.mrf.mxu0  ;;  %v7903_v58 = vpop.f32.mrf.mxu1 }
  0xf4   :  { %v529_v52 = vpop.f32.mrf.mxu0  ;;  %v6621_v61 = vpop.f32.mrf.mxu1 }
  0xf5   :  { %v731_v62 = vadd.f32 %v6621_v61, %v6589_v50 }
  0xf6   :  { %v6590_v29 = vpop.f32.mrf.mxu0  ;;  %v722_v2 = vpop.f32.mrf.mxu1 }
  0xf7   :  { %v723_v3 = vadd.f32 %v722_v2, %v529_v52 }
  0xf8   :  { %v7901_v56 = vpop.f32.mrf.mxu0  ;;  %v6622_v5 = vpop.f32.mrf.mxu1 }
  0xf9   :  { %v734_v6 = vadd.f32 %v6622_v5, %v6590_v29 }
  0xfa   :  { %v6593_v59 = vpop.f32.mrf.mxu0  ;;  %v7907_v8 = vpop.f32.mrf.mxu1 }
  0xfc   :  { %v545_v60 = vpop.f32.mrf.mxu0  ;;  %v6625_v11 = vpop.f32.mrf.mxu1 }
  0xfd   :  { %v747_v13 = vadd.f32 %v6625_v11, %v6593_v59 }
  0xfe   :  { %v6594_v1 = vpop.f32.mrf.mxu0  ;;  %v738_v15 = vpop.f32.mrf.mxu1 }
  0xff   :  { %v739_v18 = vadd.f32 %v738_v15, %v545_v60 }
 0x100   :  { %v7905_v4 = vpop.f32.mrf.mxu0  ;;  %v6626_v26 = vpop.f32.mrf.mxu1 }
 0x101   :  { %v750_v63 = vadd.f32 %v6626_v26, %v6594_v1 }
 0x102   :  { %v6645_v7 = vpop.f32.mrf.mxu0  ;;  %v7915_v0 = vpop.f32.mrf.mxu1 }
 0x103   :  { %v981_v9 = vadd.f32 %v6645_v7, %v699_v42 }
 0x104   :  { %v916_v10 = vpop.f32.mrf.mxu0  ;;  %v6677_v32 = vpop.f32.mrf.mxu1 }
 0x105   :  { %v7909_v12 = vadd.f32 %v916_v10, %v691_v44  ;;  %v1224_v19 = vadd.f32 %v6677_v32, %v981_v9 }
 0x106   :  { %v6646_v14 = vpop.f32.mrf.mxu0  ;;  %v7923_v23 = vpop.f32.mrf.mxu1 }
 0x107   :  { %v7911_v16 = vadd.f32 %v6646_v14, %v702_v48 }
 0x108   :  { %v7913_v20 = vpop.f32.mrf.mxu0  ;;  %v7927_v24 = vpop.f32.mrf.mxu1 }
 0x10a   :  { %v6649_v27 = vpop.f32.mrf.mxu0  ;;  %v7933_v43 = vpop.f32.mrf.mxu1 }
 0x10b   :  { %v985_v30 = vadd.f32 %v6649_v27, %v715_v46 }
 0x10c   :  { %v932_v31 = vpop.f32.mrf.mxu0  ;;  %v6681_v50 = vpop.f32.mrf.mxu1 }
 0x10d   :  { %v7917_v33 = vadd.f32 %v932_v31, %v707_v54  ;;  %v1228_v52 = vadd.f32 %v6681_v50, %v985_v30 }
 0x10e   :  { %v6650_v34 = vpop.f32.mrf.mxu0  ;;  %v7941_v53 = vpop.f32.mrf.mxu1 }
 0x10f   :  { %v7919_v35 = vadd.f32 %v6650_v34, %v718_v57 }
 0x110   :  { %v7921_v22 = vpop.f32.mrf.mxu0  ;;  %v7943_v29 = vpop.f32.mrf.mxu1 }
 0x112   :  { %v6653_v21 = vpop.f32.mrf.mxu0  ;;  %v7947_v57 = vpop.f32.mrf.mxu1 }
 0x113   :  { %v989_v36 = vadd.f32 %v6653_v21, %v731_v62 }
 0x114   :  { %v948_v37 = vpop.f32.mrf.mxu0  ;;  %v6685_v60 = vpop.f32.mrf.mxu1 }
 0x115   :  { %v7925_v38 = vadd.f32 %v948_v37, %v723_v3  ;;  %v1232_v62 = vadd.f32 %v6685_v60, %v989_v36 }
 0x116   :  { %v6654_v39 = vpop.f32.mrf.mxu0  ;;  %v7953_v1 = vpop.f32.mrf.mxu1 }
 0x117   :  { %v7929_v41 = vadd.f32 %v6654_v39, %v734_v6 }
 0x118   :  { %v7931_v25 = vpop.f32.mrf.mxu0  ;;  %v7957_v3 = vpop.f32.mrf.mxu1 }
 0x11a   :  { %v6657_v42 = vpop.f32.mrf.mxu0  ;;  %v7961_v7 = vpop.f32.mrf.mxu1 }
 0x11b   :  { %v993_v28 = vadd.f32 %v6657_v42, %v747_v13 }
 0x11c   :  { %v964_v44 = vpop.f32.mrf.mxu0  ;;  %v6689_v10 = vpop.f32.mrf.mxu1 }
 0x11d   :  { %v7935_v45 = vadd.f32 %v964_v44, %v739_v18  ;;  %v1236_v13 = vadd.f32 %v6689_v10, %v993_v28 }
 0x11e   :  { %v6658_v48 = vpop.f32.mrf.mxu0  ;;  %v7967_v14 = vpop.f32.mrf.mxu1 }
 0x11f   :  { %8978 = vst [vmem:[#allocation6_spill] sm:$0xff] %v7935_v45  ;;  %v7937_v51 = vadd.f32 %v6658_v48, %v750_v63  ;;  %8980 = vst [vmem:[#allocation8_spill] sm:$0xff] %v7967_v14 }
 0x120   :  { %v7939_v46 = vpop.f32.mrf.mxu0  ;;  %v7971_v18 = vpop.f32.mrf.mxu1 }
 0x121   :  { %8979 = vst [vmem:[#allocation7_spill] sm:$0xff] %v7937_v51  ;;  %8981 = vst [vmem:[#allocation9_spill] sm:$0xff] %v7971_v18 }
 0x122   :  { %v6709_v54 = vpop.f32.mrf.mxu0  ;;  %v7975_v27 = vpop.f32.mrf.mxu1 }
 0x123   :  { %v7945_v55 = vadd.f32 %v6709_v54, %v1224_v19  ;;  %8983 = vst [vmem:[#allocation11_spill] sm:$0xff] %v7975_v27 }
 0x124   :  { %v7949_v59 = vpop.f32.mrf.mxu0  ;;  %v6741_v31 = vpop.f32.mrf.mxu1 }
 0x126   :  { %v7951_v61 = vpop.f32.mrf.mxu0  ;;  %v1644_v19 = vpop.f32.mrf.mxu1 }
 0x128   :  { %v7955_v2 = vpop.f32.mrf.mxu0  ;;  %v6742_v21 = vpop.f32.mrf.mxu1 }
 0x12a   :  { %v6713_v5 = vpop.f32.mrf.mxu0  ;;  %v1647_v39 = vpop.f32.mrf.mxu1 }
 0x12b   :  { %v7959_v6 = vadd.f32 %v6713_v5, %v1228_v52 }
 0x12c   :  { %v7963_v9 = vpop.f32.mrf.mxu0  ;;  %v7987_v28 = vpop.f32.mrf.mxu1 }
 0x12e   :  { %v7965_v11 = vpop.f32.mrf.mxu0  ;;  %v7991_v48 = vpop.f32.mrf.mxu1 }
 0x130   :  { %v7969_v15 = vpop.f32.mrf.mxu0  ;;  %v7995_v52 = vpop.f32.mrf.mxu1 }
 0x132   :  { %v6717_v26 = vpop.f32.mrf.mxu0  ;;  %v7997_v60 = vpop.f32.mrf.mxu1 }
 0x133   :  { %v7973_v63 = vadd.f32 %v6717_v26, %v1232_v62 }
 0x134   :  { %v7977_v30 = vpop.f32.mrf.mxu0  ;;  %v7999_v5 = vpop.f32.mrf.mxu1 }
 0x135   :  { %8982 = vst [vmem:[#allocation10_spill] sm:$0xff] %v7973_v63  ;;  %8990 = vst [vmem:[#allocation18_spill] sm:$0xff] %v7999_v5 }
 0x136   :  { %v7979_v32 = vpop.f32.mrf.mxu0 }
 0x137   :  { %8984 = vst [vmem:[#allocation12_spill] sm:$0xff] %v7979_v32 }
 0x138   :  { %v7981_v34 = vpop.f32.mrf.mxu0 }
 0x139   :  { %8985 = vst [vmem:[#allocation13_spill] sm:$0xff] %v7981_v34 }
 0x13a   :  { %v6721_v36 = vpop.f32.mrf.mxu0 }
 0x13b   :  { %v7983_v37 = vadd.f32 %v6721_v36, %v1236_v13  ;;  %v8001_v13 = vpop.f32.mrf.mxu1 }
 0x13c   :  { %v7985_v42 = vpop.f32.mrf.mxu0 }
 0x13d   :  { %8986 = vst [vmem:[#allocation14_spill] sm:$0xff] %v7983_v37  ;;  %8987 = vst [vmem:[#allocation15_spill] sm:$0xff] %v7985_v42  ;;  %v8003_v36 = vpop.f32.mrf.mxu1 }
 0x13e   :  { %v7989_v44 = vpop.f32.mrf.mxu0  ;;  %8991 = vst [vmem:[#allocation19_spill] sm:$0xff] %v8003_v36 }
 0x13f   :  { %8988 = vst [vmem:[#allocation16_spill] sm:$0xff] %v7989_v44  ;;  %v8007_v37 = vpop.f32.mrf.mxu1 }
 0x140   :  { %v7993_v50 = vpop.f32.mrf.mxu0  ;;  %8992 = vst [vmem:[#allocation20_spill] sm:$0xff] %v8007_v37  ;;  %v694_v37 = vadd.f32 %v7899_v49, %v7895_v40  ;;  %v710_v40 = vadd.f32 %v7903_v58, %v7897_v47 }
 0x141   :  { %8989 = vst [vmem:[#allocation17_spill] sm:$0xff] %v7993_v50  ;;  %v8011_v50 = vpop.f32.mrf.mxu1 }
 0x142   :  { %v6773_v54 = vpop.f32.mrf.mxu0  ;;  %8993 = vst [vmem:[#allocation21_spill] sm:$0xff] %v8011_v50  ;;  %v980_v50 = vadd.f32 %v7913_v20, %v694_v37  ;;  %v1225_v20 = vadd.f32 %v7927_v24, %v7911_v16 }
 0x143   :  { %v8015_v51 = vpop.f32.mrf.mxu1 }
 0x144   :  { %v1887_v62 = vpop.f32.mrf.mxu0  ;;  %8995 = vst [vmem:[#allocation23_spill] sm:$0xff] %v8015_v51 }
 0x145   :  { %v8019_v5 = vpop.f32.mrf.mxu1 }
 0x146   :  { %v6774_v10 = vpop.f32.mrf.mxu0  ;;  %8996 = vst [vmem:[#allocation24_spill] sm:$0xff] %v8019_v5  ;;  %v1222_v5 = vadd.f32 %v7923_v23, %v7909_v12  ;;  %v984_v12 = vadd.f32 %v7921_v22, %v710_v40  ;;  %v7284_v22 = vld [vmem:[%s8963_s6 + $0x78] sm:$0xff]  }
 0x147   :  { %v8023_v32 = vpop.f32.mrf.mxu1  ;;  %6851 = vmatprep.subr.bf16.mxu1 %v7284_v22 }
 0x148   :  { %v1890_v26 = vpop.f32.mrf.mxu0  ;;  %8998 = vst [vmem:[#allocation26_spill] sm:$0xff] %v8023_v32  ;;  %v1223_v32 = vadd.f32 %v7933_v43, %v980_v50  ;;  %v1226_v43 = vadd.f32 %v7941_v53, %v7917_v33  ;;  %v1227_v33 = vadd.f32 %v7947_v57, %v984_v12  ;;  %6852 = vmatpush3.bf16.msra.mxu1 %v7284_v22 }
 0x149   :  { %v6805_v27 = vpop.f32.mrf.mxu1  ;;  %v1713_v12 = vadd.f32 %v7987_v28, %v7959_v6  ;;  %v7286_v6 = vld [vmem:[%s8963_s6 + $0x68] sm:$0xff]  }
 0x14a   :  { %v8005_v17 = vpop.f32.mrf.mxu0  ;;  %v1465_v37 = vadd.f32 %v7955_v2, %v1223_v32  ;;  %v1468_v24 = vadd.f32 %v7963_v9, %v1226_v43  ;;  %v1229_v9 = vadd.f32 %v7943_v29, %v7919_v35 }
 0x14b   :  { %v2130_v45 = vpop.f32.mrf.mxu1 }
 0x14c   :  { %v8009_v44 = vpop.f32.mrf.mxu0  ;;  %v1708_v16 = vadd.f32 %v1647_v39, %v1465_v37  ;;  %v1471_v29 = vadd.f32 %v7965_v11, %v1229_v9 }
 0x14e   :  { %v8013_v18 = vpop.f32.mrf.mxu0  ;;  %v1714_v28 = vadd.f32 %v7995_v52, %v1471_v29  ;;  %v9001_v52 = vld [vmem:[#allocation13_spill] sm:$0xff] }
 0x14f   :  { %8994 = vst [vmem:[#allocation22_spill] sm:$0xff] %v8013_v18  ;;  %v6806_v18 = vpop.f32.mrf.mxu1 }
 0x150   :  { %v8017_v42 = vpop.f32.mrf.mxu0 }
 0x151   :  { %v2133_v34 = vpop.f32.mrf.mxu1 }
 0x152   :  { %v8021_v63 = vpop.f32.mrf.mxu0 }
 0x153   :  { %8997 = vst [vmem:[#allocation25_spill] sm:$0xff] %v8021_v63 }
 0x154   :  { %v8025_v36 = vpop.f32.mrf.mxu0 }
 0x155   :  { %8999 = vst [vmem:[#allocation27_spill] sm:$0xff] %v8025_v36  ;;  %v1464_v36 = vadd.f32 %v7949_v59, %v1222_v5  ;;  %v1467_v59 = vadd.f32 %v7951_v61, %v1225_v20  ;;  %v1709_v5 = vadd.f32 %v6741_v31, %v7945_v55  ;;  %v726_v55 = vadd.f32 %v7907_v8, %v7901_v56 }
 0x156   :  { %v8029_v14 = vpop.f32.mrf.mxu0  ;;  %v1469_v31 = vadd.f32 %v7969_v15, %v1227_v33  ;;  %v742_v56 = vadd.f32 %v7915_v0, %v7905_v4  ;;  %v1230_v8 = vadd.f32 %v7953_v1, %v7925_v38  ;;  %v8092_v38 = vld [vmem:[%s8964_s2] ss:$0 sm:$0xff] }
 0x157   :  { %9000 = vst [vmem:[#allocation28_spill] sm:$0xff] %v8029_v14  ;;  %v8047_v14 = vpop.f32.mrf.mxu1  ;;  %v1707_v50 = vadd.f32 %v1644_v19, %v1464_v36  ;;  %v1710_v61 = vadd.f32 %v6742_v21, %v1467_v59  ;;  %v1952_v19 = vadd.f32 %v6773_v54, %v1709_v5  ;;  %v1951_v36 = vadd.f32 %v1890_v26, %v1708_v16  ;;  %v7285_v54 = vld [vmem:[%s8963_s6 + $0x70] sm:$0xff]  }
 0x158   :  { %v8032_v51 = vpop.f32.mrf.mxu0  ;;  %v988_v35 = vadd.f32 %v7931_v25, %v726_v55  ;;  %6853 = vmatprep.subr.bf16.mxu1 %v7285_v54  ;;  %v1712_v4 = vadd.f32 %v7997_v60, %v1469_v31  ;;  %v1472_v0 = vadd.f32 %v7977_v30, %v1230_v8  ;;  %v992_v1 = vadd.f32 %v7939_v46, %v742_v56  ;;  %v9006_v55 = vld [vmem:[#allocation12_spill] sm:$0xff]  ;;  %v9008_v8 = vld [vmem:[#allocation10_spill] sm:$0xff] }
 0x159   :  { %v2146_v47 = vpop.f32.mrf.mxu1  ;;  %v1950_v2 = vadd.f32 %v1887_v62, %v1707_v50  ;;  %v1711_v62 = vadd.f32 %v7991_v48, %v1468_v24  ;;  %v1953_v57 = vadd.f32 %v6774_v10, %v1710_v61  ;;  %v2195_v48 = vadd.f32 %v6805_v27, %v1952_v19  ;;  %6854 = vmatpush3.bf16.msra.mxu1 %v7285_v54  ;;  %v9005_v19 = vld [vmem:[#allocation11_spill] sm:$0xff] }
 0x15a   :  { %v8036_v63 = vpop.f32.mrf.mxu0  ;;  %v2194_v10 = vadd.f32 %v2133_v34, %v1951_v36  ;;  %v1231_v30 = vadd.f32 %v7961_v7, %v988_v35  ;;  %v1956_v60 = vadd.f32 %v8005_v17, %v1713_v12  ;;  %v1955_v43 = vadd.f32 %v8017_v42, %v1712_v4  ;;  %6855 = vmatprep.subr.bf16.mxu1 %v7286_v6  ;;  %v9002_v17 = vld [vmem:[#allocation22_spill] sm:$0xff] }
 0x15b   :  { %v8059_v32 = vpop.f32.mrf.mxu1  ;;  %v2193_v20 = vadd.f32 %v2130_v45, %v1950_v2  ;;  %v1954_v45 = vadd.f32 %v8009_v44, %v1711_v62  ;;  %v2196_v11 = vadd.f32 %v6806_v18, %v1953_v57  ;;  %v1233_v16 = vadd.f32 %v7957_v3, %v7929_v41  ;;  %v7287_v41 = vld [vmem:[%s8963_s6 + $0x60] sm:$0xff]   ;;  %v9003_v3 = vld [vmem:[#allocation6_spill] sm:$0xff] }
 0x15c   :  { %v8042_v49 = vpop.f32.mrf.mxu0  ;;  %v1715_v7 = vadd.f32 %v8001_v13, %v1472_v0  ;;  %v1473_v24 = vadd.f32 %v9001_v52, %v1231_v30  ;;  %v1957_v2 = vadd.f32 %v9002_v17, %v1714_v28  ;;  %v9004_v13 = vld [vmem:[#allocation8_spill] sm:$0xff]  ;;  %v1235_v36 = vadd.f32 %v9005_v19, %v992_v1  ;;  %v9007_v31 = vld [vmem:[#allocation27_spill] sm:$0xff]  ;;  %v9009_v35 = vld [vmem:[#allocation18_spill] sm:$0xff] }
 0x15d   :  { %v8065_v40 = vpop.f32.mrf.mxu1  ;;  %v2197_v50 = vadd.f32 %v2146_v47, %v1954_v45  ;;  %6856 = vmatpush3.bf16.msra.mxu1 %v7286_v6  ;;  %v1234_v61 = vadd.f32 %v9004_v13, %v9003_v3  ;;  %v1475_v9 = vadd.f32 %v9006_v55, %v1233_v16  ;;  %v2199_v57 = vadd.f32 %v8047_v14, %v1956_v60  ;;  %v9015_v16 = vld [vmem:[#allocation9_spill] sm:$0xff]  ;;  %v9016_v52 = vld [vmem:[#allocation23_spill] sm:$0xff]  ;;  %v9019_v19 = vld [vmem:[#allocation16_spill] sm:$0xff] }
 0x15e   :  { %v8050_v23 = vpop.f32.mrf.mxu0  ;;  %6857 = vmatprep.subr.bf16.mxu1 %v7287_v41  ;;  %v1717_v29 = vadd.f32 %v9009_v35, %v9008_v8  ;;  %v9017_v17 = vld [vmem:[#allocation17_spill] sm:$0xff]  ;;  %v9022_v35 = vld [vmem:[#allocation26_spill] sm:$0xff] }
 0x15f   :  { %v8073_v21 = vpop.f32.mrf.mxu1 }
 0x160   :  { %v8055_v58 = vpop.f32.mrf.mxu0 }
 0x161   :  { %v2162_v26 = vpop.f32.mrf.mxu1  ;;  %6858 = vmatpush3.bf16.msra.mxu1 %v7287_v41 }
 0x162   :  { %v6837_v53 = vpop.f32.mrf.mxu0 }
 0x163   :  { %v8095_v27 = vpop.f32.mrf.mxu1  ;;  %v2438_v34 = vadd.f32 %v6837_v53, %v2195_v48 }
 0x164   :  { %v2373_v39 = vpop.f32.mrf.mxu0 }
 0x165   :  { %v2436_v37 = vadd.f32 %v2373_v39, %v2193_v20  ;;  %v2165_v42 = vpop.f32.mrf.mxu1  ;;  %v8116_v47 = vadd.f32 %v8092_v38, %v2438_v34  ;;  %v1958_v39 = vadd.f32 %v9007_v31, %v1715_v7  ;;  %v2198_v20 = vadd.f32 %v8065_v40, %v1955_v43  ;;  %v7288_v40 = vld [vmem:[%s8963_s6 + $0x38] sm:$0xff]  }
 0x166   :  { %v6838_v15 = vpop.f32.mrf.mxu0  ;;  %6883 = vmatprep.subr.bf16.mxu0 %v7288_v40 }
 0x167   :  { %v8105_v46 = vadd.f32 %v8092_v38, %v2436_v37  ;;  %v2439_v18 = vadd.f32 %v6838_v15, %v2196_v11  ;;  %v9010_v15 = vld [vmem:[#allocation20_spill] sm:$0xff]  ;;  %v2200_v37 = vadd.f32 %v8059_v32, %v1957_v2  ;;  %v8139_v12 = vpop.f32.mrf.mxu1  ;;  %v7289_v11 = vld [vmem:[%s8963_s6 + $0x58] sm:$0xff]   ;;  %v9012_v32 = vld [vmem:[#allocation19_spill] sm:$0xff]  ;;  %v2201_v30 = vadd.f32 %v2162_v26, %v1958_v39  ;;  %6884 = vmatpush3.bf16.msra.mxu0 %v7288_v40 }
 0x168   :  { %v2376_v25 = vpop.f32.mrf.mxu0  ;;  %v1716_v48 = vadd.f32 %v9010_v15, %v1473_v24  ;;  %v1718_v34 = vadd.f32 %v9012_v32, %v1475_v9  ;;  %6859 = vmatprep.subr.bf16.mxu1 %v7289_v11  ;;  %v1477_v2 = vadd.f32 %v9017_v17, %v1235_v36  ;;  %v9018_v26 = vld [vmem:[#allocation28_spill] sm:$0xff]  ;;  %v7295_v40 = vld [vmem:[%s8963_s6 + $0x40] sm:$0xff]  }
 0x169   :  { %v2437_v44 = vadd.f32 %v2376_v25, %v2194_v10  ;;  %v8131_v54 = vadd.f32 %v8092_v38, %v2439_v18  ;;  %v9011_v10 = vld [vmem:[#allocation15_spill] sm:$0xff]  ;;  %6860 = vmatpush3.bf16.msra.mxu1 %v7289_v11 }
 0x16a   :  { %v6841_v59 = vpop.f32.mrf.mxu0  ;;  %v1476_v45 = vadd.f32 %v9011_v10, %v1234_v61  ;;  %v1959_v28 = vadd.f32 %v8032_v51, %v1716_v48  ;;  %v9014_v18 = vld [vmem:[#allocation7_spill] sm:$0xff]  ;;  %v2178_v51 = vpop.f32.mrf.mxu1  ;;  %v7291_v61 = vld [vmem:[%s8963_s6 + $0x50] sm:$0xff]  }
 0x16b   :  { %v8108_v5 = vadd.f32 %v8092_v38, %v2437_v44  ;;  %v2442_v4 = vadd.f32 %v6841_v59, %v2199_v57  ;;  %v9013_v44 = vld [vmem:[#allocation25_spill] sm:$0xff]  ;;  %v1237_v7 = vadd.f32 %v9015_v16, %v9014_v18  ;;  %6861 = vmatprep.subr.bf16.mxu1 %v7291_v61 }
 0x16c   :  { %v2389_v22 = vpop.f32.mrf.mxu0  ;;  %v1960_v6 = vadd.f32 %v9013_v44, %v1717_v29  ;;  %v1719_v24 = vadd.f32 %v9016_v52, %v1476_v45  ;;  %v2202_v39 = vadd.f32 %v2165_v42, %v1959_v28  ;;  %v1720_v29 = vadd.f32 %v9022_v35, %v1477_v2  ;;  %v7297_v2 = vld [vmem:[%s8963_s6 + $0x18] sm:$0xff]  }
 0x16d   :  { %v2476_v33 = vadd.f32 %v8108_v5, %v8105_v46  ;;  %v2440_v53 = vadd.f32 %v2389_v22, %v2197_v50  ;;  %v1961_v22 = vadd.f32 %v9018_v26, %v1718_v34  ;;  %v8167_v41 = vadd.f32 %v8092_v38, %v2442_v4  ;;  %6862 = vmatpush3.bf16.msra.mxu1 %v7291_v61  ;;  %v9023_v4 = vld [vmem:[#allocation24_spill] sm:$0xff] }
 0x16e   :  { %v6842_v62 = vpop.f32.mrf.mxu0  ;;  %v1479_v36 = vadd.f32 %v9019_v19, %v1237_v7  ;;  %v2203_v55 = vadd.f32 %v8073_v21, %v1960_v6  ;;  %v1962_v9 = vadd.f32 %v8042_v49, %v1719_v24  ;;  %v6818_v21 = vpop.f32.mrf.mxu1  ;;  %v7292_v49 = vld [vmem:[%s8963_s6 + $0x28] sm:$0xff]   ;;  %v1963_v32 = vadd.f32 %v8055_v58, %v1720_v29  ;;  %v8237_v29 = vld [vmem:[%s8963_s6 + $0xf8] sm:$0xff]  }
 0x16f   :  { %v2477_v56 = vadd.f32 %v2476_v33, %v8116_v47  ;;  %v8145_v0 = vadd.f32 %v8092_v38, %v2440_v53  ;;  %v2443_v59 = vadd.f32 %v6842_v62, %v2200_v37  ;;  %v7290_v53 = vld [vmem:[%s8963_s6 + $0x30] sm:$0xff]   ;;  %v2204_v15 = vadd.f32 %v8095_v27, %v1961_v22  ;;  %v7294_v27 = vld [vmem:[%s8963_s6 + $0x20] sm:$0xff]  }
 0x170   :  { %v2392_v14 = vpop.f32.mrf.mxu0  ;;  %6885 = vmatprep.subr.bf16.mxu0 %v7290_v53  ;;  %v2205_v11 = vadd.f32 %v2178_v51, %v1962_v9 }
 0x171   :  { %v2478_v25 = vadd.f32 %v2477_v56, %v8131_v54  ;;  %v2441_v1 = vadd.f32 %v2392_v14, %v2198_v20  ;;  %v8177_v62 = vadd.f32 %v8092_v38, %v2443_v59  ;;  %6886 = vmatpush3.bf16.msra.mxu0 %v7290_v53  ;;  %v9020_v20 = vld [vmem:[#allocation14_spill] sm:$0xff]  ;;  %v9021_v56 = vld [vmem:[#allocation21_spill] sm:$0xff]  ;;  %v7293_v14 = vld [vmem:[%s8963_s6 + $0x48] sm:$0xff]  }
 0x172   :  { %v6845_v60 = vpop.f32.mrf.mxu0  ;;  %v1721_v8 = vadd.f32 %v9021_v56, %v9020_v20  ;;  %6887 = vmatprep.subr.bf16.mxu0 %v7292_v49  ;;  %6863 = vmatprep.subr.bf16.mxu1 %v7293_v14  ;;  %v7301_v53 = vld [vmem:[%s8963_s6 + $0x10] sm:$0xff]  }
 0x173   :  { %v2479_v43 = vadd.f32 %v2478_v25, %v8145_v0  ;;  %v8156_v50 = vadd.f32 %v8092_v38, %v2441_v1  ;;  %v2446_v42 = vadd.f32 %v6845_v60, %v2203_v55  ;;  %v1722_v25 = vadd.f32 %v9023_v4, %v1479_v36  ;;  %v2181_v60 = vpop.f32.mrf.mxu1  ;;  %6864 = vmatpush3.bf16.msra.mxu1 %v7293_v14  ;;  %v7303_v55 = vld [vmem:[%s8963_s6 + $0x8] sm:$0xff]  }
 0x174   :  { %v2405_v33 = vpop.f32.mrf.mxu0  ;;  %v1964_v1 = vadd.f32 %v8036_v63, %v1721_v8  ;;  %6865 = vmatprep.subr.bf16.mxu1 %v7295_v40  ;;  %v2206_v7 = vadd.f32 %v2181_v60, %v1963_v32 }
 0x175   :  { %v2480_v3 = vadd.f32 %v2479_v43, %v8156_v50  ;;  %v2444_v13 = vadd.f32 %v2405_v33, %v2201_v30  ;;  %6888 = vmatpush3.bf16.msra.mxu0 %v7292_v49  ;;  %v1965_v28 = vadd.f32 %v8050_v23, %v1722_v25  ;;  %v2468_v63 = vadd.f32 %v8092_v38, %v2446_v42 }
 0x176   :  { %v6846_v31 = vpop.f32.mrf.mxu0  ;;  %6889 = vmatprep.subr.bf16.mxu0 %v7294_v27  ;;  %v2207_v16 = vadd.f32 %v8139_v12, %v1964_v1  ;;  %v8219_v12 = vld [vmem:[%s8963_s6 + $0xb8] sm:$0xff]  }
 0x177   :  { %v2481_v57 = vadd.f32 %v2480_v3, %v8167_v41  ;;  %v8188_v10 = vadd.f32 %v8092_v38, %v2444_v13  ;;  %v2447_v6 = vadd.f32 %v6846_v31, %v2204_v15  ;;  %v2208_v17 = vadd.f32 %v6818_v21, %v1965_v28  ;;  %6866 = vmatpush3.bf16.msra.mxu1 %v7295_v40 }
 0x178   :  { %v2408_v48 = vpop.f32.mrf.mxu0  ;;  %6915 = vmatprep.subr.bf16.mxu1 %v8219_v12 }
 0x179   :  { %v2482_v45 = vadd.f32 %v2481_v57, %v8177_v62  ;;  %v2445_v37 = vadd.f32 %v2408_v48, %v2202_v39  ;;  %v2469_v52 = vadd.f32 %v8092_v38, %v2447_v6  ;;  %6890 = vmatpush3.bf16.msra.mxu0 %v7294_v27  ;;  %v7307_v57 = vld [vmem:[%s8963_s6] sm:$0xff]  }
 0x17a   :  { %v6849_v34 = vpop.f32.mrf.mxu0  ;;  %6891 = vmatprep.subr.bf16.mxu0 %v7297_v2 }
 0x17b   :  { %v2483_v44 = vadd.f32 %v2482_v45, %v8188_v10  ;;  %v8205_v30 = vadd.f32 %v8092_v38, %v2445_v37  ;;  %v2450_v26 = vadd.f32 %v6849_v34, %v2207_v16 }
 0x17c   :  { %v2421_v43 = vpop.f32.mrf.mxu0 }
 0x17d   :  { %v2484_v58 = vadd.f32 %v2483_v44, %v8205_v30  ;;  %v2448_v59 = vadd.f32 %v2421_v43, %v2205_v11  ;;  %6892 = vmatpush3.bf16.msra.mxu0 %v7297_v2  ;;  %v2472_v19 = vadd.f32 %v8092_v38, %v2450_v26 }
 0x17e   :  { %v6850_v18 = vpop.f32.mrf.mxu0  ;;  %6893 = vmatprep.subr.bf16.mxu0 %v7301_v53 }
 0x17f   :  { %v2485_v24 = vadd.f32 %v2484_v58, %v2468_v63  ;;  %v2470_v22 = vadd.f32 %v8092_v38, %v2448_v59  ;;  %v2451_v13 = vadd.f32 %v6850_v18, %v2208_v17 }
 0x180   :  { %v2424_v23 = vpop.f32.mrf.mxu0 }
 0x181   :  { %v2486_v51 = vadd.f32 %v2485_v24, %v2469_v52  ;;  %v2449_v33 = vadd.f32 %v2424_v23, %v2206_v7  ;;  %v2473_v9 = vadd.f32 %v8092_v38, %v2451_v13  ;;  %6894 = vmatpush3.bf16.msra.mxu0 %v7301_v53 }
 0x182   :  { %6895 = vmatprep.subr.bf16.mxu0 %v7303_v55 }
 0x183   :  { %v2487_v3 = vadd.f32 %v2486_v51, %v2470_v22  ;;  %v2471_v61 = vadd.f32 %v8092_v38, %v2449_v33 }
 0x185   :  { %v2488_v36 = vadd.f32 %v2487_v3, %v2471_v61  ;;  %6896 = vmatpush3.bf16.msra.mxu0 %v7303_v55 }
 0x186   :  { %6897 = vmatprep.subr.bf16.mxu0 %v7307_v57 }
 0x187   :  { %v2489_v31 = vadd.f32 %v2488_v36, %v2472_v19 }
 0x189   :  { %v2490_v39 = vadd.f32 %v2489_v31, %v2473_v9  ;;  %6898 = vmatpush3.bf16.msra.mxu0 %v7307_v57 }
 0x18a   :  { %6947 = vmatprep.subr.bf16.mxu0 %v8237_v29 }
 0x18b   :  { %v2491_v20 = vrot.slane %v2490_v39, 4 }
 0x18d   :  { %v2492_v56 = vadd.f32 %v2491_v20, %v2490_v39 }
 0x18f   :  { %v2493_v8 = vrot.slane %v2492_v56, 2 }
 0x191   :  { %v2494_v35 = vadd.f32 %v2493_v8, %v2492_v56 }
 0x193   :  { %v2495_v38 = vrot.slane %v2494_v35, 1 }
 0x195   :  { %v2496_v15 = vadd.f32 %v2495_v38, %v2494_v35 }
 0x197   :  { %v2498_v21 = vmul.f32 0.0078125, %v2496_v15  ;;  %v5590_v15 = vld [vmem:[%s8965_s3] ss:$0 sm:$0xff] }
 0x199   :  { %v2499_v48 = vsub.f32 %v8105_v46, %v2498_v21  ;;  %v2500_v49 = vsub.f32 %v8108_v5, %v2498_v21  ;;  %v2501_v42 = vsub.f32 %v8116_v47, %v2498_v21  ;;  %v2502_v45 = vsub.f32 %v8131_v54, %v2498_v21 }
 0x19a   :  { %v2503_v37 = vsub.f32 %v8145_v0, %v2498_v21  ;;  %v2505_v14 = vsub.f32 %v8167_v41, %v2498_v21  ;;  %v2506_v27 = vsub.f32 %v8177_v62, %v2498_v21  ;;  %v2507_v40 = vsub.f32 %v8188_v10, %v2498_v21 }
 0x19b   :  { %v2509_v4 = vsub.f32 %v2468_v63, %v2498_v21  ;;  %v2510_v25 = vsub.f32 %v2469_v52, %v2498_v21  ;;  %v2511_v1 = vsub.f32 %v2470_v22, %v2498_v21  ;;  %v8248_v11 = vsub.f32 %v2472_v19, %v2498_v21 }
 0x19c   :  { %v8250_v46 = vsub.f32 %v2473_v9, %v2498_v21  ;;  %v2515_v5 = vmul.f32 %v2499_v48, %v2499_v48  ;;  %v2516_v32 = vmul.f32 %v2500_v49, %v2500_v49  ;;  %v2517_v47 = vmul.f32 %v2501_v42, %v2501_v42 }
 0x19d   :  { %v2504_v54 = vsub.f32 %v8156_v50, %v2498_v21  ;;  %v2518_v0 = vmul.f32 %v2502_v45, %v2502_v45  ;;  %v2519_v41 = vmul.f32 %v2503_v37, %v2503_v37  ;;  %v2521_v10 = vmul.f32 %v2505_v14, %v2505_v14 }
 0x19e   :  { %v2531_v34 = vadd.f32 %v2516_v32, %v2515_v5  ;;  %v2508_v43 = vsub.f32 %v8205_v30, %v2498_v21  ;;  %v2522_v63 = vmul.f32 %v2506_v27, %v2506_v27  ;;  %v2523_v59 = vmul.f32 %v2507_v40, %v2507_v40 }
 0x19f   :  { %v2520_v62 = vmul.f32 %v2504_v54, %v2504_v54  ;;  %v2525_v52 = vmul.f32 %v2509_v4, %v2509_v4  ;;  %v2512_v17 = vsub.f32 %v2471_v61, %v2498_v21  ;;  %v2526_v50 = vmul.f32 %v2510_v25, %v2510_v25 }
 0x1a0   :  { %v2532_v44 = vadd.f32 %v2531_v34, %v2517_v47  ;;  %v2524_v16 = vmul.f32 %v2508_v43, %v2508_v43  ;;  %v2527_v2 = vmul.f32 %v2511_v1, %v2511_v1  ;;  %v2529_v33 = vmul.f32 %v8248_v11, %v8248_v11 }
 0x1a1   :  { %v2528_v22 = vmul.f32 %v2512_v17, %v2512_v17  ;;  %v2530_v30 = vmul.f32 %v8250_v46, %v8250_v46 }
 0x1a2   :  { %v2533_v6 = vadd.f32 %v2532_v44, %v2518_v0 }
 0x1a4   :  { %v2534_v28 = vadd.f32 %v2533_v6, %v2519_v41 }
 0x1a6   :  { %v2535_v60 = vadd.f32 %v2534_v28, %v2520_v62 }
 0x1a8   :  { %v2536_v58 = vadd.f32 %v2535_v60, %v2521_v10 }
 0x1aa   :  { %v2537_v18 = vadd.f32 %v2536_v58, %v2522_v63 }
 0x1ac   :  { %v2538_v7 = vadd.f32 %v2537_v18, %v2523_v59 }
 0x1ae   :  { %v2539_v24 = vadd.f32 %v2538_v7, %v2524_v16 }
 0x1b0   :  { %v2540_v23 = vadd.f32 %v2539_v24, %v2525_v52 }
 0x1b2   :  { %v2541_v26 = vadd.f32 %v2540_v23, %v2526_v50 }
 0x1b4   :  { %v2542_v51 = vadd.f32 %v2541_v26, %v2527_v2 }
 0x1b6   :  { %v2543_v53 = vadd.f32 %v2542_v51, %v2528_v22 }
 0x1b8   :  { %v2544_v3 = vadd.f32 %v2543_v53, %v2529_v33 }
 0x1ba   :  { %v2545_v13 = vadd.f32 %v2544_v3, %v2530_v30  ;;  %v5592_v30 = vld [vmem:[%s8967_s5] ss:$0 sm:$0xff] }
 0x1bc   :  { %v2546_v19 = vrot.slane %v2545_v13, 4 }
 0x1be   :  { %v2547_v36 = vadd.f32 %v2546_v19, %v2545_v13 }
 0x1c0   :  { %v2548_v55 = vrot.slane %v2547_v36, 2 }
 0x1c2   :  { %v2549_v9 = vadd.f32 %v2548_v55, %v2547_v36 }
 0x1c4   :  { %v2550_v61 = vrot.slane %v2549_v9, 1 }
 0x1c6   :  { %v2551_v31 = vadd.f32 %v2550_v61, %v2549_v9 }
 0x1c8   :  { %v2552_v39 = vmul.f32 0.0078125, %v2551_v31 }
 0x1ca   :  { %v2553_v57 = vadd.f32 1e-05, %v2552_v39 }
 0x1cc   :  { %7428 = vrsqrt.f32 %v2553_v57 }
 0x1d9   :  { %v7429_v20 = vpop.eup %7428 }
 0x1da   :  { %v2555_v56 = vmul.f32 %v7429_v20, %v2499_v48  ;;  %v2556_v8 = vmul.f32 %v7429_v20, %v2500_v49  ;;  %v2557_v35 = vmul.f32 %v7429_v20, %v2501_v42  ;;  %v2558_v38 = vmul.f32 %v7429_v20, %v2502_v45 }
 0x1db   :  { %v2559_v21 = vmul.f32 %v7429_v20, %v2503_v37  ;;  %v2560_v5 = vmul.f32 %v7429_v20, %v2504_v54  ;;  %v2561_v32 = vmul.f32 %v7429_v20, %v2505_v14  ;;  %v2562_v47 = vmul.f32 %v7429_v20, %v2506_v27  ;;  %v5591_v37 = vld [vmem:[%s8966_s4] ss:$0 sm:$0xff] }
 0x1dc   :  { %v2563_v34 = vmul.f32 %v7429_v20, %v2507_v40  ;;  %v2564_v0 = vmul.f32 %v7429_v20, %v2508_v43  ;;  %v2565_v44 = vmul.f32 %v7429_v20, %v2509_v4  ;;  %v2566_v41 = vmul.f32 %v7429_v20, %v2510_v25 }
 0x1dd   :  { %v2567_v6 = vmul.f32 %v7429_v20, %v2511_v1  ;;  %v2568_v62 = vmul.f32 %v7429_v20, %v2512_v17  ;;  %v2569_v28 = vmul.f32 %v7429_v20, %v8248_v11  ;;  %v2570_v48 = vmul.f32 %v7429_v20, %v8250_v46 }
 0x1de   :  { %v2577_v49 = vmul.f32 %v5590_v15, %v2555_v56  ;;  %v2578_v42 = vmul.f32 %v5590_v15, %v2556_v8  ;;  %v2579_v45 = vmul.f32 %v5590_v15, %v2557_v35  ;;  %v2580_v10 = vmul.f32 %v5590_v15, %v2558_v38 }
 0x1df   :  { %v2581_v14 = vmul.f32 %v5590_v15, %v2559_v21  ;;  %v2582_v27 = vmul.f32 %v5590_v15, %v2560_v5  ;;  %v2583_v40 = vmul.f32 %v5590_v15, %v2561_v32  ;;  %v2584_v54 = vmul.f32 %v5590_v15, %v2562_v47 }
 0x1e0   :  { %v2585_v4 = vmul.f32 %v5590_v15, %v2563_v34  ;;  %v2586_v25 = vmul.f32 %v5590_v15, %v2564_v0  ;;  %v2587_v1 = vmul.f32 %v5590_v15, %v2565_v44  ;;  %v2588_v60 = vmul.f32 %v5590_v15, %v2566_v41 }
 0x1e1   :  { %v2589_v43 = vmul.f32 %v5590_v15, %v2567_v6  ;;  %v2590_v11 = vmul.f32 %v5590_v15, %v2568_v62  ;;  %v2591_v63 = vmul.f32 %v5590_v15, %v2569_v28  ;;  %v2592_v46 = vmul.f32 %v5590_v15, %v2570_v48 }
 0x1e2   :  { %v2599_v58 = vadd.f32 %v5591_v37, %v2577_v49  ;;  %v2600_v59 = vadd.f32 %v5591_v37, %v2578_v42  ;;  %v2601_v18 = vadd.f32 %v5591_v37, %v2579_v45  ;;  %v2602_v16 = vadd.f32 %v5591_v37, %v2580_v10 }
 0x1e3   :  { %v2603_v7 = vadd.f32 %v5591_v37, %v2581_v14  ;;  %v2604_v52 = vadd.f32 %v5591_v37, %v2582_v27  ;;  %v2605_v24 = vadd.f32 %v5591_v37, %v2583_v40  ;;  %v2606_v17 = vadd.f32 %v5591_v37, %v2584_v54 }
 0x1e4   :  { %v2607_v50 = vadd.f32 %v5591_v37, %v2585_v4  ;;  %v2608_v23 = vadd.f32 %v5591_v37, %v2586_v25  ;;  %v2609_v2 = vadd.f32 %v5591_v37, %v2587_v1  ;;  %v2610_v26 = vadd.f32 %v5591_v37, %v2588_v60 }
 0x1e5   :  { %v2611_v22 = vadd.f32 %v5591_v37, %v2589_v43  ;;  %v2612_v51 = vadd.f32 %v5591_v37, %v2590_v11  ;;  %v2613_v33 = vadd.f32 %v5591_v37, %v2591_v63  ;;  %v2614_v53 = vadd.f32 %v5591_v37, %v2592_v46 }
 0x1e6   :  { %vm2616_vm2 = vcmp.ge.f32.partialorder %v2599_v58, 0.0  ;;  %vm2617_vm3 = vcmp.ge.f32.partialorder %v2600_v59, 0.0  ;;  %vm2618_vm4 = vcmp.ge.f32.partialorder %v2601_v18, 0.0  ;;  %vm2619_vm5 = vcmp.ge.f32.partialorder %v2602_v16, 0.0 }
 0x1e7   :  { %vm2620_vm6 = vcmp.ge.f32.partialorder %v2603_v7, 0.0  ;;  %vm2621_vm7 = vcmp.ge.f32.partialorder %v2604_v52, 0.0  ;;  %vm2622_vm8 = vcmp.ge.f32.partialorder %v2605_v24, 0.0  ;;  %vm2623_vm9 = vcmp.ge.f32.partialorder %v2606_v17, 0.0 }
 0x1e8   :  { %vm2624_vm10 = vcmp.ge.f32.partialorder %v2607_v50, 0.0  ;;  %vm2625_vm11 = vcmp.ge.f32.partialorder %v2608_v23, 0.0  ;;  %vm2626_vm12 = vcmp.ge.f32.partialorder %v2609_v2, 0.0  ;;  %vm2627_vm13 = vcmp.ge.f32.partialorder %v2610_v26, 0.0 }
 0x1e9   :  { %vm2628_vm14 = vcmp.ge.f32.partialorder %v2611_v22, 0.0  ;;  %vm2629_vm15 = vcmp.ge.f32.partialorder %v2612_v51, 0.0  ;;  %vm2630_vm1 = vcmp.ge.f32.partialorder %v2613_v33, 0.0  ;;  %vm2631_vm0 = vcmp.ge.f32.partialorder %v2614_v53, 0.0 }
 0x1ea   :  { %v2638_v3 = vmul.f32 %v5592_v30, %v2599_v58  ;;  %v2639_v13 = vmul.f32 %v5592_v30, %v2600_v59  ;;  %v2640_v19 = vmul.f32 %v5592_v30, %v2601_v18  ;;  %v2641_v36 = vmul.f32 %v5592_v30, %v2602_v16 }
 0x1eb   :  { %v2642_v55 = vmul.f32 %v5592_v30, %v2603_v7  ;;  %v2643_v9 = vmul.f32 %v5592_v30, %v2604_v52  ;;  %v2644_v61 = vmul.f32 %v5592_v30, %v2605_v24  ;;  %v2645_v31 = vmul.f32 %v5592_v30, %v2606_v17 }
 0x1ec   :  { %v2646_v39 = vmul.f32 %v5592_v30, %v2607_v50  ;;  %v2647_v57 = vmul.f32 %v5592_v30, %v2608_v23  ;;  %v2648_v20 = vmul.f32 %v5592_v30, %v2609_v2  ;;  %v2649_v56 = vmul.f32 %v5592_v30, %v2610_v26 }
 0x1ed   :  { %v2650_v8 = vmul.f32 %v5592_v30, %v2611_v22  ;;  %v2651_v35 = vmul.f32 %v5592_v30, %v2612_v51  ;;  %v2652_v38 = vmul.f32 %v5592_v30, %v2613_v33  ;;  %v2653_v15 = vmul.f32 %v5592_v30, %v2614_v53 }
 0x1ee   :  { %v2654_v21 = vsel %vm2616_vm2, %v2599_v58, %v2638_v3  ;;  %v8271_v5 = vsel %vm2617_vm3, %v2600_v59, %v2639_v13  ;;  %v8274_v32 = vsel %vm2618_vm4, %v2601_v18, %v2640_v19  ;;  %v8277_v47 = vsel %vm2619_vm5, %v2602_v16, %v2641_v36  ;;  %v9024_v16 = vld [vmem:[#allocation5_spill] sm:$0xff] }
 0x1ef   :  { %v8280_v34 = vsel %vm2620_vm6, %v2603_v7, %v2642_v55  ;;  %v8283_v0 = vsel %vm2621_vm7, %v2604_v52, %v2643_v9  ;;  %v8286_v44 = vsel %vm2622_vm8, %v2605_v24, %v2644_v61  ;;  %v2661_v41 = vsel %vm2623_vm9, %v2606_v17, %v2645_v31  ;;  %v7305_v31 = vld [vmem:[%s8963_s6 + $0xa8] sm:$0xff]  }
 0x1f0   :  { %v2662_v6 = vsel %vm2624_vm10, %v2607_v50, %v2646_v39  ;;  %v8291_v62 = vsel %vm2625_vm11, %v2608_v23, %v2647_v57  ;;  %v8294_v28 = vsel %vm2626_vm12, %v2609_v2, %v2648_v20  ;;  %v8297_v48 = vsel %vm2627_vm13, %v2610_v26, %v2649_v56  ;;  %v7302_v50 = vld [vmem:[%s8963_s6 + $0xb0] sm:$0xff]  }
 0x1f1   :  { %v8300_v49 = vsel %vm2628_vm14, %v2611_v22, %v2650_v8  ;;  %v8303_v42 = vsel %vm2629_vm15, %v2612_v51, %v2651_v35  ;;  %v8306_v45 = vsel %vm2630_vm1, %v2613_v33, %v2652_v38  ;;  %v2669_v10 = vsel %vm2631_vm0, %v2614_v53, %v2653_v15  ;;  %v7308_v8 = vld [vmem:[%s8963_s6 + $0xa0] sm:$0xff]  }
 0x1f2   :  { %v2670_v37 = vpack.c.bf16 %v2654_v21, %v2654_v21  ;;  %v2677_v14 = vpack.c.bf16 %v2661_v41, %v2661_v41  ;;  %v2678_v27 = vpack.c.bf16 %v2662_v6, %v2662_v6  ;;  %v2685_v40 = vpack.c.bf16 %v2669_v10, %v2669_v10 }
 0x1f3   :  { %v6042_v54 = vpack.c.bf16 %v8274_v32, %v8271_v5  ;;  %v6047_v4 = vpack.c.bf16 %v8280_v34, %v8277_v47  ;;  %v6052_v25 = vpack.c.bf16 %v8286_v44, %v8283_v0  ;;  %v6057_v1 = vpack.c.bf16 %v8294_v28, %v8291_v62 }
 0x1f4   :  { %2693 = vst [vmem:[#allocation2 + $0x20] sm:$0xf] %v2677_v14  ;;  %v6062_v60 = vpack.c.bf16 %v8300_v49, %v8297_v48  ;;  %v6067_v43 = vpack.c.bf16 %v8306_v45, %v8303_v42  ;;  %2701 = vst [vmem:[#allocation2 + $0x48] sm:$0xf] %v2685_v40  ;;  %v2745_v11 = vrot.slane %v8271_v5, 7  ;;  %v2746_v63 = vrot.slane %v8274_v32, 7 }
 0x1f5   :  { %2686 = vst [vmem:[#allocation2 + $0x4] sm:$0xf] %v2670_v37  ;;  %2694 = vst [vmem:[#allocation2 + $0x2c] sm:$0xf] %v2678_v27  ;;  %v2747_v46 = vrot.slane %v8277_v47, 7  ;;  %v2748_v58 = vrot.slane %v8280_v34, 7 }
 0x1f6   :  { %6242 = vst [vmem:[#allocation2 + $0x8] sm:$0xff] %v6042_v54   ;;  %6243 = vst [vmem:[#allocation2 + $0x10] sm:$0xff] %v6047_v4   ;;  %v2749_v59 = vrot.slane %v8283_v0, 7  ;;  %v2750_v18 = vrot.slane %v8286_v44, 7  ;;  %vm9025_vm0 = vcmp.eq.s32.totalorder %v9024_v16, 0  ;;  %v2755_v53 = vrot.slane %v8291_v62, 7 }
 0x1f7   :  { %6244 = vst [vmem:[#allocation2 + $0x18] sm:$0xff] %v6052_v25   ;;  %6245 = vst [vmem:[#allocation2 + $0x30] sm:$0xff] %v6057_v1   ;;  %v2765_v7 = vsel %vm9025_vm0, 0.0, %v2745_v11  ;;  %v2756_v3 = vrot.slane %v8294_v28, 7  ;;  %v2757_v61 = vrot.slane %v8297_v48, 7  ;;  %v2758_v20 = vrot.slane %v8300_v49, 7 }
 0x1f8   :  { %6246 = vst [vmem:[#allocation2 + $0x38] sm:$0xff] %v6062_v60   ;;  %6247 = vst [vmem:[#allocation2 + $0x40] sm:$0xff] %v6067_v43   ;;  %v2785_v15 = vrot.slane %v8271_v5, 1  ;;  %vm9036_vm11 = vcmp.eq.s32.totalorder %v9024_v16, 7  ;;  %v7314_v60 = vld [vmem:[%s8963_s6 + $0x98] sm:$0xff]   ;;  %v7354_v16 = vld [vmem:[%s8963_s6 + $0x108] sm:$0xff]  }
 0x1f9   :  { %vm9026_vm1 = vmmov %vm9025_vm0 }
 0x1fa   :  { %v2766_v52 = vsel %vm9026_vm1, 0.0, %v2746_v63  ;;  %vm9027_vm2 = vmmov %vm9025_vm0  ;;  %v2786_v63 = vrot.slane %v8274_v32, 1  ;;  %v7317_v32 = vld [vmem:[%s8963_s6 + $0x90] sm:$0xff]  }
 0x1fb   :  { %v2767_v24 = vsel %vm9027_vm2, 0.0, %v2747_v46  ;;  %vm9028_vm3 = vmmov %vm9025_vm0  ;;  %v6117_v23 = vpack.c.bf16 %v2766_v52, %v2765_v7 }
 0x1fc   :  { %v2768_v17 = vsel %vm9028_vm3, 0.0, %v2748_v58  ;;  %vm9029_vm4 = vmmov %vm9025_vm0  ;;  %v7296_v51 = vld [vmem:[#allocation2] sm:$0xff]   ;;  %v6252_v38 = vld [vmem:[#allocation2 + $0x28] sm:$0xff]  }
 0x1fd   :  { %v6122_v2 = vpack.c.bf16 %v2768_v17, %v2767_v24  ;;  %v2769_v26 = vsel %vm9029_vm4, 0.0, %v2749_v59  ;;  %vm9030_vm5 = vmmov %vm9025_vm0  ;;  %v7298_v30 = vld [vmem:[#allocation2 + $0x8] sm:$0xff]   ;;  %6257 = vst [vmem:[#allocation3 + $0x8] sm:$0xff] %v6117_v23   ;;  %6867 = vmatprep.mubr.bf16.mxu1 %v7296_v51  ;;  %v7300_v13 = vld [vmem:[#allocation2 + $0x10] sm:$0xff]   ;;  %v6091_v21 = vunpack.c.l.bf16 %v6252_v38  ;;  %v6092_v41 = vunpack.c.h.bf16 %v6252_v38 }
 0x1fe   :  { %v2770_v22 = vsel %vm9030_vm5, 0.0, %v2750_v18  ;;  %vm9031_vm6 = vmmov %vm9025_vm0  ;;  %6868 = vmatmul.mubr.bf16.vlgmr.msra.gmra.mxu1 %v7298_v30  ;;  %v6070_v55 = vld [vmem:[#allocation2] sm:$0xff]   ;;  %v7304_v56 = vld [vmem:[#allocation2 + $0x18] sm:$0xff]   ;;  %v2787_v24 = vrot.slane %v8277_v47, 1  ;;  %v2788_v23 = vrot.slane %v8280_v34, 1 }
 0x1ff   :  { %v6127_v33 = vpack.c.bf16 %v2770_v22, %v2769_v26  ;;  %6258 = vst [vmem:[#allocation3 + $0x10] sm:$0xff] %v6122_v2   ;;  %v2775_v19 = vsel %vm9031_vm6, 0.0, %v2755_v53  ;;  %vm9032_vm7 = vmmov %vm9025_vm0  ;;  %6871 = vmatprep.mubr.bf16.mxu1 %v7300_v13  ;;  %6916 = vmatpush3.bf16.msra.mxu1 %v8219_v12  ;;  %v6071_v39 = vunpack.c.l.bf16 %v6070_v55  ;;  %v6072_v57 = vunpack.c.h.bf16 %v6070_v55  ;;  %v7306_v27 = vld [vmem:[#allocation2 + $0x28] sm:$0xff]   ;;  %v7312_v17 = vld [vmem:[#allocation2 + $0x30] sm:$0xff]  }
 0x200   :  { %v2776_v36 = vsel %vm9032_vm7, 0.0, %v2756_v3  ;;  %6917 = vmatprep.subr.bf16.mxu1 %v7302_v50  ;;  %vm9033_vm8 = vmmov %vm9025_vm0  ;;  %v2753_v54 = vrot.slane %v6091_v21, 7  ;;  %v2754_v4 = vrot.slane %v6092_v41, 7  ;;  %v2759_v2 = vrot.slane %v8303_v42, 7  ;;  %v8389_v22 = vld [vmem:[#allocation2 + $0x20] sm:$0xff]   ;;  %v7315_v51 = vld [vmem:[#allocation2 + $0x38] sm:$0xff]  }
 0x201   :  { %6259 = vst [vmem:[#allocation3 + $0x18] sm:$0xff] %v6127_v33   ;;  %v6142_v9 = vpack.c.bf16 %v2776_v36, %v2775_v19  ;;  %v2743_v12 = vrot.slane %v6071_v39, 7  ;;  %v2744_v35 = vrot.slane %v6072_v57, 7  ;;  %v2783_v6 = vrot.slane %v6071_v39, 1  ;;  %vm9034_vm9 = vmmov %vm9025_vm0  ;;  %v7316_v36 = vld [vmem:[%s8963_s6 + $0xf0] sm:$0xff]  }
 0x202   :  { %v2777_v10 = vsel %vm9033_vm8, 0.0, %v2757_v61  ;;  %vm9035_vm10 = vmmov %vm9025_vm0  ;;  %v2784_v5 = vrot.slane %v6072_v57, 1  ;;  %v2760_v26 = vrot.slane %v8306_v45, 7  ;;  %v2789_v33 = vrot.slane %v8283_v0, 1 }
 0x203   :  { %6262 = vst [vmem:[#allocation3 + $0x30] sm:$0xff] %v6142_v9   ;;  %6918 = vmatpush3.bf16.msra.mxu1 %v7302_v50  ;;  %v2763_v37 = vsel %vm9034_vm9, 0.0, %v2743_v12  ;;  %v2764_v14 = vsel %vm9035_vm10, 0.0, %v2744_v35  ;;  %v2803_v25 = vsel %vm9036_vm11, 0.0, %v2783_v6  ;;  %vm9037_vm12 = vmmov %vm9025_vm0  ;;  %v2790_v53 = vrot.slane %v8286_v44, 1 }
 0x204   :  { %6919 = vmatprep.subr.bf16.mxu1 %v7305_v31  ;;  %v6112_v40 = vpack.c.bf16 %v2764_v14, %v2763_v37  ;;  %v2778_v1 = vsel %vm9037_vm12, 0.0, %v2758_v20  ;;  %vm9038_vm13 = vmmov %vm9025_vm0  ;;  %v2793_v30 = vrot.slane %v6091_v21, 1  ;;  %v2779_v3 = vsel %vm9029_vm4, 0.0, %v2759_v2  ;;  %v7332_v2 = vld [vmem:[%s8963_s6 + $0xd0] sm:$0xff]  }
 0x205   :  { %v2773_v43 = vsel %vm9038_vm13, 0.0, %v2753_v54  ;;  %v6147_v11 = vpack.c.bf16 %v2778_v1, %v2777_v10  ;;  %vm9039_vm14 = vmmov %vm9036_vm11  ;;  %v2794_v19 = vrot.slane %v6092_v41, 1  ;;  %v6087_v20 = vunpack.c.l.bf16 %v8389_v22 }
 0x206   :  { %6872 = vmatmul.mubr.bf16.gmra.mxu1 %v7304_v56  ;;  %6113 = vst [vmem:[#allocation3] sm:$0xff] %v6112_v40   ;;  %v2805_v46 = vsel %vm9039_vm14, 0.0, %v2785_v15  ;;  %vm9040_vm15 = vmmov %vm9025_vm0  ;;  %v7310_v56 = vld [vmem:[#allocation3 + $0x8] sm:$0xff]   ;;  %v2795_v12 = vrot.slane %v8291_v62, 1  ;;  %v2796_v35 = vrot.slane %v8294_v28, 1  ;;  %v7313_v38 = vld [vmem:[#allocation3 + $0x10] sm:$0xff]   ;;  %v6088_v41 = vunpack.c.h.bf16 %v8389_v22 }
 0x207   :  { %6875 = vmatprep.mubr.bf16.mxu1 %v7306_v27  ;;  %6920 = vmatpush3.bf16.msra.mxu1 %v7305_v31  ;;  %v2774_v58 = vsel %vm9040_vm15, 0.0, %v2754_v4  ;;  %vm9041_vm0 = vmmov %vm9036_vm11  ;;  %6263 = vst [vmem:[#allocation3 + $0x38] sm:$0xff] %v6147_v11   ;;  %v7322_v31 = vld [vmem:[%s8963_s6 + $0x88] sm:$0xff]   ;;  %v2797_v21 = vrot.slane %v8297_v48, 1  ;;  %v2798_v62 = vrot.slane %v8300_v49, 1  ;;  %v2751_v37 = vrot.slane %v6087_v20, 7 }
 0x208   :  { %6921 = vmatprep.subr.bf16.mxu1 %v7308_v8  ;;  %v2804_v59 = vsel %vm9041_vm0, 0.0, %v2784_v5  ;;  %v6137_v18 = vpack.c.bf16 %v2774_v58, %v2773_v43  ;;  %vm9042_vm1 = vmmov %vm9041_vm0  ;;  %v7319_v28 = vld [vmem:[%s8963_s6 + $0xe8] sm:$0xff]   ;;  %v7325_v27 = vld [vmem:[%s8963_s6 + $0x80] sm:$0xff]   ;;  %v2752_v54 = vrot.slane %v6088_v41, 7  ;;  %v2800_v1 = vrot.slane %v8306_v45, 1 }
 0x209   :  { %v6162_v7 = vpack.c.bf16 %v2804_v59, %v2803_v25  ;;  %v2806_v52 = vsel %vm9042_vm1, 0.0, %v2786_v63  ;;  %vm9043_vm2 = vmmov %vm9041_vm0  ;;  %v7320_v40 = vld [vmem:[#allocation2 + $0x40] sm:$0xff]   ;;  %v2799_v25 = vrot.slane %v8303_v42, 1  ;;  %v7330_v43 = vld [vmem:[%s8963_s6 + $0x138] sm:$0xff]  }
 0x20a   :  { %v6167_v50 = vpack.c.bf16 %v2806_v52, %v2805_v46  ;;  %6261 = vst [vmem:[#allocation3 + $0x28] sm:$0xff] %v6137_v18   ;;  %v2807_v47 = vsel %vm9043_vm2, 0.0, %v2787_v24  ;;  %vm9044_vm3 = vmmov %vm9041_vm0  ;;  %v7324_v4 = vld [vmem:[%s8963_s6 + $0xe0] sm:$0xff]   ;;  %v7318_v63 = vld [vmem:[#allocation3 + $0x18] sm:$0xff]   ;;  %v2792_v24 = vrot.slane %v6088_v41, 1 }
 0x20b   :  { %6922 = vmatpush3.bf16.msra.mxu1 %v7308_v8  ;;  %6163 = vst [vmem:[#allocation4] sm:$0xff] %v6162_v7   ;;  %v2808_v34 = vsel %vm9044_vm3, 0.0, %v2788_v23  ;;  %vm9045_vm5 = vmmov %vm9029_vm4  ;;  %v2819_v42 = vsel %vm9041_vm0, 0.0, %v2799_v25  ;;  %v7327_v59 = vld [vmem:[%s8963_s6 + $0xd8] sm:$0xff]   ;;  %v2791_v7 = vrot.slane %v6087_v20, 1  ;;  %v7333_v52 = vld [vmem:[%s8963_s6 + $0x130] sm:$0xff]  }
 0x20c   :  { %6923 = vmatprep.subr.bf16.mxu1 %v7314_v60  ;;  %6266 = vst [vmem:[#allocation4 + $0x8] sm:$0xff] %v6167_v50   ;;  %v2780_v13 = vsel %vm9045_vm5, 0.0, %v2760_v26  ;;  %v6172_v0 = vpack.c.bf16 %v2808_v34, %v2807_v47  ;;  %vm9046_vm6 = vmmov %vm9041_vm0  ;;  %v7326_v22 = vld [vmem:[#allocation3 + $0x30] sm:$0xff]   ;;  %v7338_v47 = vld [vmem:[%s8963_s6 + $0x128] sm:$0xff]  }
 0x20d   :  { %v6152_v55 = vpack.c.bf16 %v2780_v13, %v2779_v3  ;;  %v2809_v44 = vsel %vm9046_vm6, 0.0, %v2789_v33  ;;  %vm9047_vm7 = vmmov %vm9041_vm0  ;;  %v7309_v61 = vld [vmem:[#allocation3] sm:$0xff]   ;;  %v6256_v33 = vld [vmem:[#allocation2 + $0x48] sm:$0xff]  }
 0x20e   :  { %v2810_v9 = vsel %vm9047_vm7, 0.0, %v2790_v53  ;;  %6876 = vmatmul.mubr.bf16.gmra.mxu1 %v7312_v17  ;;  %vm9048_vm8 = vmmov %vm9041_vm0  ;;  %6267 = vst [vmem:[#allocation4 + $0x10] sm:$0xff] %v6172_v0   ;;  %6899 = vmatprep.mubr.bf16.mxu0 %v7309_v61  ;;  %v7335_v53 = vld [vmem:[%s8963_s6 + $0xc8] sm:$0xff]   ;;  %v6108_v34 = vunpack.c.h.bf16 %v6256_v33  ;;  %v7341_v3 = vld [vmem:[%s8963_s6 + $0x120] sm:$0xff]  }
 0x20f   :  { %v6177_v39 = vpack.c.bf16 %v2810_v9, %v2809_v44  ;;  %v2813_v57 = vsel %vm9048_vm8, 0.0, %v2793_v30  ;;  %6879 = vmatprep.mubr.bf16.mxu1 %v7315_v51  ;;  %6924 = vmatpush3.bf16.msra.mxu1 %v7314_v60  ;;  %6264 = vst [vmem:[#allocation3 + $0x40] sm:$0xff] %v6152_v55   ;;  %vm9049_vm9 = vmmov %vm9041_vm0  ;;  %v7328_v51 = vld [vmem:[#allocation3 + $0x38] sm:$0xff]   ;;  %v6107_v30 = vunpack.c.l.bf16 %v6256_v33  ;;  %v7340_v44 = vld [vmem:[%s8963_s6 + $0xc0] sm:$0xff]  }
 0x210   :  { %v2814_v8 = vsel %vm9049_vm9, 0.0, %v2794_v19  ;;  %6925 = vmatprep.subr.bf16.mxu1 %v7317_v32  ;;  %6900 = vmatmul.mubr.bf16.vlgmr.msra.gmra.mxu0 %v7310_v56  ;;  %vm9050_vm10 = vmmov %vm9041_vm0  ;;  %v2762_v0 = vrot.slane %v6108_v34, 7  ;;  %v7346_v20 = vld [vmem:[%s8963_s6 + $0x118] sm:$0xff]   ;;  %v2802_v56 = vrot.slane %v6108_v34, 1  ;;  %v7364_v25 = vld [vmem:[%s8963_s6 + $0x150] sm:$0xff]  }
 0x211   :  { %6268 = vst [vmem:[#allocation4 + $0x18] sm:$0xff] %v6177_v39   ;;  %v6187_v15 = vpack.c.bf16 %v2814_v8, %v2813_v57  ;;  %v2815_v6 = vsel %vm9050_vm10, 0.0, %v2795_v12  ;;  %vm9051_vm11 = vmmov %vm9041_vm0  ;;  %6903 = vmatprep.mubr.bf16.mxu0 %v7313_v38  ;;  %6948 = vmatpush3.bf16.msra.mxu0 %v8237_v29  ;;  %v7321_v58 = vld [vmem:[#allocation3 + $0x28] sm:$0xff]   ;;  %v2801_v57 = vrot.slane %v6107_v30, 1 }
 0x212   :  { %v2816_v10 = vsel %vm9051_vm11, 0.0, %v2796_v35  ;;  %vm9052_vm12 = vmmov %vm9041_vm0  ;;  %6949 = vmatprep.subr.bf16.mxu0 %v7316_v36  ;;  %v7323_v60 = vld [vmem:[#allocation4] sm:$0xff]   ;;  %v7337_v39 = vld [vmem:[#allocation3 + $0x4] sm:$0xff]  }
 0x213   :  { %6270 = vst [vmem:[#allocation4 + $0x28] sm:$0xff] %v6187_v15   ;;  %v6192_v48 = vpack.c.bf16 %v2816_v10, %v2815_v6  ;;  %v2817_v14 = vsel %vm9052_vm12, 0.0, %v2797_v21  ;;  %6926 = vmatpush3.bf16.msra.mxu1 %v7317_v32  ;;  %vm9053_vm13 = vmmov %vm9041_vm0  ;;  %v7329_v17 = vld [vmem:[#allocation4 + $0x8] sm:$0xff]   ;;  %v7343_v8 = vld [vmem:[%s8963_s6 + $0x178] sm:$0xff]  }
 0x214   :  { %v2818_v49 = vsel %vm9053_vm13, 0.0, %v2798_v62  ;;  %6927 = vmatprep.subr.bf16.mxu1 %v7322_v31  ;;  %vm9054_vm14 = vmmov %vm9029_vm4  ;;  %v7349_v35 = vld [vmem:[%s8963_s6 + $0x110] sm:$0xff]   ;;  %v7342_v10 = vld [vmem:[#allocation3 + $0xc] sm:$0xff]  }
 0x215   :  { %6271 = vst [vmem:[#allocation4 + $0x30] sm:$0xff] %v6192_v48   ;;  %v6197_v29 = vpack.c.bf16 %v2818_v49, %v2817_v14  ;;  %v2771_v5 = vsel %vm9054_vm14, 0.0, %v2751_v37  ;;  %6950 = vmatpush3.bf16.msra.mxu0 %v7316_v36  ;;  %vm9055_vm15 = vmmov %vm9029_vm4  ;;  %v7331_v50 = vld [vmem:[#allocation4 + $0x10] sm:$0xff]   ;;  %v2761_v36 = vrot.slane %v6107_v30, 7  ;;  %v7345_v62 = vld [vmem:[#allocation3 + $0x14] sm:$0xff]  }
 0x216   :  { %6880 = vmatmul.mubr.bf16.gmra.mxu1 %v7320_v40  ;;  %v2772_v11 = vsel %vm9055_vm15, 0.0, %v2752_v54  ;;  %6951 = vmatprep.subr.bf16.mxu0 %v7319_v28  ;;  %vm9056_vm1 = vmmov %vm9041_vm0  ;;  %v7334_v55 = vld [vmem:[#allocation3 + $0x40] sm:$0xff]   ;;  %v7351_v37 = vld [vmem:[%s8963_s6 + $0x168] sm:$0xff]  }
 0x217   :  { %6272 = vst [vmem:[#allocation4 + $0x38] sm:$0xff] %v6197_v29   ;;  %6928 = vmatpush3.bf16.msra.mxu1 %v7322_v31  ;;  %v6132_v46 = vpack.c.bf16 %v2772_v11, %v2771_v5  ;;  %6931 = vmatprep.mubr.bf16.mxu1 %v7323_v60  ;;  %v2820_v45 = vsel %vm9056_vm1, 0.0, %v2800_v1  ;;  %vm9057_vm2 = vmmov %vm9041_vm0  ;;  %v2781_v9 = vsel %vm9029_vm4, 0.0, %v2761_v36  ;;  %v7348_v6 = vld [vmem:[%s8963_s6 + $0x170] sm:$0xff]   ;;  %v7355_v14 = vld [vmem:[#allocation2 + $0x4] sm:$0xff]  }
 0x218   :  { %6929 = vmatprep.subr.bf16.mxu1 %v7325_v27  ;;  %6904 = vmatmul.mubr.bf16.gmra.mxu0 %v7318_v63  ;;  %v6202_v18 = vpack.c.bf16 %v2820_v45, %v2819_v42  ;;  %v2811_v32 = vsel %vm9057_vm2, 0.0, %v2791_v7  ;;  %vm9058_vm3 = vmmov %vm9041_vm0  ;;  %v7336_v13 = vld [vmem:[#allocation4 + $0x18] sm:$0xff]   ;;  %v7361_v5 = vld [vmem:[#allocation2 + $0xc] sm:$0xff]  }
 0x219   :  { %6260 = vst [vmem:[#allocation3 + $0x20] sm:$0xff] %v6132_v46   ;;  %6907 = vmatprep.mubr.bf16.mxu0 %v7321_v58  ;;  %6952 = vmatpush3.bf16.msra.mxu0 %v7319_v28  ;;  %v2812_v23 = vsel %vm9058_vm3, 0.0, %v2792_v24  ;;  %vm9059_vm5 = vmmov %vm9029_vm4  ;;  %v7357_v28 = vld [vmem:[%s8963_s6 + $0x100] sm:$0xff]   ;;  %v7362_v29 = vld [vmem:[%s8963_s6 + $0x1b8] sm:$0xff]  }
 0x21a   :  { %6953 = vmatprep.subr.bf16.mxu0 %v7324_v4  ;;  %6273 = vst [vmem:[#allocation4 + $0x40] sm:$0xff] %v6202_v18   ;;  %v6182_v26 = vpack.c.bf16 %v2812_v23, %v2811_v32  ;;  %v7339_v19 = vld [vmem:[#allocation4 + $0x28] sm:$0xff]   ;;  %v2782_v61 = vsel %vm9059_vm5, 0.0, %v2762_v0  ;;  %vm9060_vm6 = vmmov %vm9041_vm0  ;;  %v7353_v40 = vld [vmem:[#allocation3 + $0x2c] sm:$0xff]  }
 0x21b   :  { %6930 = vmatpush3.bf16.msra.mxu1 %v7325_v27  ;;  %v6157_v31 = vpack.c.bf16 %v2782_v61, %v2781_v9  ;;  %v2821_v12 = vsel %vm9060_vm6, 0.0, %v2801_v57  ;;  %vm9061_vm7 = vmmov %vm9041_vm0  ;;  %v7356_v27 = vld [vmem:[%s8963_s6 + $0x160] sm:$0xff]   ;;  %v7359_v54 = vld [vmem:[%s8963_s6 + $0x158] sm:$0xff]  }
 0x21c   :  { %6979 = vmatprep.subr.bf16.mxu1 %v7330_v43  ;;  %6269 = vst [vmem:[#allocation4 + $0x20] sm:$0xff] %v6182_v26   ;;  %v2822_v38 = vsel %vm9061_vm7, 0.0, %v2802_v56  ;;  %v7344_v15 = vld [vmem:[#allocation4 + $0x30] sm:$0xff]   ;;  %v7358_v60 = vld [vmem:[#allocation3 + $0x34] sm:$0xff]   ;;  %v7368_v42 = vld [vmem:[#allocation2 + $0x1c] sm:$0xff]  }
 0x21d   :  { %6954 = vmatpush3.bf16.msra.mxu0 %v7324_v4  ;;  %6265 = vst [vmem:[#allocation3 + $0x48] sm:$0xff] %v6157_v31   ;;  %v6207_v21 = vpack.c.bf16 %v2822_v38, %v2821_v12  ;;  %v7365_v4 = vld [vmem:[%s8963_s6 + $0x1b0] sm:$0xff]   ;;  %v7370_v11 = vld [vmem:[%s8963_s6 + $0x1a8] sm:$0xff]   ;;  %v7373_v46 = vld [vmem:[%s8963_s6 + $0x1a0] sm:$0xff]  }
 0x21e   :  { %6932 = vmatmul.mubr.bf16.vlgmr.msra.gmra.mxu1 %v7329_v17  ;;  %6955 = vmatprep.subr.bf16.mxu0 %v7327_v59  ;;  %v7347_v41 = vld [vmem:[#allocation4 + $0x38] sm:$0xff]   ;;  %v7367_v63 = vld [vmem:[%s8963_s6 + $0x148] sm:$0xff]   ;;  %v7381_v17 = vld [vmem:[%s8963_s6 + $0x190] sm:$0xff]  }
 0x21f   :  { %6935 = vmatprep.mubr.bf16.mxu1 %v7331_v50  ;;  %6980 = vmatpush3.bf16.msra.mxu1 %v7330_v43  ;;  %6274 = vst [vmem:[#allocation4 + $0x48] sm:$0xff] %v6207_v21   ;;  %v7363_v1 = vld [vmem:[#allocation2 + $0x14] sm:$0xff]   ;;  %v7360_v43 = vld [vmem:[#allocation3 + $0x3c] sm:$0xff]   ;;  %v7369_v18 = vld [vmem:[#allocation4 + $0x4] sm:$0xff]  }
 0x220   :  { %6908 = vmatmul.mubr.bf16.gmra.mxu0 %v7326_v22  ;;  %6981 = vmatprep.subr.bf16.mxu1 %v7333_v52  ;;  %v7350_v49 = vld [vmem:[#allocation3 + $0x1c] sm:$0xff]   ;;  %v7378_v7 = vld [vmem:[%s8963_s6 + $0x198] sm:$0xff]   ;;  %v7388_v30 = vld [vmem:[%s8963_s6 + $0x1e0] sm:$0xff]  }
 0x221   :  { %6911 = vmatprep.mubr.bf16.mxu0 %v7328_v51  ;;  %6956 = vmatpush3.bf16.msra.mxu0 %v7327_v59  ;;  %v7352_v48 = vld [vmem:[#allocation4 + $0x40] sm:$0xff]   ;;  %v7371_v58 = vld [vmem:[#allocation2 + $0x2c] sm:$0xff]   ;;  %v7376_v24 = vld [vmem:[#allocation2 + $0x34] sm:$0xff]  }
 0x222   :  { %6957 = vmatprep.subr.bf16.mxu0 %v7332_v2  ;;  %v7372_v59 = vld [vmem:[%s8963_s6 + $0x140] sm:$0xff]   ;;  %v7374_v50 = vld [vmem:[#allocation4 + $0xc] sm:$0xff]   ;;  %v7387_v33 = vld [vmem:[#allocation3 + $0x8] sm:$0xff]  }
 0x223   :  { %6982 = vmatpush3.bf16.msra.mxu1 %v7333_v52  ;;  %v7375_v52 = vld [vmem:[%s8963_s6 + $0x1f8] sm:$0xff]   ;;  %v7380_v23 = vld [vmem:[%s8963_s6 + $0x1f0] sm:$0xff]   ;;  %v7386_v26 = vld [vmem:[%s8963_s6 + $0x188] sm:$0xff]  }
 0x224   :  { %6983 = vmatprep.subr.bf16.mxu1 %v7338_v47  ;;  %v7366_v45 = vld [vmem:[#allocation3 + $0x44] sm:$0xff]   ;;  %v7379_v32 = vld [vmem:[#allocation2 + $0x3c] sm:$0xff]   ;;  %v7383_v22 = vld [vmem:[%s8963_s6 + $0x1e8] sm:$0xff]  }
 0x225   :  { %6958 = vmatpush3.bf16.msra.mxu0 %v7332_v2  ;;  %v7377_v2 = vld [vmem:[#allocation4 + $0x14] sm:$0xff]   ;;  %v7384_v51 = vld [vmem:[#allocation2 + $0x44] sm:$0xff]   ;;  %v7385_v34 = vld [vmem:[#allocation4 + $0x2c] sm:$0xff]  }
 0x226   :  { %6936 = vmatmul.mubr.bf16.gmra.mxu1 %v7336_v13  ;;  %6959 = vmatprep.subr.bf16.mxu0 %v7335_v53  ;;  %v7391_v13 = vld [vmem:[%s8963_s6 + $0x1d8] sm:$0xff]   ;;  %v7397_v36 = vld [vmem:[%s8963_s6 + $0x230] sm:$0xff]   ;;  %v7395_v0 = vld [vmem:[#allocation3 + $0x18] sm:$0xff]  }
 0x227   :  { %6939 = vmatprep.mubr.bf16.mxu1 %v7339_v19  ;;  %6984 = vmatpush3.bf16.msra.mxu1 %v7338_v47  ;;  %v7389_v47 = vld [vmem:[%s8963_s6 + $0x180] sm:$0xff]   ;;  %v7402_v61 = vld [vmem:[%s8963_s6 + $0x228] sm:$0xff]   ;;  %v7410_v21 = vld [vmem:[#allocation3 + $0x40] sm:$0xff]  }
 0x228   :  { %6912 = vmatmul.mubr.bf16.gmra.mxu0 %v7334_v55  ;;  %6985 = vmatprep.subr.bf16.mxu1 %v7341_v3  ;;  %v7393_v19 = vld [vmem:[#allocation3 + $0x10] sm:$0xff]   ;;  %v7390_v55 = vld [vmem:[#allocation4 + $0x34] sm:$0xff]   ;;  %v7399_v31 = vld [vmem:[%s8963_s6 + $0x1c8] sm:$0xff]  }
 0x229   :  { %6960 = vmatpush3.bf16.msra.mxu0 %v7335_v53  ;;  %6963 = vmatprep.mubr.bf16.mxu0 %v7337_v39  ;;  %v7382_v53 = vld [vmem:[#allocation4 + $0x1c] sm:$0xff]   ;;  %v7400_v39 = vld [vmem:[#allocation3 + $0x20] sm:$0xff]   ;;  %v7398_v56 = vld [vmem:[#allocation4 + $0x44] sm:$0xff]  }
 0x22a   :  { %6961 = vmatprep.subr.bf16.mxu0 %v7340_v44  ;;  %v7392_v9 = vld [vmem:[#allocation4 + $0x3c] sm:$0xff]   ;;  %v7401_v12 = vld [vmem:[#allocation2 + $0x8] sm:$0xff]  }
 0x22b   :  { %6986 = vmatpush3.bf16.msra.mxu1 %v7341_v3  ;;  %v7394_v3 = vld [vmem:[%s8963_s6 + $0x238] sm:$0xff]   ;;  %v7405_v57 = vld [vmem:[%s8963_s6 + $0x220] sm:$0xff]   ;;  %v7407_v38 = vld [vmem:[#allocation3 + $0x38] sm:$0xff]  }
 0x22c   :  { %6987 = vmatprep.subr.bf16.mxu1 %v7346_v20 }
 0x22d   :  { %6962 = vmatpush3.bf16.msra.mxu0 %v7340_v44  ;;  %v7396_v44 = vld [vmem:[%s8963_s6 + $0x1d0] sm:$0xff]  }
 0x22e   :  { %6940 = vmatmul.mubr.bf16.gmra.mxu1 %v7344_v15  ;;  %7011 = vmatprep.subr.bf16.mxu0 %v7343_v8  ;;  %v7411_v15 = vld [vmem:[%s8963_s6 + $0x210] sm:$0xff]  }
 0x22f   :  { %6943 = vmatprep.mubr.bf16.mxu1 %v7347_v41  ;;  %6988 = vmatpush3.bf16.msra.mxu1 %v7346_v20  ;;  %v7403_v20 = vld [vmem:[#allocation3 + $0x30] sm:$0xff]   ;;  %v7406_v41 = vld [vmem:[#allocation2 + $0x10] sm:$0xff]  }
 0x230   :  { %6964 = vmatmul.mubr.bf16.vlgmr.msra.gmra.mxu0 %v7342_v10  ;;  %6989 = vmatprep.subr.bf16.mxu1 %v7349_v35  ;;  %v7415_v10 = vld [vmem:[%s8963_s6 + $0x208] sm:$0xff]  }
 0x231   :  { %6967 = vmatprep.mubr.bf16.mxu0 %v7345_v62  ;;  %7012 = vmatpush3.bf16.msra.mxu0 %v7343_v8  ;;  %v7404_v8 = vld [vmem:[%s8963_s6 + $0x1c0] sm:$0xff]   ;;  %v7413_v62 = vld [vmem:[#allocation3 + $0x48] sm:$0xff]  }
 0x232   :  { %7013 = vmatprep.subr.bf16.mxu0 %v7348_v6 }
 0x233   :  { %6990 = vmatpush3.bf16.msra.mxu1 %v7349_v35  ;;  %v7409_v35 = vld [vmem:[%s8963_s6 + $0x218] sm:$0xff]  }
 0x234   :  { %6991 = vmatprep.subr.bf16.mxu1 %v7354_v16 }
 0x235   :  { %7014 = vmatpush3.bf16.msra.mxu0 %v7348_v6  ;;  %v7408_v6 = vld [vmem:[#allocation2 + $0x18] sm:$0xff]  }
 0x236   :  { %6944 = vmatmul.mubr.bf16.gmra.mxu1 %v7352_v48  ;;  %7015 = vmatprep.subr.bf16.mxu0 %v7351_v37  ;;  %v7414_v48 = vld [vmem:[#allocation2 + $0x30] sm:$0xff]  }
 0x237   :  { %6995 = vmatprep.mubr.bf16.mxu1 %v7355_v14  ;;  %6992 = vmatpush3.bf16.msra.mxu1 %v7354_v16  ;;  %v7417_v16 = vld [vmem:[%s8963_s6 + $0x200] sm:$0xff]   ;;  %v7420_v14 = vld [vmem:[#allocation4 + $0x10] sm:$0xff]  }
 0x238   :  { %6968 = vmatmul.mubr.bf16.gmra.mxu0 %v7350_v49  ;;  %6993 = vmatprep.subr.bf16.mxu1 %v7357_v28  ;;  %v7418_v49 = vld [vmem:[#allocation2 + $0x38] sm:$0xff]  }
 0x239   :  { %6971 = vmatprep.mubr.bf16.mxu0 %v7353_v40  ;;  %7016 = vmatpush3.bf16.msra.mxu0 %v7351_v37  ;;  %v7416_v37 = vld [vmem:[#allocation4 + $0x8] sm:$0xff]   ;;  %v7419_v40 = vld [vmem:[#allocation2 + $0x40] sm:$0xff]  }
 0x23a   :  { %7017 = vmatprep.subr.bf16.mxu0 %v7356_v27 }
 0x23b   :  { %6994 = vmatpush3.bf16.msra.mxu1 %v7357_v28  ;;  %v7412_v28 = vld [vmem:[#allocation2 + $0x20] sm:$0xff]  }
 0x23c   :  { %7043 = vmatprep.subr.bf16.mxu1 %v7362_v29 }
 0x23d   :  { %7018 = vmatpush3.bf16.msra.mxu0 %v7356_v27  ;;  %v7421_v27 = vld [vmem:[#allocation4 + $0x18] sm:$0xff]  }
 0x23e   :  { %7019 = vmatprep.subr.bf16.mxu0 %v7359_v54  ;;  %6996 = vmatmul.mubr.bf16.vlgmr.msra.gmra.mxu1 %v7361_v5  ;;  %v7425_v5 = vld [vmem:[#allocation4 + $0x38] sm:$0xff]  }
 0x23f   :  { %6999 = vmatprep.mubr.bf16.mxu1 %v7363_v1  ;;  %7044 = vmatpush3.bf16.msra.mxu1 %v7362_v29  ;;  %v7423_v29 = vld [vmem:[#allocation4 + $0x20] sm:$0xff]   ;;  %v7427_v1 = vld [vmem:[#allocation4 + $0x48] sm:$0xff]  }
 0x240   :  { %6972 = vmatmul.mubr.bf16.gmra.mxu0 %v7358_v60  ;;  %7045 = vmatprep.subr.bf16.mxu1 %v7365_v4 }
 0x241   :  { %6975 = vmatprep.mubr.bf16.mxu0 %v7360_v43  ;;  %7020 = vmatpush3.bf16.msra.mxu0 %v7359_v54  ;;  %v7424_v54 = vld [vmem:[#allocation4 + $0x30] sm:$0xff]  }
 0x242   :  { %7021 = vmatprep.subr.bf16.mxu0 %v7364_v25 }
 0x243   :  { %7046 = vmatpush3.bf16.msra.mxu1 %v7365_v4  ;;  %v7422_v4 = vld [vmem:[#allocation2 + $0x48] sm:$0xff]  }
 0x244   :  { %7047 = vmatprep.subr.bf16.mxu1 %v7370_v11 }
 0x245   :  { %7022 = vmatpush3.bf16.msra.mxu0 %v7364_v25  ;;  %v7426_v25 = vld [vmem:[#allocation4 + $0x40] sm:$0xff]  }
 0x246   :  { %7023 = vmatprep.subr.bf16.mxu0 %v7367_v63  ;;  %7000 = vmatmul.mubr.bf16.gmra.mxu1 %v7368_v42 }
 0x247   :  { %7003 = vmatprep.mubr.bf16.mxu1 %v7371_v58  ;;  %7048 = vmatpush3.bf16.msra.mxu1 %v7370_v11 }
 0x248   :  { %6976 = vmatmul.mubr.bf16.gmra.mxu0 %v7366_v45  ;;  %7049 = vmatprep.subr.bf16.mxu1 %v7373_v46 }
 0x249   :  { %7024 = vmatpush3.bf16.msra.mxu0 %v7367_v63  ;;  %7027 = vmatprep.mubr.bf16.mxu0 %v7369_v18 }
 0x24a   :  { %7025 = vmatprep.subr.bf16.mxu0 %v7372_v59 }
 0x24b   :  { %7050 = vmatpush3.bf16.msra.mxu1 %v7373_v46 }
 0x24c   :  { %7051 = vmatprep.subr.bf16.mxu1 %v7378_v7 }
 0x24d   :  { %7026 = vmatpush3.bf16.msra.mxu0 %v7372_v59 }
 0x24e   :  { %7075 = vmatprep.subr.bf16.mxu0 %v7375_v52  ;;  %7004 = vmatmul.mubr.bf16.gmra.mxu1 %v7376_v24 }
 0x24f   :  { %7007 = vmatprep.mubr.bf16.mxu1 %v7379_v32  ;;  %7052 = vmatpush3.bf16.msra.mxu1 %v7378_v7 }
 0x250   :  { %7028 = vmatmul.mubr.bf16.vlgmr.msra.gmra.mxu0 %v7374_v50  ;;  %7053 = vmatprep.subr.bf16.mxu1 %v7381_v17 }
 0x251   :  { %7031 = vmatprep.mubr.bf16.mxu0 %v7377_v2  ;;  %7076 = vmatpush3.bf16.msra.mxu0 %v7375_v52 }
 0x252   :  { %7077 = vmatprep.subr.bf16.mxu0 %v7380_v23 }
 0x253   :  { %7054 = vmatpush3.bf16.msra.mxu1 %v7381_v17 }
 0x254   :  { %7055 = vmatprep.subr.bf16.mxu1 %v7386_v26 }
 0x255   :  { %7078 = vmatpush3.bf16.msra.mxu0 %v7380_v23 }
 0x256   :  { %7079 = vmatprep.subr.bf16.mxu0 %v7383_v22  ;;  %7008 = vmatmul.mubr.bf16.gmra.mxu1 %v7384_v51 }
 0x257   :  { %7056 = vmatpush3.bf16.msra.mxu1 %v7386_v26  ;;  %7059 = vmatprep.mubr.bf16.mxu1 %v7387_v33 }
 0x258   :  { %7032 = vmatmul.mubr.bf16.gmra.mxu0 %v7382_v53  ;;  %7057 = vmatprep.subr.bf16.mxu1 %v7389_v47 }
 0x259   :  { %7035 = vmatprep.mubr.bf16.mxu0 %v7385_v34  ;;  %7080 = vmatpush3.bf16.msra.mxu0 %v7383_v22 }
 0x25a   :  { %7081 = vmatprep.subr.bf16.mxu0 %v7388_v30 }
 0x25b   :  { %7058 = vmatpush3.bf16.msra.mxu1 %v7389_v47 }
 0x25c   :  { %7107 = vmatprep.subr.bf16.mxu1 %v7394_v3 }
 0x25d   :  { %7082 = vmatpush3.bf16.msra.mxu0 %v7388_v30 }
 0x25e   :  { %7083 = vmatprep.subr.bf16.mxu0 %v7391_v13  ;;  %7060 = vmatmul.mubr.bf16.vlgmr.msra.gmra.mxu1 %v7393_v19 }
 0x25f   :  { %7063 = vmatprep.mubr.bf16.mxu1 %v7395_v0  ;;  %7108 = vmatpush3.bf16.msra.mxu1 %v7394_v3 }
 0x260   :  { %7036 = vmatmul.mubr.bf16.gmra.mxu0 %v7390_v55  ;;  %7109 = vmatprep.subr.bf16.mxu1 %v7397_v36 }
 0x261   :  { %7039 = vmatprep.mubr.bf16.mxu0 %v7392_v9  ;;  %7084 = vmatpush3.bf16.msra.mxu0 %v7391_v13 }
 0x262   :  { %7085 = vmatprep.subr.bf16.mxu0 %v7396_v44 }
 0x263   :  { %7110 = vmatpush3.bf16.msra.mxu1 %v7397_v36 }
 0x264   :  { %7111 = vmatprep.subr.bf16.mxu1 %v7402_v61 }
 0x265   :  { %7086 = vmatpush3.bf16.msra.mxu0 %v7396_v44 }
 0x266   :  { %7087 = vmatprep.subr.bf16.mxu0 %v7399_v31  ;;  %7064 = vmatmul.mubr.bf16.gmra.mxu1 %v7400_v39 }
 0x267   :  { %7067 = vmatprep.mubr.bf16.mxu1 %v7403_v20  ;;  %7112 = vmatpush3.bf16.msra.mxu1 %v7402_v61 }
 0x268   :  { %7040 = vmatmul.mubr.bf16.gmra.mxu0 %v7398_v56  ;;  %7113 = vmatprep.subr.bf16.mxu1 %v7405_v57 }
 0x269   :  { %7088 = vmatpush3.bf16.msra.mxu0 %v7399_v31  ;;  %7091 = vmatprep.mubr.bf16.mxu0 %v7401_v12 }
 0x26a   :  { %7089 = vmatprep.subr.bf16.mxu0 %v7404_v8 }
 0x26b   :  { %7114 = vmatpush3.bf16.msra.mxu1 %v7405_v57 }
 0x26c   :  { %7115 = vmatprep.subr.bf16.mxu1 %v7409_v35 }
 0x26d   :  { %7090 = vmatpush3.bf16.msra.mxu0 %v7404_v8 }
 0x26e   :  { %7068 = vmatmul.mubr.bf16.gmra.mxu1 %v7407_v38 }
 0x26f   :  { %7071 = vmatprep.mubr.bf16.mxu1 %v7410_v21  ;;  %7116 = vmatpush3.bf16.msra.mxu1 %v7409_v35 }
 0x270   :  { %7092 = vmatmul.mubr.bf16.vlgmr.msra.gmra.mxu0 %v7406_v41  ;;  %7117 = vmatprep.subr.bf16.mxu1 %v7411_v15 }
 0x271   :  { %7095 = vmatprep.mubr.bf16.mxu0 %v7408_v6 }
 0x273   :  { %7118 = vmatpush3.bf16.msra.mxu1 %v7411_v15 }
 0x274   :  { %7119 = vmatprep.subr.bf16.mxu1 %v7415_v10 }
 0x276   :  { %7072 = vmatmul.mubr.bf16.gmra.mxu1 %v7413_v62 }
 0x277   :  { %7120 = vmatpush3.bf16.msra.mxu1 %v7415_v10  ;;  %7123 = vmatprep.mubr.bf16.mxu1 %v7416_v37 }
 0x278   :  { %7096 = vmatmul.mubr.bf16.gmra.mxu0 %v7412_v28  ;;  %7121 = vmatprep.subr.bf16.mxu1 %v7417_v16 }
 0x279   :  { %7099 = vmatprep.mubr.bf16.mxu0 %v7414_v48 }
 0x27b   :  { %7122 = vmatpush3.bf16.msra.mxu1 %v7417_v16 }
 0x27e   :  { %7124 = vmatmul.mubr.bf16.vlgmr.msra.gmra.mxu1 %v7420_v14 }
 0x27f   :  { %7127 = vmatprep.mubr.bf16.mxu1 %v7421_v27 }
 0x280   :  { %7100 = vmatmul.mubr.bf16.gmra.mxu0 %v7418_v49 }
 0x281   :  { %7103 = vmatprep.mubr.bf16.mxu0 %v7419_v40 }
 0x286   :  { %7128 = vmatmul.mubr.bf16.gmra.mxu1 %v7423_v29 }
 0x287   :  { %7131 = vmatprep.mubr.bf16.mxu1 %v7424_v54 }
 0x288   :  { %7104 = vmatmul.mubr.bf16.gmra.mxu0 %v7422_v4 }
 0x28e   :  { %7132 = vmatmul.mubr.bf16.gmra.mxu1 %v7425_v5 }
 0x28f   :  { %7135 = vmatprep.mubr.bf16.mxu1 %v7426_v25 }
 0x296   :  { %7136 = vmatmul.mubr.bf16.gmra.mxu1 %v7427_v1 }
 0x2be   :  { %v6869_v60 = vpop.f32.mrf.mxu1 }
 0x2c0   :  { %v3098_v43 = vpop.f32.mrf.mxu1 }
 0x2c2   :  { %v6870_v11 = vpop.f32.mrf.mxu1 }
 0x2c4   :  { %v3101_v63 = vpop.f32.mrf.mxu1 }
 0x2c6   :  { %v6873_v46 = vpop.f32.mrf.mxu1 }
 0x2c8   :  { %v3114_v42 = vpop.f32.mrf.mxu1 }
 0x2ca   :  { %v6874_v58 = vpop.f32.mrf.mxu1 }
 0x2cc   :  { %v3117_v45 = vpop.f32.mrf.mxu1 }
 0x2ce   :  { %v6877_v59 = vpop.f32.mrf.mxu1 }
 0x2d0   :  { %v3130_v18 = vpop.f32.mrf.mxu1  ;;  %v6901_v7 = vpop.f32.mrf.mxu0 }
 0x2d1   :  { %v3300_v52 = vadd.f32 %v6901_v7, %v6869_v60 }
 0x2d2   :  { %v6878_v24 = vpop.f32.mrf.mxu1  ;;  %v3291_v17 = vpop.f32.mrf.mxu0 }
 0x2d3   :  { %v3292_v32 = vadd.f32 %v3291_v17, %v3098_v43 }
 0x2d4   :  { %v3133_v50 = vpop.f32.mrf.mxu1  ;;  %v6902_v23 = vpop.f32.mrf.mxu0 }
 0x2d5   :  { %v3303_v2 = vadd.f32 %v6902_v23, %v6870_v11 }
 0x2d6   :  { %v6881_v26 = vpop.f32.mrf.mxu1  ;;  %v3294_v22 = vpop.f32.mrf.mxu0 }
 0x2d7   :  { %v3295_v51 = vadd.f32 %v3294_v22, %v3101_v63 }
 0x2d8   :  { %v3146_v47 = vpop.f32.mrf.mxu1  ;;  %v6905_v33 = vpop.f32.mrf.mxu0 }
 0x2d9   :  { %v3316_v53 = vadd.f32 %v6905_v33, %v6873_v46 }
 0x2da   :  { %v6882_v30 = vpop.f32.mrf.mxu1  ;;  %v3307_v34 = vpop.f32.mrf.mxu0 }
 0x2db   :  { %v3308_v3 = vadd.f32 %v3307_v34, %v3114_v42 }
 0x2dc   :  { %v3149_v13 = vpop.f32.mrf.mxu1  ;;  %v6906_v19 = vpop.f32.mrf.mxu0 }
 0x2dd   :  { %v3319_v36 = vadd.f32 %v6906_v19, %v6874_v58 }
 0x2de   :  { %v6933_v0 = vpop.f32.mrf.mxu1  ;;  %v3310_v55 = vpop.f32.mrf.mxu0 }
 0x2df   :  { %v3582_v44 = vadd.f32 %v6933_v0, %v3300_v52  ;;  %v3311_v9 = vadd.f32 %v3310_v55, %v3117_v45 }
 0x2e0   :  { %v3517_v61 = vpop.f32.mrf.mxu1  ;;  %v6909_v31 = vpop.f32.mrf.mxu0 }
 0x2e1   :  { %v8593_v39 = vadd.f32 %v3517_v61, %v3292_v32  ;;  %v3332_v57 = vadd.f32 %v6909_v31, %v6877_v59 }
 0x2e2   :  { %v6934_v20 = vpop.f32.mrf.mxu1  ;;  %v3323_v56 = vpop.f32.mrf.mxu0 }
 0x2e3   :  { %v8595_v8 = vadd.f32 %v6934_v20, %v3303_v2  ;;  %v3324_v12 = vadd.f32 %v3323_v56, %v3130_v18 }
 0x2e4   :  { %v3520_v35 = vpop.f32.mrf.mxu1  ;;  %v6910_v38 = vpop.f32.mrf.mxu0 }
 0x2e5   :  { %v8597_v15 = vadd.f32 %v3520_v35, %v3295_v51  ;;  %v3335_v21 = vadd.f32 %v6910_v38, %v6878_v24 }
 0x2e6   :  { %v6937_v41 = vpop.f32.mrf.mxu1  ;;  %v3326_v6 = vpop.f32.mrf.mxu0 }
 0x2e7   :  { %v3586_v10 = vadd.f32 %v6937_v41, %v3316_v53  ;;  %v3327_v62 = vadd.f32 %v3326_v6, %v3133_v50 }
 0x2e8   :  { %v3533_v16 = vpop.f32.mrf.mxu1  ;;  %v6913_v37 = vpop.f32.mrf.mxu0 }
 0x2e9   :  { %v8599_v28 = vadd.f32 %v3533_v16, %v3308_v3  ;;  %v3348_v48 = vadd.f32 %v6913_v37, %v6881_v26 }
 0x2ea   :  { %v6938_v14 = vpop.f32.mrf.mxu1  ;;  %v3339_v27 = vpop.f32.mrf.mxu0 }
 0x2eb   :  { %v8601_v49 = vadd.f32 %v6938_v14, %v3319_v36  ;;  %v3340_v40 = vadd.f32 %v3339_v27, %v3146_v47 }
 0x2ec   :  { %v3536_v29 = vpop.f32.mrf.mxu1  ;;  %v6914_v54 = vpop.f32.mrf.mxu0 }
 0x2ed   :  { %v8603_v4 = vadd.f32 %v3536_v29, %v3311_v9  ;;  %v3351_v5 = vadd.f32 %v6914_v54, %v6882_v30 }
 0x2ee   :  { %v6941_v25 = vpop.f32.mrf.mxu1  ;;  %v3342_v1 = vpop.f32.mrf.mxu0 }
 0x2ef   :  { %v3590_v60 = vadd.f32 %v6941_v25, %v3332_v57  ;;  %v3343_v43 = vadd.f32 %v3342_v1, %v3149_v13 }
 0x2f0   :  { %v3549_v11 = vpop.f32.mrf.mxu1  ;;  %v6965_v63 = vpop.f32.mrf.mxu0 }
 0x2f1   :  { %v8605_v46 = vadd.f32 %v3549_v11, %v3324_v12  ;;  %v3824_v42 = vadd.f32 %v6965_v63, %v3582_v44 }
 0x2f2   :  { %v6942_v58 = vpop.f32.mrf.mxu1  ;;  %v8607_v45 = vpop.f32.mrf.mxu0 }
 0x2f3   :  { %v8609_v59 = vadd.f32 %v6942_v58, %v3335_v21 }
 0x2f4   :  { %v3552_v18 = vpop.f32.mrf.mxu1  ;;  %v8611_v7 = vpop.f32.mrf.mxu0 }
 0x2f5   :  { %v8613_v52 = vadd.f32 %v3552_v18, %v3327_v62 }
 0x2f6   :  { %v6945_v24 = vpop.f32.mrf.mxu1  ;;  %v8615_v17 = vpop.f32.mrf.mxu0 }
 0x2f7   :  { %v3594_v32 = vadd.f32 %v6945_v24, %v3348_v48 }
 0x2f8   :  { %v3565_v50 = vpop.f32.mrf.mxu1  ;;  %v6969_v23 = vpop.f32.mrf.mxu0 }
 0x2f9   :  { %v8617_v2 = vadd.f32 %v3565_v50, %v3340_v40  ;;  %v3828_v26 = vadd.f32 %v6969_v23, %v3586_v10 }
 0x2fa   :  { %v6946_v22 = vpop.f32.mrf.mxu1  ;;  %v8619_v51 = vpop.f32.mrf.mxu0 }
 0x2fb   :  { %v8621_v47 = vadd.f32 %v6946_v22, %v3351_v5 }
 0x2fc   :  { %v3568_v33 = vpop.f32.mrf.mxu1  ;;  %v8623_v53 = vpop.f32.mrf.mxu0 }
 0x2fd   :  { %9062 = vst [vmem:[#allocation13_spill] sm:$0xff] %v8621_v47  ;;  %v8625_v30 = vadd.f32 %v3568_v33, %v3343_v43 }
 0x2fe   :  { %v8627_v34 = vpop.f32.mrf.mxu0  ;;  %v6997_v3 = vpop.f32.mrf.mxu1 }
 0x2ff   :  { %9063 = vst [vmem:[#allocation22_spill] sm:$0xff] %v8625_v30  ;;  %v8629_v13 = vadd.f32 %v6997_v3, %v3824_v42 }
 0x300   :  { %v6973_v19 = vpop.f32.mrf.mxu0  ;;  %v8631_v36 = vpop.f32.mrf.mxu1 }
 0x301   :  { %v3832_v0 = vadd.f32 %v6973_v19, %v3590_v60 }
 0x302   :  { %v8633_v55 = vpop.f32.mrf.mxu0  ;;  %v8635_v44 = vpop.f32.mrf.mxu1 }
 0x304   :  { %v8637_v9 = vpop.f32.mrf.mxu0  ;;  %v8639_v61 = vpop.f32.mrf.mxu1 }
 0x306   :  { %v8641_v31 = vpop.f32.mrf.mxu0  ;;  %v7001_v57 = vpop.f32.mrf.mxu1 }
 0x307   :  { %v8643_v20 = vadd.f32 %v7001_v57, %v3828_v26 }
 0x308   :  { %v6977_v56 = vpop.f32.mrf.mxu0  ;;  %v8645_v12 = vpop.f32.mrf.mxu1 }
 0x309   :  { %v3836_v35 = vadd.f32 %v6977_v56, %v3594_v32 }
 0x30a   :  { %v8647_v38 = vpop.f32.mrf.mxu0  ;;  %v8649_v21 = vpop.f32.mrf.mxu1 }
 0x30b   :  { %9064 = vst [vmem:[#allocation6_spill] sm:$0xff] %v8647_v38 }
 0x30c   :  { %v8651_v41 = vpop.f32.mrf.mxu0  ;;  %v8653_v6 = vpop.f32.mrf.mxu1 }
 0x30d   :  { %9065 = vst [vmem:[#allocation8_spill] sm:$0xff] %v8651_v41 }
 0x30e   :  { %v8655_v10 = vpop.f32.mrf.mxu0  ;;  %v7005_v62 = vpop.f32.mrf.mxu1 }
 0x30f   :  { %9066 = vst [vmem:[#allocation11_spill] sm:$0xff] %v8655_v10  ;;  %v8657_v16 = vadd.f32 %v7005_v62, %v3832_v0 }
 0x310   :  { %v7029_v37 = vpop.f32.mrf.mxu0  ;;  %v8659_v48 = vpop.f32.mrf.mxu1 }
 0x311   :  { %9067 = vst [vmem:[#allocation12_spill] sm:$0xff] %v8657_v16 }
 0x312   :  { %v4243_v14 = vpop.f32.mrf.mxu0  ;;  %v8661_v27 = vpop.f32.mrf.mxu1 }
 0x313   :  { %9068 = vst [vmem:[#allocation27_spill] sm:$0xff] %v8661_v27 }
 0x314   :  { %v7030_v40 = vpop.f32.mrf.mxu0  ;;  %v8663_v29 = vpop.f32.mrf.mxu1 }
 0x316   :  { %v4246_v54 = vpop.f32.mrf.mxu0  ;;  %v7009_v5 = vpop.f32.mrf.mxu1 }
 0x317   :  { %v8665_v25 = vadd.f32 %v7009_v5, %v3836_v35 }
 0x318   :  { %v8667_v1 = vpop.f32.mrf.mxu0  ;;  %v8669_v60 = vpop.f32.mrf.mxu1 }
 0x319   :  { %9069 = vst [vmem:[#allocation10_spill] sm:$0xff] %v8665_v25  ;;  %9070 = vst [vmem:[#allocation18_spill] sm:$0xff] %v8669_v60 }
 0x31a   :  { %v4259_v43 = vpop.f32.mrf.mxu0  ;;  %v8671_v11 = vpop.f32.mrf.mxu1 }
 0x31b   :  { %9071 = vst [vmem:[#allocation20_spill] sm:$0xff] %v8671_v11 }
 0x31c   :  { %v8673_v63 = vpop.f32.mrf.mxu0  ;;  %v8675_v42 = vpop.f32.mrf.mxu1 }
 0x31d   :  { %9072 = vst [vmem:[#allocation15_spill] sm:$0xff] %v8675_v42 }
 0x31e   :  { %v8677_v58 = vpop.f32.mrf.mxu0  ;;  %v7061_v18 = vpop.f32.mrf.mxu1 }
 0x320   :  { %v8679_v24 = vpop.f32.mrf.mxu0  ;;  %v4485_v32 = vpop.f32.mrf.mxu1 }
 0x321   :  { %9073 = vst [vmem:[#allocation19_spill] sm:$0xff] %v8679_v24 }
 0x322   :  { %v8681_v50 = vpop.f32.mrf.mxu0  ;;  %v7062_v23 = vpop.f32.mrf.mxu1 }
 0x324   :  { %v8683_v26 = vpop.f32.mrf.mxu0  ;;  %v4488_v22 = vpop.f32.mrf.mxu1 }
 0x325   :  { %9074 = vst [vmem:[#allocation25_spill] sm:$0xff] %v8683_v26 }
 0x326   :  { %v8685_v33 = vpop.f32.mrf.mxu0  ;;  %v8687_v3 = vpop.f32.mrf.mxu1 }
 0x327   :  { %9075 = vst [vmem:[#allocation7_spill] sm:$0xff] %v8685_v33  ;;  %v3823_v33 = vadd.f32 %v8615_v17, %v8597_v15  ;;  %v4308_v15 = vadd.f32 %v7029_v37, %v8629_v13 }
 0x328   :  { %v8689_v19 = vpop.f32.mrf.mxu0  ;;  %v4501_v0 = vpop.f32.mrf.mxu1 }
 0x329   :  { %9076 = vst [vmem:[#allocation9_spill] sm:$0xff] %v8689_v19 }
 0x32a   :  { %v8691_v57 = vpop.f32.mrf.mxu0  ;;  %v8693_v56 = vpop.f32.mrf.mxu1 }
 0x32b   :  { %9077 = vst [vmem:[#allocation23_spill] sm:$0xff] %v8691_v57 }
 0x32c   :  { %v8695_v35 = vpop.f32.mrf.mxu0  ;;  %v8697_v62 = vpop.f32.mrf.mxu1 }
 0x32d   :  { %9078 = vst [vmem:[#allocation17_spill] sm:$0xff] %v8695_v35 }
 0x32e   :  { %v8699_v5 = vpop.f32.mrf.mxu0  ;;  %v8701_v25 = vpop.f32.mrf.mxu1 }
 0x32f   :  { %9079 = vst [vmem:[#allocation28_spill] sm:$0xff] %v8699_v5  ;;  %9080 = vst [vmem:[#allocation16_spill] sm:$0xff] %v8701_v25  ;;  %v3822_v5 = vadd.f32 %v8607_v45, %v8593_v39  ;;  %v3826_v39 = vadd.f32 %v8619_v51, %v8599_v28  ;;  %v3827_v28 = vadd.f32 %v8627_v34, %v8603_v4 }
 0x330   :  { %v7093_v11 = vpop.f32.mrf.mxu0  ;;  %v8703_v42 = vpop.f32.mrf.mxu1  ;;  %v3830_v4 = vadd.f32 %v8633_v55, %v8605_v46 }
 0x332   :  { %v4727_v41 = vpop.f32.mrf.mxu0  ;;  %v8705_v47 = vpop.f32.mrf.mxu1  ;;  %v4072_v55 = vadd.f32 %v8659_v48, %v3830_v4 }
 0x333   :  { %9081 = vst [vmem:[#allocation14_spill] sm:$0xff] %v8705_v47  ;;  %v4064_v47 = vadd.f32 %v8631_v36, %v3822_v5  ;;  %v4068_v5 = vadd.f32 %v8645_v12, %v3826_v39  ;;  %v3829_v12 = vadd.f32 %v8623_v53, %v8601_v49  ;;  %v8752_v49 = vld [vmem:[%s8968_s7] ss:$0 sm:$0xff] }
 0x334   :  { %v7094_v19 = vpop.f32.mrf.mxu0  ;;  %v8707_v10 = vpop.f32.mrf.mxu1  ;;  %v4314_v48 = vadd.f32 %v8681_v50, %v4072_v55 }
 0x335   :  { %9082 = vst [vmem:[#allocation21_spill] sm:$0xff] %v8707_v10  ;;  %v4306_v16 = vadd.f32 %v4243_v14, %v4064_v47  ;;  %v4310_v51 = vadd.f32 %v4259_v43, %v4068_v5  ;;  %v4071_v34 = vadd.f32 %v8649_v21, %v3829_v12  ;;  %v9093_v12 = vld [vmem:[#allocation25_spill] sm:$0xff] }
 0x336   :  { %v4730_v57 = vpop.f32.mrf.mxu0  ;;  %v8709_v30 = vpop.f32.mrf.mxu1 }
 0x337   :  { %9083 = vst [vmem:[#allocation26_spill] sm:$0xff] %v8709_v30  ;;  %v3825_v30 = vadd.f32 %v8611_v7, %v8595_v8  ;;  %v4548_v36 = vadd.f32 %v4485_v32, %v4306_v16  ;;  %v4550_v7 = vadd.f32 %v7061_v18, %v4308_v15  ;;  %v4069_v16 = vadd.f32 %v8653_v6, %v3827_v28 }
 0x338   :  { %v8711_v26 = vpop.f32.mrf.mxu0  ;;  %v8713_v35 = vpop.f32.mrf.mxu1  ;;  %v3833_v15 = vadd.f32 %v8637_v9, %v8609_v59  ;;  %v9089_v9 = vld [vmem:[#allocation12_spill] sm:$0xff] }
 0x339   :  { %9084 = vst [vmem:[#allocation24_spill] sm:$0xff] %v8713_v35  ;;  %v4065_v35 = vadd.f32 %v8639_v61, %v3823_v33  ;;  %v4067_v27 = vadd.f32 %v8635_v44, %v3825_v30  ;;  %v4790_v47 = vadd.f32 %v4727_v41, %v4548_v36  ;;  %v4792_v44 = vadd.f32 %v7093_v11, %v4550_v7 }
 0x33a   :  { %v4743_v25 = vpop.f32.mrf.mxu0  ;;  %v8717_v60 = vpop.f32.mrf.mxu1  ;;  %v4311_v43 = vadd.f32 %v8677_v58, %v4069_v16  ;;  %v9099_v55 = vld [vmem:[#allocation14_spill] sm:$0xff] }
 0x33b   :  { %9085 = vst [vmem:[#allocation5_spill] sm:$0xff] %v8717_v60  ;;  %v4307_v17 = vadd.f32 %v4246_v54, %v4065_v35  ;;  %v4309_v8 = vadd.f32 %v7030_v40, %v4067_v27  ;;  %v4552_v40 = vadd.f32 %v4501_v0, %v4310_v51  ;;  %v3831_v0 = vadd.f32 %v8641_v31, %v8613_v52 }
 0x33c   :  { %v8722_v24 = vpop.f32.mrf.mxu0  ;;  %v8724_v10 = vpop.f32.mrf.mxu1  ;;  %v4556_v52 = vadd.f32 %v8703_v42, %v4314_v48  ;;  %v9091_v42 = vld [vmem:[#allocation7_spill] sm:$0xff]  ;;  %v9101_v48 = vld [vmem:[#allocation8_spill] sm:$0xff] }
 0x33d   :  { %9086 = vst [vmem:[#allocation29_spill] sm:$0xff] %v8724_v10  ;;  %v4549_v61 = vadd.f32 %v4488_v22, %v4307_v17  ;;  %v4551_v30 = vadd.f32 %v7062_v23, %v4309_v8  ;;  %v4794_v6 = vadd.f32 %v4743_v25, %v4552_v40  ;;  %v4553_v23 = vadd.f32 %v8697_v62, %v4311_v43  ;;  %v9087_v8 = vld [vmem:[#allocation6_spill] sm:$0xff]  ;;  %v9097_v43 = vld [vmem:[#allocation11_spill] sm:$0xff] }
 0x33e   :  { %v4746_v45 = vpop.f32.mrf.mxu0  ;;  %v7125_v60 = vpop.f32.mrf.mxu1  ;;  %v4073_v17 = vadd.f32 %v8663_v29, %v3831_v0  ;;  %v3834_v7 = vadd.f32 %v9087_v8, %v8617_v2  ;;  %v9090_v29 = vld [vmem:[#allocation19_spill] sm:$0xff]  ;;  %v9094_v2 = vld [vmem:[#allocation16_spill] sm:$0xff]  ;;  %v9100_v0 = vld [vmem:[#allocation13_spill] sm:$0xff] }
 0x33f   :  { %v4791_v13 = vadd.f32 %v4730_v57, %v4549_v61  ;;  %v4793_v41 = vadd.f32 %v7094_v19, %v4551_v30  ;;  %v5034_v18 = vadd.f32 %v7125_v60, %v4792_v44  ;;  %v4795_v35 = vadd.f32 %v4746_v45, %v4553_v23  ;;  %v9088_v61 = vld [vmem:[#allocation27_spill] sm:$0xff]  ;;  %v9106_v8 = vld [vmem:[#allocation9_spill] sm:$0xff] }
 0x340   :  { %v8734_v10 = vpop.f32.mrf.mxu0  ;;  %v4969_v38 = vpop.f32.mrf.mxu1  ;;  %v4075_v59 = vadd.f32 %v9088_v61, %v3833_v15  ;;  %v4315_v28 = vadd.f32 %v9091_v42, %v4073_v17  ;;  %v9107_v61 = vld [vmem:[#allocation28_spill] sm:$0xff] }
 0x341   :  { %v5032_v37 = vadd.f32 %v4969_v38, %v4790_v47  ;;  %v4312_v38 = vadd.f32 %v8667_v1, %v8643_v20  ;;  %v4313_v20 = vadd.f32 %v8673_v63, %v4071_v34  ;;  %v8765_v22 = vadd.f32 %v8752_v49, %v5034_v18  ;;  %v9095_v18 = vld [vmem:[#allocation21_spill] sm:$0xff] }
 0x342   :  { %v4759_v14 = vpop.f32.mrf.mxu0  ;;  %v7126_v33 = vpop.f32.mrf.mxu1  ;;  %v4316_v47 = vadd.f32 %v9090_v29, %v9089_v9  ;;  %v4317_v16 = vadd.f32 %v9093_v12, %v4075_v59 }
 0x343   :  { %v8755_v60 = vadd.f32 %v8752_v49, %v5032_v37  ;;  %v5035_v11 = vadd.f32 %v7126_v33, %v4793_v41  ;;  %v4554_v21 = vadd.f32 %v8687_v3, %v4312_v38  ;;  %v4555_v63 = vadd.f32 %v8693_v56, %v4313_v20  ;;  %v9096_v38 = vld [vmem:[#allocation22_spill] sm:$0xff] }
 0x344   :  { %v8741_v54 = vpop.f32.mrf.mxu0  ;;  %v4972_v27 = vpop.f32.mrf.mxu1  ;;  %v4798_v51 = vadd.f32 %v4759_v14, %v4556_v52  ;;  %v4559_v20 = vadd.f32 %v9099_v55, %v4317_v16 }
 0x345   :  { %v5033_v32 = vadd.f32 %v4972_v27, %v4791_v13  ;;  %v4796_v3 = vadd.f32 %v8711_v26, %v4554_v21  ;;  %v8775_v62 = vadd.f32 %v8752_v49, %v5035_v11  ;;  %v4797_v31 = vadd.f32 %v8722_v24, %v4555_v63  ;;  %v9092_v13 = vld [vmem:[#allocation18_spill] sm:$0xff] }
 0x346   :  { %v7129_v53 = vpop.f32.mrf.mxu1  ;;  %v4762_v1 = vpop.f32.mrf.mxu0  ;;  %v4076_v37 = vadd.f32 %v9092_v13, %v3834_v7  ;;  %v4558_v27 = vadd.f32 %v9094_v2, %v4316_v47  ;;  %v3837_v63 = vadd.f32 %v9101_v48, %v9100_v0  ;;  %v4801_v15 = vadd.f32 %v8741_v54, %v4559_v20 }
 0x347   :  { %v8758_v46 = vadd.f32 %v8752_v49, %v5033_v32  ;;  %v5038_v36 = vadd.f32 %v7129_v53, %v4796_v3  ;;  %v4557_v32 = vadd.f32 %v9095_v18, %v4315_v28  ;;  %v3835_v53 = vadd.f32 %v9097_v43, %v9096_v38  ;;  %v9108_v28 = vld [vmem:[#allocation17_spill] sm:$0xff] }
 0x348   :  { %v4985_v58 = vpop.f32.mrf.mxu1  ;;  %v7105_v50 = vpop.f32.mrf.mxu0 }
 0x349   :  { %v5072_v25 = vadd.f32 %v8758_v46, %v8755_v60  ;;  %v5036_v19 = vadd.f32 %v4985_v58, %v4794_v6  ;;  %v8802_v4 = vadd.f32 %v8752_v49, %v5038_v36  ;;  %v9098_v6 = vld [vmem:[#allocation23_spill] sm:$0xff]  ;;  %v4800_v58 = vadd.f32 %v8734_v10, %v4558_v27  ;;  %v9104_v36 = vld [vmem:[#allocation20_spill] sm:$0xff] }
 0x34a   :  { %v7130_v57 = vpop.f32.mrf.mxu1  ;;  %v4775_v40 = vpop.f32.mrf.mxu0  ;;  %v4318_v11 = vadd.f32 %v9098_v6, %v4076_v37  ;;  %v4799_v23 = vadd.f32 %v4762_v1, %v4557_v32  ;;  %v9110_v37 = vld [vmem:[#allocation29_spill] sm:$0xff] }
 0x34b   :  { %v5073_v39 = vadd.f32 %v5072_v25, %v8765_v22  ;;  %v8784_v26 = vadd.f32 %v8752_v49, %v5036_v19  ;;  %v5039_v30 = vadd.f32 %v7130_v57, %v4797_v31  ;;  %v9102_v57 = vld [vmem:[#allocation15_spill] sm:$0xff] }
 0x34c   :  { %v4988_v56 = vpop.f32.mrf.mxu1  ;;  %v4077_v3 = vadd.f32 %v9102_v57, %v3835_v53  ;;  %v7106_v17 = vpop.f32.mrf.mxu0 }
 0x34d   :  { %v5074_v45 = vadd.f32 %v5073_v39, %v8775_v62  ;;  %v5037_v5 = vadd.f32 %v4988_v56, %v4795_v35  ;;  %v5061_v25 = vadd.f32 %v8752_v49, %v5039_v30  ;;  %v9103_v35 = vld [vmem:[#allocation24_spill] sm:$0xff] }
 0x34e   :  { %v7133_v24 = vpop.f32.mrf.mxu1  ;;  %v4560_v39 = vadd.f32 %v9103_v35, %v4318_v11  ;;  %v4319_v59 = vadd.f32 %v9107_v61, %v4077_v3  ;;  %v4778_v30 = vpop.f32.mrf.mxu0 }
 0x34f   :  { %v5075_v33 = vadd.f32 %v5074_v45, %v8784_v26  ;;  %v8795_v44 = vadd.f32 %v8752_v49, %v5037_v5  ;;  %v5042_v31 = vadd.f32 %v7133_v24, %v4800_v58  ;;  %v4079_v45 = vadd.f32 %v9104_v36, %v3837_v63  ;;  %v9105_v5 = vld [vmem:[#allocation10_spill] sm:$0xff] }
 0x350   :  { %v5001_v41 = vpop.f32.mrf.mxu1  ;;  %v4320_v7 = vadd.f32 %v9106_v8, %v9105_v5  ;;  %v4802_v29 = vadd.f32 %v4775_v40, %v4560_v39  ;;  %v9109_v24 = vld [vmem:[#allocation26_spill] sm:$0xff]  ;;  %v4561_v12 = vadd.f32 %v9110_v37, %v4319_v59 }
 0x351   :  { %v5076_v14 = vadd.f32 %v5075_v33, %v8795_v44  ;;  %v5040_v34 = vadd.f32 %v5001_v41, %v4798_v51  ;;  %v4321_v51 = vadd.f32 %v9108_v28, %v4079_v45  ;;  %v5064_v16 = vadd.f32 %v8752_v49, %v5042_v31  ;;  %v9111_v41 = vld [vmem:[#allocation5_spill] sm:$0xff] }
 0x352   :  { %v7134_v21 = vpop.f32.mrf.mxu1  ;;  %v4562_v33 = vadd.f32 %v9109_v24, %v4320_v7 }
 0x353   :  { %v5077_v19 = vadd.f32 %v5076_v14, %v8802_v4  ;;  %v5062_v56 = vadd.f32 %v8752_v49, %v5040_v34  ;;  %v5043_v42 = vadd.f32 %v7134_v21, %v4801_v15  ;;  %v4563_v18 = vadd.f32 %v9111_v41, %v4321_v51 }
 0x354   :  { %v5004_v52 = vpop.f32.mrf.mxu1  ;;  %v4804_v40 = vadd.f32 %v7105_v50, %v4562_v33  ;;  %v4803_v14 = vadd.f32 %v4778_v30, %v4561_v12 }
 0x355   :  { %v5078_v10 = vadd.f32 %v5077_v19, %v5061_v25  ;;  %v5041_v1 = vadd.f32 %v5004_v52, %v4799_v23  ;;  %v5065_v34 = vadd.f32 %v8752_v49, %v5043_v42  ;;  %v4805_v43 = vadd.f32 %v7106_v17, %v4563_v18 }
 0x356   :  { %v7137_v9 = vpop.f32.mrf.mxu1 }
 0x357   :  { %v5079_v47 = vadd.f32 %v5078_v10, %v5062_v56  ;;  %v5063_v54 = vadd.f32 %v8752_v49, %v5041_v1  ;;  %v5046_v6 = vadd.f32 %v7137_v9, %v4804_v40 }
 0x358   :  { %v5017_v13 = vpop.f32.mrf.mxu1 }
 0x359   :  { %v5080_v2 = vadd.f32 %v5079_v47, %v5063_v54  ;;  %v5044_v27 = vadd.f32 %v5017_v13, %v4802_v29  ;;  %v5068_v19 = vadd.f32 %v8752_v49, %v5046_v6 }
 0x35a   :  { %v7138_v32 = vpop.f32.mrf.mxu1 }
 0x35b   :  { %v5081_v38 = vadd.f32 %v5080_v2, %v5064_v16  ;;  %v5066_v11 = vadd.f32 %v8752_v49, %v5044_v27  ;;  %v5047_v58 = vadd.f32 %v7138_v32, %v4805_v43 }
 0x35c   :  { %v5020_v53 = vpop.f32.mrf.mxu1 }
 0x35d   :  { %v5082_v55 = vadd.f32 %v5081_v38, %v5065_v34  ;;  %v5045_v20 = vadd.f32 %v5020_v53, %v4803_v14  ;;  %v5069_v50 = vadd.f32 %v8752_v49, %v5047_v58 }
 0x35f   :  { %v5083_v21 = vadd.f32 %v5082_v55, %v5066_v11  ;;  %v5067_v23 = vadd.f32 %v8752_v49, %v5045_v20 }
 0x361   :  { %v5084_v0 = vadd.f32 %v5083_v21, %v5067_v23 }
 0x363   :  { %v5085_v48 = vadd.f32 %v5084_v0, %v5068_v19 }
 0x365   :  { %v5086_v63 = vadd.f32 %v5085_v48, %v5069_v50 }
 0x367   :  { %v5087_v57 = vrot.slane %v5086_v63, 4 }
 0x369   :  { %v5088_v3 = vadd.f32 %v5087_v57, %v5086_v63 }
 0x36b   :  { %v5089_v35 = vrot.slane %v5088_v3, 2 }
 0x36d   :  { %v5090_v39 = vadd.f32 %v5089_v35, %v5088_v3 }
 0x36f   :  { %v5091_v15 = vrot.slane %v5090_v39, 1 }
 0x371   :  { %v5092_v17 = vadd.f32 %v5091_v15, %v5090_v39  ;;  %v5866_v39 = vld [vmem:[%s8969_s8] ss:$0 sm:$0xff] }
 0x373   :  { %v5093_v52 = vmul.f32 0.0078125, %v5092_v17 }
 0x375   :  { %v5094_v31 = vsub.f32 %v8755_v60, %v5093_v52  ;;  %v5095_v10 = vsub.f32 %v8758_v46, %v5093_v52  ;;  %v5096_v1 = vsub.f32 %v8765_v22, %v5093_v52  ;;  %v5097_v36 = vsub.f32 %v8775_v62, %v5093_v52 }
 0x376   :  { %v5098_v45 = vsub.f32 %v8784_v26, %v5093_v52  ;;  %v5099_v49 = vsub.f32 %v8795_v44, %v5093_v52  ;;  %v5100_v5 = vsub.f32 %v8802_v4, %v5093_v52  ;;  %v5101_v8 = vsub.f32 %v5061_v25, %v5093_v52 }
 0x377   :  { %v5102_v7 = vsub.f32 %v5062_v56, %v5093_v52  ;;  %v5103_v61 = vsub.f32 %v5063_v54, %v5093_v52  ;;  %v5104_v59 = vsub.f32 %v5064_v16, %v5093_v52  ;;  %v5105_v9 = vsub.f32 %v5065_v34, %v5093_v52 }
 0x378   :  { %v5106_v29 = vsub.f32 %v5066_v11, %v5093_v52  ;;  %v5107_v47 = vsub.f32 %v5067_v23, %v5093_v52  ;;  %v5108_v60 = vsub.f32 %v5068_v19, %v5093_v52  ;;  %v5109_v42 = vsub.f32 %v5069_v50, %v5093_v52 }
 0x379   :  { %v5110_v46 = vmul.f32 %v5094_v31, %v5094_v31  ;;  %v5111_v28 = vmul.f32 %v5095_v10, %v5095_v10  ;;  %v5112_v22 = vmul.f32 %v5096_v1, %v5096_v1  ;;  %v5113_v62 = vmul.f32 %v5097_v36, %v5097_v36 }
 0x37a   :  { %v5114_v26 = vmul.f32 %v5098_v45, %v5098_v45  ;;  %v5115_v44 = vmul.f32 %v5099_v49, %v5099_v49  ;;  %v5116_v4 = vmul.f32 %v5100_v5, %v5100_v5  ;;  %v5117_v56 = vmul.f32 %v5101_v8, %v5101_v8 }
 0x37b   :  { %v5126_v51 = vadd.f32 %v5111_v28, %v5110_v46  ;;  %v5118_v13 = vmul.f32 %v5102_v7, %v5102_v7  ;;  %v5119_v12 = vmul.f32 %v5103_v61, %v5103_v61  ;;  %v5120_v2 = vmul.f32 %v5104_v59, %v5104_v59 }
 0x37c   :  { %v5121_v41 = vmul.f32 %v5105_v9, %v5105_v9  ;;  %v5122_v32 = vmul.f32 %v5106_v29, %v5106_v29  ;;  %v5123_v14 = vmul.f32 %v5107_v47, %v5107_v47  ;;  %v5124_v38 = vmul.f32 %v5108_v60, %v5108_v60 }
 0x37d   :  { %v5127_v24 = vadd.f32 %v5126_v51, %v5112_v22  ;;  %v5125_v53 = vmul.f32 %v5109_v42, %v5109_v42 }
 0x37f   :  { %v5128_v33 = vadd.f32 %v5127_v24, %v5113_v62 }
 0x381   :  { %v5129_v30 = vadd.f32 %v5128_v33, %v5114_v26 }
 0x383   :  { %v5130_v25 = vadd.f32 %v5129_v30, %v5115_v44  ;;  %v5867_v30 = vld [vmem:[%s8970_s9] ss:$0 sm:$0xff] }
 0x385   :  { %v5131_v54 = vadd.f32 %v5130_v25, %v5116_v4  ;;  %v5210_v4 = vld [vmem:[%s8962_s0] sm:$0xff] }
 0x387   :  { %v5132_v37 = vadd.f32 %v5131_v54, %v5117_v56 }
 0x389   :  { %v5133_v16 = vadd.f32 %v5132_v37, %v5118_v13  ;;  %v5211_v37 = vld [vmem:[%s8962_s0 + $0x8] sm:$0xff] }
 0x38b   :  { %v5134_v27 = vadd.f32 %v5133_v16, %v5119_v12  ;;  %v5212_v12 = vld [vmem:[%s8962_s0 + $0x10] sm:$0xff]  ;;  %v5213_v16 = vld [vmem:[%s8962_s0 + $0x18] sm:$0xff] }
 0x38d   :  { %v5135_v18 = vadd.f32 %v5134_v27, %v5120_v2 }
 0x38f   :  { %v5136_v40 = vadd.f32 %v5135_v18, %v5121_v41 }
 0x391   :  { %v5137_v34 = vadd.f32 %v5136_v40, %v5122_v32  ;;  %v5214_v32 = vld [vmem:[%s8962_s0 + $0x20] sm:$0xff]  ;;  %v5215_v40 = vld [vmem:[%s8962_s0 + $0x28] sm:$0xff] }
 0x393   :  { %v5138_v43 = vadd.f32 %v5137_v34, %v5123_v14  ;;  %v5216_v14 = vld [vmem:[%s8962_s0 + $0x30] sm:$0xff] }
 0x395   :  { %v5139_v6 = vadd.f32 %v5138_v43, %v5124_v38 }
 0x397   :  { %v5140_v11 = vadd.f32 %v5139_v6, %v5125_v53  ;;  %v5217_v6 = vld [vmem:[%s8962_s0 + $0x38] sm:$0xff] }
 0x399   :  { %v5141_v55 = vrot.slane %v5140_v11, 4 }
 0x39b   :  { %v5142_v20 = vadd.f32 %v5141_v55, %v5140_v11  ;;  %v5218_v11 = vld [vmem:[%s8962_s0 + $0x40] sm:$0xff]  ;;  %v5219_v55 = vld [vmem:[%s8962_s0 + $0x48] sm:$0xff] }
 0x39d   :  { %v5143_v21 = vrot.slane %v5142_v20, 2 }
 0x39f   :  { %v5144_v58 = vadd.f32 %v5143_v21, %v5142_v20 }
 0x3a1   :  { %v5145_v23 = vrot.slane %v5144_v58, 1 }
 0x3a3   :  { %v5146_v19 = vadd.f32 %v5145_v23, %v5144_v58 }
 0x3a5   :  { %v5147_v0 = vmul.f32 0.0078125, %v5146_v19  ;;  %v5220_v19 = vld [vmem:[%s8962_s0 + $0x50] sm:$0xff] }
 0x3a7   :  { %v5148_v50 = vadd.f32 1e-05, %v5147_v0  ;;  %v5221_v0 = vld [vmem:[%s8962_s0 + $0x58] sm:$0xff] }
 0x3a9   :  { %7430 = vrsqrt.f32 %v5148_v50  ;;  %v5222_v50 = vld [vmem:[%s8962_s0 + $0x60] sm:$0xff] }
 0x3b6   :  { %v7431_v48 = vpop.eup %7430 }
 0x3b7   :  { %v5150_v63 = vmul.f32 %v7431_v48, %v5094_v31  ;;  %v5151_v57 = vmul.f32 %v7431_v48, %v5095_v10  ;;  %v5152_v3 = vmul.f32 %v7431_v48, %v5096_v1  ;;  %v5153_v35 = vmul.f32 %v7431_v48, %v5097_v36 }
 0x3b8   :  { %v5154_v15 = vmul.f32 %v7431_v48, %v5098_v45  ;;  %v5155_v17 = vmul.f32 %v7431_v48, %v5099_v49  ;;  %v5156_v52 = vmul.f32 %v7431_v48, %v5100_v5  ;;  %v5157_v46 = vmul.f32 %v7431_v48, %v5101_v8 }
 0x3b9   :  { %v5158_v28 = vmul.f32 %v7431_v48, %v5102_v7  ;;  %v5159_v22 = vmul.f32 %v7431_v48, %v5103_v61  ;;  %v5160_v51 = vmul.f32 %v7431_v48, %v5104_v59  ;;  %v5161_v62 = vmul.f32 %v7431_v48, %v5105_v9 }
 0x3ba   :  { %v5162_v24 = vmul.f32 %v7431_v48, %v5106_v29  ;;  %v5163_v26 = vmul.f32 %v7431_v48, %v5107_v47  ;;  %v5164_v33 = vmul.f32 %v7431_v48, %v5108_v60  ;;  %v5165_v44 = vmul.f32 %v7431_v48, %v5109_v42  ;;  %v5223_v48 = vld [vmem:[%s8962_s0 + $0x68] sm:$0xff] }
 0x3bb   :  { %v5172_v31 = vmul.f32 %v5866_v39, %v5150_v63  ;;  %v5173_v10 = vmul.f32 %v5866_v39, %v5151_v57  ;;  %v5174_v1 = vmul.f32 %v5866_v39, %v5152_v3  ;;  %v5175_v36 = vmul.f32 %v5866_v39, %v5153_v35  ;;  %v5224_v63 = vld [vmem:[%s8962_s0 + $0x70] sm:$0xff]  ;;  %v5225_v57 = vld [vmem:[%s8962_s0 + $0x78] sm:$0xff] }
 0x3bc   :  { %v5176_v45 = vmul.f32 %v5866_v39, %v5154_v15  ;;  %v5177_v49 = vmul.f32 %v5866_v39, %v5155_v17  ;;  %v5178_v5 = vmul.f32 %v5866_v39, %v5156_v52  ;;  %v5179_v8 = vmul.f32 %v5866_v39, %v5157_v46 }
 0x3bd   :  { %v5180_v7 = vmul.f32 %v5866_v39, %v5158_v28  ;;  %v5181_v61 = vmul.f32 %v5866_v39, %v5159_v22  ;;  %v5182_v59 = vmul.f32 %v5866_v39, %v5160_v51  ;;  %v5183_v9 = vmul.f32 %v5866_v39, %v5161_v62 }
 0x3be   :  { %v5184_v29 = vmul.f32 %v5866_v39, %v5162_v24  ;;  %v5185_v47 = vmul.f32 %v5866_v39, %v5163_v26  ;;  %v5186_v60 = vmul.f32 %v5866_v39, %v5164_v33  ;;  %v5187_v42 = vmul.f32 %v5866_v39, %v5165_v44 }
 0x3bf   :  { %v5194_v25 = vadd.f32 %v5867_v30, %v5172_v31  ;;  %v5195_v56 = vadd.f32 %v5867_v30, %v5173_v10  ;;  %v5196_v54 = vadd.f32 %v5867_v30, %v5174_v1  ;;  %v5197_v13 = vadd.f32 %v5867_v30, %v5175_v36  ;;  %v5868_v10 = vld [vmem:[%s8971_s10] ss:$0 sm:$0xff] }
 0x3c0   :  { %v5198_v2 = vadd.f32 %v5867_v30, %v5176_v45  ;;  %v5199_v27 = vadd.f32 %v5867_v30, %v5177_v49  ;;  %v5200_v41 = vadd.f32 %v5867_v30, %v5178_v5  ;;  %v5201_v18 = vadd.f32 %v5867_v30, %v5179_v8 }
 0x3c1   :  { %v5202_v34 = vadd.f32 %v5867_v30, %v5180_v7  ;;  %v5203_v38 = vadd.f32 %v5867_v30, %v5181_v61  ;;  %v5204_v43 = vadd.f32 %v5867_v30, %v5182_v59  ;;  %v5205_v53 = vadd.f32 %v5867_v30, %v5183_v9 }
 0x3c2   :  { %v5206_v20 = vadd.f32 %v5867_v30, %v5184_v29  ;;  %v5207_v21 = vadd.f32 %v5867_v30, %v5185_v47  ;;  %v5208_v58 = vadd.f32 %v5867_v30, %v5186_v60  ;;  %v5209_v23 = vadd.f32 %v5867_v30, %v5187_v42 }
 0x3c3   :  { %v5226_v3 = vadd.f32 %v5210_v4, %v5194_v25  ;;  %v5227_v35 = vadd.f32 %v5211_v37, %v5195_v56  ;;  %v5228_v39 = vadd.f32 %v5212_v12, %v5196_v54  ;;  %v5229_v15 = vadd.f32 %v5213_v16, %v5197_v13 }
 0x3c4   :  { %v5230_v17 = vadd.f32 %v5214_v32, %v5198_v2  ;;  %v5231_v52 = vadd.f32 %v5215_v40, %v5199_v27  ;;  %v5232_v46 = vadd.f32 %v5216_v14, %v5200_v41  ;;  %v5233_v28 = vadd.f32 %v5217_v6, %v5201_v18 }
 0x3c5   :  { %v5234_v22 = vadd.f32 %v5218_v11, %v5202_v34  ;;  %v5235_v51 = vadd.f32 %v5219_v55, %v5203_v38  ;;  %v5236_v62 = vadd.f32 %v5220_v19, %v5204_v43  ;;  %v5237_v24 = vadd.f32 %v5221_v0, %v5205_v53 }
 0x3c6   :  { %v5238_v26 = vadd.f32 %v5222_v50, %v5206_v20  ;;  %v5239_v33 = vadd.f32 %v5223_v48, %v5207_v21  ;;  %v5240_v44 = vadd.f32 %v5224_v63, %v5208_v58  ;;  %v5241_v31 = vadd.f32 %v5225_v57, %v5209_v23 }
 0x3c7   :  { %vm5243_vm8 = vcmp.ge.f32.partialorder %v5226_v3, 0.0  ;;  %vm5244_vm9 = vcmp.ge.f32.partialorder %v5227_v35, 0.0  ;;  %vm5245_vm10 = vcmp.ge.f32.partialorder %v5228_v39, 0.0  ;;  %vm5246_vm11 = vcmp.ge.f32.partialorder %v5229_v15, 0.0 }
 0x3c8   :  { %vm5247_vm12 = vcmp.ge.f32.partialorder %v5230_v17, 0.0  ;;  %vm5248_vm13 = vcmp.ge.f32.partialorder %v5231_v52, 0.0  ;;  %vm5249_vm14 = vcmp.ge.f32.partialorder %v5232_v46, 0.0  ;;  %vm5250_vm15 = vcmp.ge.f32.partialorder %v5233_v28, 0.0 }
 0x3c9   :  { %vm5251_vm0 = vcmp.ge.f32.partialorder %v5234_v22, 0.0  ;;  %vm5252_vm1 = vcmp.ge.f32.partialorder %v5235_v51, 0.0  ;;  %vm5253_vm2 = vcmp.ge.f32.partialorder %v5236_v62, 0.0  ;;  %vm5254_vm3 = vcmp.ge.f32.partialorder %v5237_v24, 0.0 }
 0x3ca   :  { %vm5255_vm4 = vcmp.ge.f32.partialorder %v5238_v26, 0.0  ;;  %vm5256_vm5 = vcmp.ge.f32.partialorder %v5239_v33, 0.0  ;;  %vm5257_vm6 = vcmp.ge.f32.partialorder %v5240_v44, 0.0  ;;  %vm5258_vm7 = vcmp.ge.f32.partialorder %v5241_v31, 0.0 }
 0x3cb   :  { %v5265_v1 = vmul.f32 %v5868_v10, %v5226_v3  ;;  %v5266_v36 = vmul.f32 %v5868_v10, %v5227_v35  ;;  %v5267_v30 = vmul.f32 %v5868_v10, %v5228_v39  ;;  %v5268_v45 = vmul.f32 %v5868_v10, %v5229_v15 }
 0x3cc   :  { %v5269_v49 = vmul.f32 %v5868_v10, %v5230_v17  ;;  %v5270_v5 = vmul.f32 %v5868_v10, %v5231_v52  ;;  %v5271_v8 = vmul.f32 %v5868_v10, %v5232_v46  ;;  %v5272_v7 = vmul.f32 %v5868_v10, %v5233_v28 }
 0x3cd   :  { %v5273_v61 = vmul.f32 %v5868_v10, %v5234_v22  ;;  %v5274_v59 = vmul.f32 %v5868_v10, %v5235_v51  ;;  %v5275_v9 = vmul.f32 %v5868_v10, %v5236_v62  ;;  %v5276_v29 = vmul.f32 %v5868_v10, %v5237_v24 }
 0x3ce   :  { %v5277_v47 = vmul.f32 %v5868_v10, %v5238_v26  ;;  %v5278_v60 = vmul.f32 %v5868_v10, %v5239_v33  ;;  %v5279_v42 = vmul.f32 %v5868_v10, %v5240_v44  ;;  %v5280_v4 = vmul.f32 %v5868_v10, %v5241_v31 }
 0x3cf   :  { %v5281_v25 = vsel %vm5243_vm8, %v5226_v3, %v5265_v1  ;;  %v5282_v56 = vsel %vm5244_vm9, %v5227_v35, %v5266_v36  ;;  %v5283_v54 = vsel %vm5245_vm10, %v5228_v39, %v5267_v30  ;;  %v5284_v13 = vsel %vm5246_vm11, %v5229_v15, %v5268_v45 }
 0x3d0   :  { %v5285_v37 = vsel %vm5247_vm12, %v5230_v17, %v5269_v49  ;;  %v5286_v12 = vsel %vm5248_vm13, %v5231_v52, %v5270_v5  ;;  %v5287_v16 = vsel %vm5249_vm14, %v5232_v46, %v5271_v8  ;;  %v5288_v2 = vsel %vm5250_vm15, %v5233_v28, %v5272_v7  ;;  %5297 = vst [vmem:[%s8972_s11] sm:$0xff] %v5281_v25 }
 0x3d1   :  { %5298 = vst [vmem:[%s8972_s11 + $0x8] sm:$0xff] %v5282_v56  ;;  %5299 = vst [vmem:[%s8972_s11 + $0x10] sm:$0xff] %v5283_v54  ;;  %v5289_v27 = vsel %vm5251_vm0, %v5234_v22, %v5273_v61  ;;  %v5290_v41 = vsel %vm5252_vm1, %v5235_v51, %v5274_v59  ;;  %v5291_v18 = vsel %vm5253_vm2, %v5236_v62, %v5275_v9 }
 0x3d2   :  { %5300 = vst [vmem:[%s8972_s11 + $0x18] sm:$0xff] %v5284_v13  ;;  %v5292_v32 = vsel %vm5254_vm3, %v5237_v24, %v5276_v29  ;;  %5301 = vst [vmem:[%s8972_s11 + $0x20] sm:$0xff] %v5285_v37  ;;  %v5293_v40 = vsel %vm5255_vm4, %v5238_v26, %v5277_v47  ;;  %v5294_v14 = vsel %vm5256_vm5, %v5239_v33, %v5278_v60 }
 0x3d3   :  { %5302 = vst [vmem:[%s8972_s11 + $0x28] sm:$0xff] %v5286_v12  ;;  %5303 = vst [vmem:[%s8972_s11 + $0x30] sm:$0xff] %v5287_v16  ;;  %v5295_v34 = vsel %vm5257_vm6, %v5240_v44, %v5279_v42  ;;  %v5296_v38 = vsel %vm5258_vm7, %v5241_v31, %v5280_v4 }
 0x3d4   :  { %5304 = vst [vmem:[%s8972_s11 + $0x38] sm:$0xff] %v5288_v2  ;;  %5305 = vst [vmem:[%s8972_s11 + $0x40] sm:$0xff] %v5289_v27 }
 0x3d5   :  { %5306 = vst [vmem:[%s8972_s11 + $0x48] sm:$0xff] %v5290_v41  ;;  %5307 = vst [vmem:[%s8972_s11 + $0x50] sm:$0xff] %v5291_v18 }
 0x3d6   :  { %5308 = vst [vmem:[%s8972_s11 + $0x58] sm:$0xff] %v5292_v32  ;;  %5309 = vst [vmem:[%s8972_s11 + $0x60] sm:$0xff] %v5293_v40 }
 0x3d7   :  { %5310 = vst [vmem:[%s8972_s11 + $0x68] sm:$0xff] %v5294_v14  ;;  %5311 = vst [vmem:[%s8972_s11 + $0x70] sm:$0xff] %v5295_v34 }
 0x3d8   :  { %5312 = vst [vmem:[%s8972_s11 + $0x78] sm:$0xff] %v5296_v38 }

</bundles_post_ra>
